<compile_context>
chip_gen: v7x
topology: tpu7x:2x2x1
jax: 0.10.0
libtpu: 0.0.40
codegen_flags: <defaults>
</compile_context>

<pallas_src>
import functools

import numpy as np
import jax
import jax.numpy as jnp
from jax.experimental import pallas as pl
from jax.experimental.pallas import tpu as pltpu

_VMEM = pl.BlockSpec(memory_space=pltpu.MemorySpace.VMEM)
_K = 4                                  # ConvTranspose1d kernel size everywhere
_NT = (((1,), (1,)), ((), ()))          # dot_general dims: contract dim 1 of both


# ---------------------------------------------------------------------------
# Shape-only scatter constants (numpy, built once in prepare_params)
# ---------------------------------------------------------------------------

def _scatter_np(batch, l_in, stride, pad, ksize):
    """0/1 matrices S[k]: (n, i_in) -> (n, o_out) of a ConvTranspose1d."""
    l_out = (l_in - 1) * stride - 2 * pad + ksize
    s = np.zeros((ksize, batch * l_in, batch * l_out), np.float32)
    for n in range(batch):
        for i in range(l_in):
            for k in range(ksize):
                o = stride * i - pad + k
                if 0 <= o < l_out:
                    s[k, n * l_in + i, n * l_out + o] = 1.0
    return s


def _wcat(w):
    """PyTorch ConvTranspose1d weight (Cin, Cout, K) -> tap-stacked (K*Cout, Cin)."""
    cin, cout, k = w.shape
    return jnp.transpose(w, (2, 1, 0)).reshape(k * cout, cin)


# ---------------------------------------------------------------------------
# One-time parameter / constant preparation (hoisted out of the jitted forward)
# ---------------------------------------------------------------------------

def prepare_params(raw, batch):
    p = {}
    for i in (1, 2, 3, 4):
        p[f"w{i}c"] = _wcat(raw[f"w{i}"])                       # (K*Cout, Cin)

    # Layer-5 weight with Cout padded (3 -> 8) so per-tap row slices are
    # sublane (8) aligned inside the kernel.
    w5 = raw["w5"]                                              # (Cin, cimg, K)
    cin5, cimg, _ = w5.shape
    cpad = ((cimg + 7) // 8) * 8
    w5t = jnp.transpose(w5, (2, 1, 0))                          # (K, cimg, Cin)
    w5p = jnp.zeros((_K, cpad, cin5), jnp.float32).at[:, :cimg, :].set(w5t)
    p["w5c"] = w5p.reshape(_K * cpad, cin5)

    # All BN affine params in ONE packed (sum 2*C, 1) vector: per layer
    # [gamma; beta]; every static offset is a multiple of 8 (free slices).
    gb = []
    for i in (1, 2, 3, 4):
        gb += [raw[f"g{i}"], raw[f"b{i}"]]
    p["gb"] = jnp.concatenate(gb).reshape(-1, 1)

    # Shape-only 0/1 scatter constants (fold stride/padding/batch boundaries).
    strides, pads = (1, 2, 2, 2, 2), (0, 1, 1, 1, 1)
    scat, l_in = [], 1
    for st, pd in zip(strides, pads):
        scat.append(_scatter_np(batch, l_in, st, pd, _K))
        l_in = (l_in - 1) * st - 2 * pd + _K
    p["s1"], p["s2"], p["s3"], p["s4"] = (jnp.asarray(s) for s in scat[:4])

    # Layer-5 scatter fused with the block-diagonal Linear(64->120, no bias):
    #   sw5[k] = S5[k] @ blockdiag_batch(wlin^T)   -> (N*32, N*120)
    wlin = raw["wlin"]                                          # (120, 64)
    wblk = jnp.kron(jnp.eye(batch, dtype=jnp.float32), jnp.transpose(wlin))
    p["sw5"] = jnp.einsum("kio,oj->kij", jnp.asarray(scat[4]), wblk)

    # Conv-5 bias pushed through the Linear: out += bias5[c] * sum_o wlin[j, o].
    wsum = jnp.sum(wlin, axis=1)                                # (120,)
    b5p = jnp.zeros((cpad,), jnp.float32).at[:cimg].set(raw["bias5"])
    p["bias_eff"] = b5p[:, None] * jnp.tile(wsum, batch)[None, :]   # (cpad, N*120)
    return p


def init_raw_params(key, z_dim, channels_img, features_g):
    fg = features_g
    ks = jax.random.split(key, 15)
    chans = (z_dim, fg * 16, fg * 8, fg * 4, fg * 2, channels_img)
    raw = {}
    for i in range(1, 6):
        raw[f"w{i}"] = 0.05 * jax.random.normal(
            ks[3 * i - 3], (chans[i - 1], chans[i], _K), jnp.float32)
        if i < 5:
            raw[f"g{i}"] = 1.0 + 0.1 * jax.random.normal(ks[3 * i - 2],
                                                         (chans[i],), jnp.float32)
            raw[f"b{i}"] = 0.1 * jax.random.normal(ks[3 * i - 1],
                                                   (chans[i],), jnp.float32)
    raw["bias5"] = 0.05 * jax.random.normal(ks[13], (channels_img,), jnp.float32)
    raw["wlin"] = 0.05 * jax.random.normal(ks[14], (120, 64), jnp.float32)
    return raw


# ---------------------------------------------------------------------------
# Forward: one grid-less pallas_call for the whole network
# ---------------------------------------------------------------------------

def gen_forward(x, p, *, channels_img, filtered=False):
    n, zdim = x.shape[0], x.shape[1]
    c1 = p["w1c"].shape[0] // _K
    c2 = p["w2c"].shape[0] // _K
    c3 = p["w3c"].shape[0] // _K
    c4 = p["w4c"].shape[0] // _K
    cpad = p["w5c"].shape[0] // _K
    lout = p["bias_eff"].shape[1] // n            # 120
    cimg = channels_img

    # Static sublane offsets of [gamma; beta] per BN layer in the packed vector.
    offs, off = [], 0
    for c in (c1, c2, c3, c4):
        offs.append(off)
        off += 2 * c
    off1, off2, off3, off4 = offs

    def kernel(x_ref, w1_ref, w2_ref, w3_ref, w4_ref, w5_ref,
               s1_ref, s2_ref, s3_ref, s4_ref, sw5_ref, gb_ref, be_ref, o_ref):
        """Activations are channel-major (C, N*L) f32 tiles, lanes = batch*length."""

        def taps(b, s_ref, cout):
            # 4 INDEPENDENT per-tap scatter matmuls + tree add (overlap on MXU).
            d0 = jnp.dot(b[0 * cout:1 * cout, :], s_ref[0],
                         preferred_element_type=jnp.float32)
            d1 = jnp.dot(b[1 * cout:2 * cout, :], s_ref[1],
                         preferred_element_type=jnp.float32)
            d2 = jnp.dot(b[2 * cout:3 * cout, :], s_ref[2],
                         preferred_element_type=jnp.float32)
            d3 = jnp.dot(b[3 * cout:4 * cout, :], s_ref[3],
                         preferred_element_type=jnp.float32)
            return (d0 + d1) + (d2 + d3)

        def bn_relu(h, goff, c):
            # Train-mode BatchNorm1d, one-pass biased stats (independent reductions).
            inv = 1.0 / float(h.shape[1])
            mean = jnp.sum(h, axis=1, keepdims=True) * inv
            ex2 = jnp.sum(h * h, axis=1, keepdims=True) * inv
            var = ex2 - mean * mean
            g = gb_ref[goff:goff + c, :]
            bet = gb_ref[goff + c:goff + 2 * c, :]
            y = (h - mean) * jax.lax.rsqrt(var + 1e-5) * g + bet
            return jnp.maximum(y, 0.0)

        # Layer 1: NT dot folds the (N, z_dim) -> (z_dim, N) orientation into
        # the MXU op (no wrapper transpose, no in-kernel relayout).
        b1 = jax.lax.dot_general(w1_ref[...], x_ref[...], _NT,
                                 preferred_element_type=jnp.float32)   # (4*c1, N)
        h = bn_relu(taps(b1, s1_ref, c1), off1, c1)                    # (c1, 4N)

        b2 = jnp.dot(w2_ref[...], h, preferred_element_type=jnp.float32)
        h = bn_relu(taps(b2, s2_ref, c2), off2, c2)                    # (c2, 8N)

        b3 = jnp.dot(w3_ref[...], h, preferred_element_type=jnp.float32)
        h = bn_relu(taps(b3, s3_ref, c3), off3, c3)                    # (c3, 16N)

        b4 = jnp.dot(w4_ref[...], h, preferred_element_type=jnp.float32)
        h = bn_relu(taps(b4, s4_ref, c4), off4, c4)                    # (c4, 32N)

        # Layer 5 ConvTranspose1d (+bias) fused with Linear(64->120, no bias):
        # sw5 = scatter @ blockdiag(wlin^T), bias folded into be_ref.
        b5 = jnp.dot(w5_ref[...], h, preferred_element_type=jnp.float32)  # (4*cpad, 32N)
        z = taps(b5, sw5_ref, cpad) + be_ref[...]                         # (cpad, 120N)
        z = jnp.tanh(z[0:cimg, :])
        if filtered:
            z = jnp.abs(z)          # torch.abs folded into the kernel
        for nn in range(n):         # tiny static batch: stores only, no compute
            o_ref[nn, :, :] = z[:, nn * lout:(nn + 1) * lout]

    x2 = x.reshape(n, zdim)         # drop trailing length-1 dim (bitcast, no transpose)

    return pl.pallas_call(
        kernel,
        out_shape=jax.ShapeDtypeStruct((n, cimg, lout), jnp.float32),
        in_specs=[_VMEM] * 13,
        out_specs=_VMEM,
    )(x2, p["w1c"], p["w2c"], p["w3c"], p["w4c"], p["w5c"],
      p["s1"], p["s2"], p["s3"], p["s4"], p["sw5"], p["gb"], p["bias_eff"])


# ---------------------------------------------------------------------------
# Independent pure-JAX reference of the PyTorch module (train-mode BN)
# ---------------------------------------------------------------------------

def _reference_forward(x, raw):
    def convt(h, w, stride, pad):
        n, _, lin = h.shape
        _, cout, k = w.shape
        lfull = (lin - 1) * stride + k
        y = jnp.zeros((n, cout, lfull), jnp.float32)
        for kk in range(k):
            t = jnp.einsum("nci,co->noi", h, w[:, :, kk])
            y = y.at[:, :, kk:kk + stride * (lin - 1) + 1:stride].add(t)
        return y[:, :, pad:lfull - pad] if pad else y

    def bn_relu(h, g, b):
        mean = jnp.mean(h, axis=(0, 2), keepdims=True)
        var = jnp.mean((h - mean) ** 2, axis=(0, 2), keepdims=True)
        y = (h - mean) / jnp.sqrt(var + 1e-5) * g[None, :, None] + b[None, :, None]
        return jnp.maximum(y, 0.0)

    h = bn_relu(convt(x, raw["w1"], 1, 0), raw["g1"], raw["b1"])
    h = bn_relu(convt(h, raw["w2"], 2, 1), raw["g2"], raw["b2"])
    h = bn_relu(convt(h, raw["w3"], 2, 1), raw["g3"], raw["b3"])
    h = bn_relu(convt(h, raw["w4"], 2, 1), raw["g4"], raw["b4"])
    h = convt(h, raw["w5"], 2, 1) + raw["bias5"][None, :, None]
    h = jnp.einsum("nco,jo->ncj", h, raw["wlin"])
    return jnp.tanh(h)


if __name__ == "__main__":
    z_dim, channels_img, features_g, batch = 32, 3, 8, 2

    key = jax.random.PRNGKey(0)
    kx, kp = jax.random.split(key)
    x = jax.random.normal(kx, (batch, z_dim, 1), jnp.float32)

    raw = init_raw_params(kp, z_dim, channels_img, features_g)
    params = prepare_params(raw, batch)           # one-time weight/constant prep

    # TODO(synk): BatchNorm running_mean/var tracking (eval-mode stats) is not
    # implemented; the kernel matches the PyTorch training-mode forward.
    fwd = jax.jit(functools.partial(gen_forward,
                                    channels_img=channels_img, filtered=False))
    out = fwd(x, params)
    jax.block_until_ready(out)

    assert out.shape == (batch, channels_img, 120), out.shape
    assert bool(jnp.all(jnp.isfinite(out)))
    assert bool(jnp.all(jnp.abs(out) <= 1.0 + 1e-6))       # tanh range

    ref = _reference_forward(x, raw)
    np.testing.assert_allclose(np.asarray(out), np.asarray(ref),
                               atol=1e-3, rtol=1e-2)
    print("KERNEL_OK")
</pallas_src>

<mosaic_0001>
module attributes {stable_mosaic.version = 11 : i64} {
  func.func @kernel(%arg0: memref<2x32xf32, #tpu.memory_space<vmem>>, %arg1: memref<512x32xf32, #tpu.memory_space<vmem>>, %arg2: memref<256x128xf32, #tpu.memory_space<vmem>>, %arg3: memref<128x64xf32, #tpu.memory_space<vmem>>, %arg4: memref<64x32xf32, #tpu.memory_space<vmem>>, %arg5: memref<32x16xf32, #tpu.memory_space<vmem>>, %arg6: memref<4x2x8xf32, #tpu.memory_space<vmem>>, %arg7: memref<4x8x16xf32, #tpu.memory_space<vmem>>, %arg8: memref<4x16x32xf32, #tpu.memory_space<vmem>>, %arg9: memref<4x32x64xf32, #tpu.memory_space<vmem>>, %arg10: memref<4x64x240xf32, #tpu.memory_space<vmem>>, %arg11: memref<480x1xf32, #tpu.memory_space<vmem>>, %arg12: memref<8x240xf32, #tpu.memory_space<vmem>>, %arg13: memref<2x3x120xf32, #tpu.memory_space<vmem>>) attributes {dimension_semantics = [], scalar_prefetch = 0 : i64, scratch_operands = 0 : i64, tpu.core_type = #tpu.core_type<tc>} {
    %c0 = arith.constant 0 : index
    %c0_0 = arith.constant 0 : index
    %0 = vector.load %arg1[%c0, %c0_0] : memref<512x32xf32, #tpu.memory_space<vmem>>, vector<512x32xf32>
    %c0_1 = arith.constant 0 : index
    %c0_2 = arith.constant 0 : index
    %1 = vector.load %arg0[%c0_1, %c0_2] : memref<2x32xf32, #tpu.memory_space<vmem>>, vector<2x32xf32>
    %cst = arith.constant dense<0.000000e+00> : vector<512x2xf32>
    %2 = tpu.matmul %0, %1, %cst {dimension_numbers = #tpu.dot_dimension_numbers<[1], [1], [0], [0], [0, 0, 1, 0], [], []>} : vector<512x32xf32>, vector<2x32xf32>, vector<512x2xf32> -> vector<512x2xf32>
    %3 = vector.extract_strided_slice %2 {offsets = [0, 0], sizes = [128, 2], strides = [1, 1]} : vector<512x2xf32> to vector<128x2xf32>
    %c0_3 = arith.constant 0 : index
    %c0_4 = arith.constant 0 : index
    %c0_5 = arith.constant 0 : index
    %4 = vector.load %arg6[%c0_3, %c0_4, %c0_5] : memref<4x2x8xf32, #tpu.memory_space<vmem>>, vector<1x2x8xf32>
    %5 = vector.shape_cast %4 : vector<1x2x8xf32> to vector<2x8xf32>
    %cst_6 = arith.constant dense<0.000000e+00> : vector<128x8xf32>
    %6 = tpu.matmul %3, %5, %cst_6 {dimension_numbers = #tpu.dot_dimension_numbers<[1], [0], [0], [1], [0, 0, 1, 1], [], []>} : vector<128x2xf32>, vector<2x8xf32>, vector<128x8xf32> -> vector<128x8xf32>
    %7 = vector.extract_strided_slice %2 {offsets = [128, 0], sizes = [128, 2], strides = [1, 1]} : vector<512x2xf32> to vector<128x2xf32>
    %c1 = arith.constant 1 : index
    %c0_7 = arith.constant 0 : index
    %c0_8 = arith.constant 0 : index
    %8 = vector.load %arg6[%c1, %c0_7, %c0_8] : memref<4x2x8xf32, #tpu.memory_space<vmem>>, vector<1x2x8xf32>
    %9 = vector.shape_cast %8 : vector<1x2x8xf32> to vector<2x8xf32>
    %cst_9 = arith.constant dense<0.000000e+00> : vector<128x8xf32>
    %10 = tpu.matmul %7, %9, %cst_9 {dimension_numbers = #tpu.dot_dimension_numbers<[1], [0], [0], [1], [0, 0, 1, 1], [], []>} : vector<128x2xf32>, vector<2x8xf32>, vector<128x8xf32> -> vector<128x8xf32>
    %11 = vector.extract_strided_slice %2 {offsets = [256, 0], sizes = [128, 2], strides = [1, 1]} : vector<512x2xf32> to vector<128x2xf32>
    %c2 = arith.constant 2 : index
    %c0_10 = arith.constant 0 : index
    %c0_11 = arith.constant 0 : index
    %12 = vector.load %arg6[%c2, %c0_10, %c0_11] : memref<4x2x8xf32, #tpu.memory_space<vmem>>, vector<1x2x8xf32>
    %13 = vector.shape_cast %12 : vector<1x2x8xf32> to vector<2x8xf32>
    %cst_12 = arith.constant dense<0.000000e+00> : vector<128x8xf32>
    %14 = tpu.matmul %11, %13, %cst_12 {dimension_numbers = #tpu.dot_dimension_numbers<[1], [0], [0], [1], [0, 0, 1, 1], [], []>} : vector<128x2xf32>, vector<2x8xf32>, vector<128x8xf32> -> vector<128x8xf32>
    %15 = vector.extract_strided_slice %2 {offsets = [384, 0], sizes = [128, 2], strides = [1, 1]} : vector<512x2xf32> to vector<128x2xf32>
    %c3 = arith.constant 3 : index
    %c0_13 = arith.constant 0 : index
    %c0_14 = arith.constant 0 : index
    %16 = vector.load %arg6[%c3, %c0_13, %c0_14] : memref<4x2x8xf32, #tpu.memory_space<vmem>>, vector<1x2x8xf32>
    %17 = vector.shape_cast %16 : vector<1x2x8xf32> to vector<2x8xf32>
    %cst_15 = arith.constant dense<0.000000e+00> : vector<128x8xf32>
    %18 = tpu.matmul %15, %17, %cst_15 {dimension_numbers = #tpu.dot_dimension_numbers<[1], [0], [0], [1], [0, 0, 1, 1], [], []>} : vector<128x2xf32>, vector<2x8xf32>, vector<128x8xf32> -> vector<128x8xf32>
    %19 = arith.addf %6, %10 : vector<128x8xf32>
    %20 = arith.addf %14, %18 : vector<128x8xf32>
    %21 = arith.addf %19, %20 : vector<128x8xf32>
    %cst_16 = arith.constant dense<0.000000e+00> : vector<128xf32>
    %22 = vector.multi_reduction <add>, %21, %cst_16 [1] : vector<128x8xf32> to vector<128xf32>
    %23 = vector.shape_cast %22 : vector<128xf32> to vector<128x1xf32>
    %cst_17 = arith.constant 1.250000e-01 : f32
    %24 = vector.broadcast %cst_17 : f32 to vector<128x1xf32>
    %25 = arith.mulf %23, %24 : vector<128x1xf32>
    %26 = arith.mulf %21, %21 : vector<128x8xf32>
    %cst_18 = arith.constant dense<0.000000e+00> : vector<128xf32>
    %27 = vector.multi_reduction <add>, %26, %cst_18 [1] : vector<128x8xf32> to vector<128xf32>
    %28 = vector.shape_cast %27 : vector<128xf32> to vector<128x1xf32>
    %cst_19 = arith.constant 1.250000e-01 : f32
    %29 = vector.broadcast %cst_19 : f32 to vector<128x1xf32>
    %30 = arith.mulf %28, %29 : vector<128x1xf32>
    %31 = arith.mulf %25, %25 : vector<128x1xf32>
    %32 = arith.subf %30, %31 : vector<128x1xf32>
    %c0_20 = arith.constant 0 : index
    %c0_21 = arith.constant 0 : index
    %33 = vector.load %arg11[%c0_20, %c0_21] : memref<480x1xf32, #tpu.memory_space<vmem>>, vector<128x1xf32>
    %c128 = arith.constant 128 : index
    %c0_22 = arith.constant 0 : index
    %34 = vector.load %arg11[%c128, %c0_22] : memref<480x1xf32, #tpu.memory_space<vmem>>, vector<128x1xf32>
    %35 = vector.broadcast %25 : vector<128x1xf32> to vector<128x8xf32>
    %36 = arith.subf %21, %35 : vector<128x8xf32>
    %cst_23 = arith.constant 9.99999974E-6 : f32
    %37 = vector.broadcast %cst_23 : f32 to vector<128x1xf32>
    %38 = arith.addf %32, %37 : vector<128x1xf32>
    %39 = math.rsqrt %38 : vector<128x1xf32>
    %40 = vector.broadcast %39 : vector<128x1xf32> to vector<128x8xf32>
    %41 = arith.mulf %36, %40 : vector<128x8xf32>
    %42 = vector.broadcast %33 : vector<128x1xf32> to vector<128x8xf32>
    %43 = arith.mulf %41, %42 : vector<128x8xf32>
    %44 = vector.broadcast %34 : vector<128x1xf32> to vector<128x8xf32>
    %45 = arith.addf %43, %44 : vector<128x8xf32>
    %cst_24 = arith.constant 0.000000e+00 : f32
    %46 = vector.broadcast %cst_24 : f32 to vector<128x8xf32>
    %47 = arith.maximumf %45, %46 : vector<128x8xf32>
    %c0_25 = arith.constant 0 : index
    %c0_26 = arith.constant 0 : index
    %48 = vector.load %arg2[%c0_25, %c0_26] : memref<256x128xf32, #tpu.memory_space<vmem>>, vector<256x128xf32>
    %cst_27 = arith.constant dense<0.000000e+00> : vector<256x8xf32>
    %49 = tpu.matmul %48, %47, %cst_27 {dimension_numbers = #tpu.dot_dimension_numbers<[1], [0], [0], [1], [0, 0, 1, 1], [], []>} : vector<256x128xf32>, vector<128x8xf32>, vector<256x8xf32> -> vector<256x8xf32>
    %50 = vector.extract_strided_slice %49 {offsets = [0, 0], sizes = [64, 8], strides = [1, 1]} : vector<256x8xf32> to vector<64x8xf32>
    %c0_28 = arith.constant 0 : index
    %c0_29 = arith.constant 0 : index
    %c0_30 = arith.constant 0 : index
    %51 = vector.load %arg7[%c0_28, %c0_29, %c0_30] : memref<4x8x16xf32, #tpu.memory_space<vmem>>, vector<1x8x16xf32>
    %52 = vector.shape_cast %51 : vector<1x8x16xf32> to vector<8x16xf32>
    %cst_31 = arith.constant dense<0.000000e+00> : vector<64x16xf32>
    %53 = tpu.matmul %50, %52, %cst_31 {dimension_numbers = #tpu.dot_dimension_numbers<[1], [0], [0], [1], [0, 0, 1, 1], [], []>} : vector<64x8xf32>, vector<8x16xf32>, vector<64x16xf32> -> vector<64x16xf32>
    %54 = vector.extract_strided_slice %49 {offsets = [64, 0], sizes = [64, 8], strides = [1, 1]} : vector<256x8xf32> to vector<64x8xf32>
    %c1_32 = arith.constant 1 : index
    %c0_33 = arith.constant 0 : index
    %c0_34 = arith.constant 0 : index
    %55 = vector.load %arg7[%c1_32, %c0_33, %c0_34] : memref<4x8x16xf32, #tpu.memory_space<vmem>>, vector<1x8x16xf32>
    %56 = vector.shape_cast %55 : vector<1x8x16xf32> to vector<8x16xf32>
    %cst_35 = arith.constant dense<0.000000e+00> : vector<64x16xf32>
    %57 = tpu.matmul %54, %56, %cst_35 {dimension_numbers = #tpu.dot_dimension_numbers<[1], [0], [0], [1], [0, 0, 1, 1], [], []>} : vector<64x8xf32>, vector<8x16xf32>, vector<64x16xf32> -> vector<64x16xf32>
    %58 = vector.extract_strided_slice %49 {offsets = [128, 0], sizes = [64, 8], strides = [1, 1]} : vector<256x8xf32> to vector<64x8xf32>
    %c2_36 = arith.constant 2 : index
    %c0_37 = arith.constant 0 : index
    %c0_38 = arith.constant 0 : index
    %59 = vector.load %arg7[%c2_36, %c0_37, %c0_38] : memref<4x8x16xf32, #tpu.memory_space<vmem>>, vector<1x8x16xf32>
    %60 = vector.shape_cast %59 : vector<1x8x16xf32> to vector<8x16xf32>
    %cst_39 = arith.constant dense<0.000000e+00> : vector<64x16xf32>
    %61 = tpu.matmul %58, %60, %cst_39 {dimension_numbers = #tpu.dot_dimension_numbers<[1], [0], [0], [1], [0, 0, 1, 1], [], []>} : vector<64x8xf32>, vector<8x16xf32>, vector<64x16xf32> -> vector<64x16xf32>
    %62 = vector.extract_strided_slice %49 {offsets = [192, 0], sizes = [64, 8], strides = [1, 1]} : vector<256x8xf32> to vector<64x8xf32>
    %c3_40 = arith.constant 3 : index
    %c0_41 = arith.constant 0 : index
    %c0_42 = arith.constant 0 : index
    %63 = vector.load %arg7[%c3_40, %c0_41, %c0_42] : memref<4x8x16xf32, #tpu.memory_space<vmem>>, vector<1x8x16xf32>
    %64 = vector.shape_cast %63 : vector<1x8x16xf32> to vector<8x16xf32>
    %cst_43 = arith.constant dense<0.000000e+00> : vector<64x16xf32>
    %65 = tpu.matmul %62, %64, %cst_43 {dimension_numbers = #tpu.dot_dimension_numbers<[1], [0], [0], [1], [0, 0, 1, 1], [], []>} : vector<64x8xf32>, vector<8x16xf32>, vector<64x16xf32> -> vector<64x16xf32>
    %66 = arith.addf %53, %57 : vector<64x16xf32>
    %67 = arith.addf %61, %65 : vector<64x16xf32>
    %68 = arith.addf %66, %67 : vector<64x16xf32>
    %cst_44 = arith.constant dense<0.000000e+00> : vector<64xf32>
    %69 = vector.multi_reduction <add>, %68, %cst_44 [1] : vector<64x16xf32> to vector<64xf32>
    %70 = vector.shape_cast %69 : vector<64xf32> to vector<64x1xf32>
    %cst_45 = arith.constant 6.250000e-02 : f32
    %71 = vector.broadcast %cst_45 : f32 to vector<64x1xf32>
    %72 = arith.mulf %70, %71 : vector<64x1xf32>
    %73 = arith.mulf %68, %68 : vector<64x16xf32>
    %cst_46 = arith.constant dense<0.000000e+00> : vector<64xf32>
    %74 = vector.multi_reduction <add>, %73, %cst_46 [1] : vector<64x16xf32> to vector<64xf32>
    %75 = vector.shape_cast %74 : vector<64xf32> to vector<64x1xf32>
    %cst_47 = arith.constant 6.250000e-02 : f32
    %76 = vector.broadcast %cst_47 : f32 to vector<64x1xf32>
    %77 = arith.mulf %75, %76 : vector<64x1xf32>
    %78 = arith.mulf %72, %72 : vector<64x1xf32>
    %79 = arith.subf %77, %78 : vector<64x1xf32>
    %c256 = arith.constant 256 : index
    %c0_48 = arith.constant 0 : index
    %80 = vector.load %arg11[%c256, %c0_48] : memref<480x1xf32, #tpu.memory_space<vmem>>, vector<64x1xf32>
    %c320 = arith.constant 320 : index
    %c0_49 = arith.constant 0 : index
    %81 = vector.load %arg11[%c320, %c0_49] : memref<480x1xf32, #tpu.memory_space<vmem>>, vector<64x1xf32>
    %82 = vector.broadcast %72 : vector<64x1xf32> to vector<64x16xf32>
    %83 = arith.subf %68, %82 : vector<64x16xf32>
    %cst_50 = arith.constant 9.99999974E-6 : f32
    %84 = vector.broadcast %cst_50 : f32 to vector<64x1xf32>
    %85 = arith.addf %79, %84 : vector<64x1xf32>
    %86 = math.rsqrt %85 : vector<64x1xf32>
    %87 = vector.broadcast %86 : vector<64x1xf32> to vector<64x16xf32>
    %88 = arith.mulf %83, %87 : vector<64x16xf32>
    %89 = vector.broadcast %80 : vector<64x1xf32> to vector<64x16xf32>
    %90 = arith.mulf %88, %89 : vector<64x16xf32>
    %91 = vector.broadcast %81 : vector<64x1xf32> to vector<64x16xf32>
    %92 = arith.addf %90, %91 : vector<64x16xf32>
    %cst_51 = arith.constant 0.000000e+00 : f32
    %93 = vector.broadcast %cst_51 : f32 to vector<64x16xf32>
    %94 = arith.maximumf %92, %93 : vector<64x16xf32>
    %c0_52 = arith.constant 0 : index
    %c0_53 = arith.constant 0 : index
    %95 = vector.load %arg3[%c0_52, %c0_53] : memref<128x64xf32, #tpu.memory_space<vmem>>, vector<128x64xf32>
    %cst_54 = arith.constant dense<0.000000e+00> : vector<128x16xf32>
    %96 = tpu.matmul %95, %94, %cst_54 {dimension_numbers = #tpu.dot_dimension_numbers<[1], [0], [0], [1], [0, 0, 1, 1], [], []>} : vector<128x64xf32>, vector<64x16xf32>, vector<128x16xf32> -> vector<128x16xf32>
    %97 = vector.extract_strided_slice %96 {offsets = [0, 0], sizes = [32, 16], strides = [1, 1]} : vector<128x16xf32> to vector<32x16xf32>
    %c0_55 = arith.constant 0 : index
    %c0_56 = arith.constant 0 : index
    %c0_57 = arith.constant 0 : index
    %98 = vector.load %arg8[%c0_55, %c0_56, %c0_57] : memref<4x16x32xf32, #tpu.memory_space<vmem>>, vector<1x16x32xf32>
    %99 = vector.shape_cast %98 : vector<1x16x32xf32> to vector<16x32xf32>
    %cst_58 = arith.constant dense<0.000000e+00> : vector<32x32xf32>
    %100 = tpu.matmul %97, %99, %cst_58 {dimension_numbers = #tpu.dot_dimension_numbers<[1], [0], [0], [1], [0, 0, 1, 1], [], []>} : vector<32x16xf32>, vector<16x32xf32>, vector<32x32xf32> -> vector<32x32xf32>
    %101 = vector.extract_strided_slice %96 {offsets = [32, 0], sizes = [32, 16], strides = [1, 1]} : vector<128x16xf32> to vector<32x16xf32>
    %c1_59 = arith.constant 1 : index
    %c0_60 = arith.constant 0 : index
    %c0_61 = arith.constant 0 : index
    %102 = vector.load %arg8[%c1_59, %c0_60, %c0_61] : memref<4x16x32xf32, #tpu.memory_space<vmem>>, vector<1x16x32xf32>
    %103 = vector.shape_cast %102 : vector<1x16x32xf32> to vector<16x32xf32>
    %cst_62 = arith.constant dense<0.000000e+00> : vector<32x32xf32>
    %104 = tpu.matmul %101, %103, %cst_62 {dimension_numbers = #tpu.dot_dimension_numbers<[1], [0], [0], [1], [0, 0, 1, 1], [], []>} : vector<32x16xf32>, vector<16x32xf32>, vector<32x32xf32> -> vector<32x32xf32>
    %105 = vector.extract_strided_slice %96 {offsets = [64, 0], sizes = [32, 16], strides = [1, 1]} : vector<128x16xf32> to vector<32x16xf32>
    %c2_63 = arith.constant 2 : index
    %c0_64 = arith.constant 0 : index
    %c0_65 = arith.constant 0 : index
    %106 = vector.load %arg8[%c2_63, %c0_64, %c0_65] : memref<4x16x32xf32, #tpu.memory_space<vmem>>, vector<1x16x32xf32>
    %107 = vector.shape_cast %106 : vector<1x16x32xf32> to vector<16x32xf32>
    %cst_66 = arith.constant dense<0.000000e+00> : vector<32x32xf32>
    %108 = tpu.matmul %105, %107, %cst_66 {dimension_numbers = #tpu.dot_dimension_numbers<[1], [0], [0], [1], [0, 0, 1, 1], [], []>} : vector<32x16xf32>, vector<16x32xf32>, vector<32x32xf32> -> vector<32x32xf32>
    %109 = vector.extract_strided_slice %96 {offsets = [96, 0], sizes = [32, 16], strides = [1, 1]} : vector<128x16xf32> to vector<32x16xf32>
    %c3_67 = arith.constant 3 : index
    %c0_68 = arith.constant 0 : index
    %c0_69 = arith.constant 0 : index
    %110 = vector.load %arg8[%c3_67, %c0_68, %c0_69] : memref<4x16x32xf32, #tpu.memory_space<vmem>>, vector<1x16x32xf32>
    %111 = vector.shape_cast %110 : vector<1x16x32xf32> to vector<16x32xf32>
    %cst_70 = arith.constant dense<0.000000e+00> : vector<32x32xf32>
    %112 = tpu.matmul %109, %111, %cst_70 {dimension_numbers = #tpu.dot_dimension_numbers<[1], [0], [0], [1], [0, 0, 1, 1], [], []>} : vector<32x16xf32>, vector<16x32xf32>, vector<32x32xf32> -> vector<32x32xf32>
    %113 = arith.addf %100, %104 : vector<32x32xf32>
    %114 = arith.addf %108, %112 : vector<32x32xf32>
    %115 = arith.addf %113, %114 : vector<32x32xf32>
    %cst_71 = arith.constant dense<0.000000e+00> : vector<32xf32>
    %116 = vector.multi_reduction <add>, %115, %cst_71 [1] : vector<32x32xf32> to vector<32xf32>
    %117 = vector.shape_cast %116 : vector<32xf32> to vector<32x1xf32>
    %cst_72 = arith.constant 3.125000e-02 : f32
    %118 = vector.broadcast %cst_72 : f32 to vector<32x1xf32>
    %119 = arith.mulf %117, %118 : vector<32x1xf32>
    %120 = arith.mulf %115, %115 : vector<32x32xf32>
    %cst_73 = arith.constant dense<0.000000e+00> : vector<32xf32>
    %121 = vector.multi_reduction <add>, %120, %cst_73 [1] : vector<32x32xf32> to vector<32xf32>
    %122 = vector.shape_cast %121 : vector<32xf32> to vector<32x1xf32>
    %cst_74 = arith.constant 3.125000e-02 : f32
    %123 = vector.broadcast %cst_74 : f32 to vector<32x1xf32>
    %124 = arith.mulf %122, %123 : vector<32x1xf32>
    %125 = arith.mulf %119, %119 : vector<32x1xf32>
    %126 = arith.subf %124, %125 : vector<32x1xf32>
    %c384 = arith.constant 384 : index
    %c0_75 = arith.constant 0 : index
    %127 = vector.load %arg11[%c384, %c0_75] : memref<480x1xf32, #tpu.memory_space<vmem>>, vector<32x1xf32>
    %c416 = arith.constant 416 : index
    %c0_76 = arith.constant 0 : index
    %128 = vector.load %arg11[%c416, %c0_76] : memref<480x1xf32, #tpu.memory_space<vmem>>, vector<32x1xf32>
    %129 = vector.broadcast %119 : vector<32x1xf32> to vector<32x32xf32>
    %130 = arith.subf %115, %129 : vector<32x32xf32>
    %cst_77 = arith.constant 9.99999974E-6 : f32
    %131 = vector.broadcast %cst_77 : f32 to vector<32x1xf32>
    %132 = arith.addf %126, %131 : vector<32x1xf32>
    %133 = math.rsqrt %132 : vector<32x1xf32>
    %134 = vector.broadcast %133 : vector<32x1xf32> to vector<32x32xf32>
    %135 = arith.mulf %130, %134 : vector<32x32xf32>
    %136 = vector.broadcast %127 : vector<32x1xf32> to vector<32x32xf32>
    %137 = arith.mulf %135, %136 : vector<32x32xf32>
    %138 = vector.broadcast %128 : vector<32x1xf32> to vector<32x32xf32>
    %139 = arith.addf %137, %138 : vector<32x32xf32>
    %cst_78 = arith.constant 0.000000e+00 : f32
    %140 = vector.broadcast %cst_78 : f32 to vector<32x32xf32>
    %141 = arith.maximumf %139, %140 : vector<32x32xf32>
    %c0_79 = arith.constant 0 : index
    %c0_80 = arith.constant 0 : index
    %142 = vector.load %arg4[%c0_79, %c0_80] : memref<64x32xf32, #tpu.memory_space<vmem>>, vector<64x32xf32>
    %cst_81 = arith.constant dense<0.000000e+00> : vector<64x32xf32>
    %143 = tpu.matmul %142, %141, %cst_81 {dimension_numbers = #tpu.dot_dimension_numbers<[1], [0], [0], [1], [0, 0, 1, 1], [], []>} : vector<64x32xf32>, vector<32x32xf32>, vector<64x32xf32> -> vector<64x32xf32>
    %144 = vector.extract_strided_slice %143 {offsets = [0, 0], sizes = [16, 32], strides = [1, 1]} : vector<64x32xf32> to vector<16x32xf32>
    %c0_82 = arith.constant 0 : index
    %c0_83 = arith.constant 0 : index
    %c0_84 = arith.constant 0 : index
    %145 = vector.load %arg9[%c0_82, %c0_83, %c0_84] : memref<4x32x64xf32, #tpu.memory_space<vmem>>, vector<1x32x64xf32>
    %146 = vector.shape_cast %145 : vector<1x32x64xf32> to vector<32x64xf32>
    %cst_85 = arith.constant dense<0.000000e+00> : vector<16x64xf32>
    %147 = tpu.matmul %144, %146, %cst_85 {dimension_numbers = #tpu.dot_dimension_numbers<[1], [0], [0], [1], [0, 0, 1, 1], [], []>} : vector<16x32xf32>, vector<32x64xf32>, vector<16x64xf32> -> vector<16x64xf32>
    %148 = vector.extract_strided_slice %143 {offsets = [16, 0], sizes = [16, 32], strides = [1, 1]} : vector<64x32xf32> to vector<16x32xf32>
    %c1_86 = arith.constant 1 : index
    %c0_87 = arith.constant 0 : index
    %c0_88 = arith.constant 0 : index
    %149 = vector.load %arg9[%c1_86, %c0_87, %c0_88] : memref<4x32x64xf32, #tpu.memory_space<vmem>>, vector<1x32x64xf32>
    %150 = vector.shape_cast %149 : vector<1x32x64xf32> to vector<32x64xf32>
    %cst_89 = arith.constant dense<0.000000e+00> : vector<16x64xf32>
    %151 = tpu.matmul %148, %150, %cst_89 {dimension_numbers = #tpu.dot_dimension_numbers<[1], [0], [0], [1], [0, 0, 1, 1], [], []>} : vector<16x32xf32>, vector<32x64xf32>, vector<16x64xf32> -> vector<16x64xf32>
    %152 = vector.extract_strided_slice %143 {offsets = [32, 0], sizes = [16, 32], strides = [1, 1]} : vector<64x32xf32> to vector<16x32xf32>
    %c2_90 = arith.constant 2 : index
    %c0_91 = arith.constant 0 : index
    %c0_92 = arith.constant 0 : index
    %153 = vector.load %arg9[%c2_90, %c0_91, %c0_92] : memref<4x32x64xf32, #tpu.memory_space<vmem>>, vector<1x32x64xf32>
    %154 = vector.shape_cast %153 : vector<1x32x64xf32> to vector<32x64xf32>
    %cst_93 = arith.constant dense<0.000000e+00> : vector<16x64xf32>
    %155 = tpu.matmul %152, %154, %cst_93 {dimension_numbers = #tpu.dot_dimension_numbers<[1], [0], [0], [1], [0, 0, 1, 1], [], []>} : vector<16x32xf32>, vector<32x64xf32>, vector<16x64xf32> -> vector<16x64xf32>
    %156 = vector.extract_strided_slice %143 {offsets = [48, 0], sizes = [16, 32], strides = [1, 1]} : vector<64x32xf32> to vector<16x32xf32>
    %c3_94 = arith.constant 3 : index
    %c0_95 = arith.constant 0 : index
    %c0_96 = arith.constant 0 : index
    %157 = vector.load %arg9[%c3_94, %c0_95, %c0_96] : memref<4x32x64xf32, #tpu.memory_space<vmem>>, vector<1x32x64xf32>
    %158 = vector.shape_cast %157 : vector<1x32x64xf32> to vector<32x64xf32>
    %cst_97 = arith.constant dense<0.000000e+00> : vector<16x64xf32>
    %159 = tpu.matmul %156, %158, %cst_97 {dimension_numbers = #tpu.dot_dimension_numbers<[1], [0], [0], [1], [0, 0, 1, 1], [], []>} : vector<16x32xf32>, vector<32x64xf32>, vector<16x64xf32> -> vector<16x64xf32>
    %160 = arith.addf %147, %151 : vector<16x64xf32>
    %161 = arith.addf %155, %159 : vector<16x64xf32>
    %162 = arith.addf %160, %161 : vector<16x64xf32>
    %cst_98 = arith.constant dense<0.000000e+00> : vector<16xf32>
    %163 = vector.multi_reduction <add>, %162, %cst_98 [1] : vector<16x64xf32> to vector<16xf32>
    %164 = vector.shape_cast %163 : vector<16xf32> to vector<16x1xf32>
    %cst_99 = arith.constant 1.562500e-02 : f32
    %165 = vector.broadcast %cst_99 : f32 to vector<16x1xf32>
    %166 = arith.mulf %164, %165 : vector<16x1xf32>
    %167 = arith.mulf %162, %162 : vector<16x64xf32>
    %cst_100 = arith.constant dense<0.000000e+00> : vector<16xf32>
    %168 = vector.multi_reduction <add>, %167, %cst_100 [1] : vector<16x64xf32> to vector<16xf32>
    %169 = vector.shape_cast %168 : vector<16xf32> to vector<16x1xf32>
    %cst_101 = arith.constant 1.562500e-02 : f32
    %170 = vector.broadcast %cst_101 : f32 to vector<16x1xf32>
    %171 = arith.mulf %169, %170 : vector<16x1xf32>
    %172 = arith.mulf %166, %166 : vector<16x1xf32>
    %173 = arith.subf %171, %172 : vector<16x1xf32>
    %c448 = arith.constant 448 : index
    %c0_102 = arith.constant 0 : index
    %174 = vector.load %arg11[%c448, %c0_102] : memref<480x1xf32, #tpu.memory_space<vmem>>, vector<16x1xf32>
    %c464 = arith.constant 464 : index
    %c0_103 = arith.constant 0 : index
    %175 = vector.load %arg11[%c464, %c0_103] : memref<480x1xf32, #tpu.memory_space<vmem>>, vector<16x1xf32>
    %176 = vector.broadcast %166 : vector<16x1xf32> to vector<16x64xf32>
    %177 = arith.subf %162, %176 : vector<16x64xf32>
    %cst_104 = arith.constant 9.99999974E-6 : f32
    %178 = vector.broadcast %cst_104 : f32 to vector<16x1xf32>
    %179 = arith.addf %173, %178 : vector<16x1xf32>
    %180 = math.rsqrt %179 : vector<16x1xf32>
    %181 = vector.broadcast %180 : vector<16x1xf32> to vector<16x64xf32>
    %182 = arith.mulf %177, %181 : vector<16x64xf32>
    %183 = vector.broadcast %174 : vector<16x1xf32> to vector<16x64xf32>
    %184 = arith.mulf %182, %183 : vector<16x64xf32>
    %185 = vector.broadcast %175 : vector<16x1xf32> to vector<16x64xf32>
    %186 = arith.addf %184, %185 : vector<16x64xf32>
    %cst_105 = arith.constant 0.000000e+00 : f32
    %187 = vector.broadcast %cst_105 : f32 to vector<16x64xf32>
    %188 = arith.maximumf %186, %187 : vector<16x64xf32>
    %c0_106 = arith.constant 0 : index
    %c0_107 = arith.constant 0 : index
    %189 = vector.load %arg5[%c0_106, %c0_107] : memref<32x16xf32, #tpu.memory_space<vmem>>, vector<32x16xf32>
    %cst_108 = arith.constant dense<0.000000e+00> : vector<32x64xf32>
    %190 = tpu.matmul %189, %188, %cst_108 {dimension_numbers = #tpu.dot_dimension_numbers<[1], [0], [0], [1], [0, 0, 1, 1], [], []>} : vector<32x16xf32>, vector<16x64xf32>, vector<32x64xf32> -> vector<32x64xf32>
    %191 = vector.extract_strided_slice %190 {offsets = [0, 0], sizes = [8, 64], strides = [1, 1]} : vector<32x64xf32> to vector<8x64xf32>
    %c0_109 = arith.constant 0 : index
    %c0_110 = arith.constant 0 : index
    %c0_111 = arith.constant 0 : index
    %192 = vector.load %arg10[%c0_109, %c0_110, %c0_111] : memref<4x64x240xf32, #tpu.memory_space<vmem>>, vector<1x64x240xf32>
    %193 = vector.shape_cast %192 : vector<1x64x240xf32> to vector<64x240xf32>
    %cst_112 = arith.constant dense<0.000000e+00> : vector<8x240xf32>
    %194 = tpu.matmul %191, %193, %cst_112 {dimension_numbers = #tpu.dot_dimension_numbers<[1], [0], [0], [1], [0, 0, 1, 1], [], []>} : vector<8x64xf32>, vector<64x240xf32>, vector<8x240xf32> -> vector<8x240xf32>
    %195 = vector.extract_strided_slice %190 {offsets = [8, 0], sizes = [8, 64], strides = [1, 1]} : vector<32x64xf32> to vector<8x64xf32>
    %c1_113 = arith.constant 1 : index
    %c0_114 = arith.constant 0 : index
    %c0_115 = arith.constant 0 : index
    %196 = vector.load %arg10[%c1_113, %c0_114, %c0_115] : memref<4x64x240xf32, #tpu.memory_space<vmem>>, vector<1x64x240xf32>
    %197 = vector.shape_cast %196 : vector<1x64x240xf32> to vector<64x240xf32>
    %cst_116 = arith.constant dense<0.000000e+00> : vector<8x240xf32>
    %198 = tpu.matmul %195, %197, %cst_116 {dimension_numbers = #tpu.dot_dimension_numbers<[1], [0], [0], [1], [0, 0, 1, 1], [], []>} : vector<8x64xf32>, vector<64x240xf32>, vector<8x240xf32> -> vector<8x240xf32>
    %199 = vector.extract_strided_slice %190 {offsets = [16, 0], sizes = [8, 64], strides = [1, 1]} : vector<32x64xf32> to vector<8x64xf32>
    %c2_117 = arith.constant 2 : index
    %c0_118 = arith.constant 0 : index
    %c0_119 = arith.constant 0 : index
    %200 = vector.load %arg10[%c2_117, %c0_118, %c0_119] : memref<4x64x240xf32, #tpu.memory_space<vmem>>, vector<1x64x240xf32>
    %201 = vector.shape_cast %200 : vector<1x64x240xf32> to vector<64x240xf32>
    %cst_120 = arith.constant dense<0.000000e+00> : vector<8x240xf32>
    %202 = tpu.matmul %199, %201, %cst_120 {dimension_numbers = #tpu.dot_dimension_numbers<[1], [0], [0], [1], [0, 0, 1, 1], [], []>} : vector<8x64xf32>, vector<64x240xf32>, vector<8x240xf32> -> vector<8x240xf32>
    %203 = vector.extract_strided_slice %190 {offsets = [24, 0], sizes = [8, 64], strides = [1, 1]} : vector<32x64xf32> to vector<8x64xf32>
    %c3_121 = arith.constant 3 : index
    %c0_122 = arith.constant 0 : index
    %c0_123 = arith.constant 0 : index
    %204 = vector.load %arg10[%c3_121, %c0_122, %c0_123] : memref<4x64x240xf32, #tpu.memory_space<vmem>>, vector<1x64x240xf32>
    %205 = vector.shape_cast %204 : vector<1x64x240xf32> to vector<64x240xf32>
    %cst_124 = arith.constant dense<0.000000e+00> : vector<8x240xf32>
    %206 = tpu.matmul %203, %205, %cst_124 {dimension_numbers = #tpu.dot_dimension_numbers<[1], [0], [0], [1], [0, 0, 1, 1], [], []>} : vector<8x64xf32>, vector<64x240xf32>, vector<8x240xf32> -> vector<8x240xf32>
    %207 = arith.addf %194, %198 : vector<8x240xf32>
    %208 = arith.addf %202, %206 : vector<8x240xf32>
    %209 = arith.addf %207, %208 : vector<8x240xf32>
    %c0_125 = arith.constant 0 : index
    %c0_126 = arith.constant 0 : index
    %210 = vector.load %arg12[%c0_125, %c0_126] : memref<8x240xf32, #tpu.memory_space<vmem>>, vector<8x240xf32>
    %211 = arith.addf %209, %210 : vector<8x240xf32>
    %212 = vector.extract_strided_slice %211 {offsets = [0, 0], sizes = [3, 240], strides = [1, 1]} : vector<8x240xf32> to vector<3x240xf32>
    %213 = math.tanh %212 : vector<3x240xf32>
    %214 = vector.extract_strided_slice %213 {offsets = [0, 0], sizes = [3, 120], strides = [1, 1]} : vector<3x240xf32> to vector<3x120xf32>
    %c0_127 = arith.constant 0 : index
    %c0_128 = arith.constant 0 : index
    %c0_129 = arith.constant 0 : index
    %215 = vector.load %arg13[%c0_127, %c0_128, %c0_129] : memref<2x3x120xf32, #tpu.memory_space<vmem>>, vector<1x3x120xf32>
    %216 = vector.shape_cast %215 : vector<1x3x120xf32> to vector<3x120xf32>
    %217 = vector.shape_cast %214 : vector<3x120xf32> to vector<1x3x120xf32>
    tpu.vector_store %arg13[%c0_127, %c0_128, %c0_129], %217 {strides = array<i32>} : memref<2x3x120xf32, #tpu.memory_space<vmem>>, vector<1x3x120xf32>,
    %218 = vector.extract_strided_slice %213 {offsets = [0, 120], sizes = [3, 120], strides = [1, 1]} : vector<3x240xf32> to vector<3x120xf32>
    %c1_130 = arith.constant 1 : index
    %c0_131 = arith.constant 0 : index
    %c0_132 = arith.constant 0 : index
    %219 = vector.load %arg13[%c1_130, %c0_131, %c0_132] : memref<2x3x120xf32, #tpu.memory_space<vmem>>, vector<1x3x120xf32>
    %220 = vector.shape_cast %219 : vector<1x3x120xf32> to vector<3x120xf32>
    %221 = vector.shape_cast %218 : vector<3x120xf32> to vector<1x3x120xf32>
    tpu.vector_store %arg13[%c1_130, %c0_131, %c0_132], %221 {strides = array<i32>} : memref<2x3x120xf32, #tpu.memory_space<vmem>>, vector<1x3x120xf32>,
    return
  }
}

</mosaic_0001>

<bundles_post_ra>
// kernel: gen_forward.1
= control target key start
LH: loop header
LB: loop body
LE: loop exit
PB: predicated region body
PF: predicated region fallthrough
CT: control target
= control target key end

     0   :  { %vm109_vm0 = vcmask 261120   ;;  %vm742_vm1 = vcmask 1041408   ;;  %vm693_vm2 = vcmask 15360   ;;  %vm1499_vm3 = vcmask 64512   ;;  %s7887_s0 = inlined_call_operand.vmem [shape: f32[2,32], index: 0, kind: input, shape index: {}]   ;;  %s7888_s1 = inlined_call_operand.vmem [shape: f32[512,32], index: 1, kind: input, shape index: {}]   ;;  %s7889_s6 = inlined_call_operand.vmem [shape: f32[4,2,8], index: 6, kind: input, shape index: {}]   ;;  %s7890_s11 = inlined_call_operand.vmem [shape: f32[480,1], index: 11, kind: input, shape index: {}]   ;;  %s7891_s2 = inlined_call_operand.vmem [shape: f32[256,128], index: 2, kind: input, shape index: {}]   ;;  %s7892_s7 = inlined_call_operand.vmem [shape: f32[4,8,16], index: 7, kind: input, shape index: {}]   ;;  %s7893_s3 = inlined_call_operand.vmem [shape: f32[128,64], index: 3, kind: input, shape index: {}]   ;;  %s7894_s8 = inlined_call_operand.vmem [shape: f32[4,16,32], index: 8, kind: input, shape index: {}]   ;;  %s7895_s4 = inlined_call_operand.vmem [shape: f32[64,32], index: 4, kind: input, shape index: {}]   ;;  %s7896_s9 = inlined_call_operand.vmem [shape: f32[4,32,64], index: 9, kind: input, shape index: {}]   ;;  %s7897_s5 = inlined_call_operand.vmem [shape: f32[32,16], index: 5, kind: input, shape index: {}]   ;;  %s7898_s10 = inlined_call_operand.vmem [shape: f32[4,64,240], index: 10, kind: input, shape index: {}]   ;;  %s7899_s12 = inlined_call_operand.vmem [shape: f32[8,240], index: 12, kind: input, shape index: {}]   ;;  %s7900_s13 = inlined_call_operand.vmem [shape: f32[2,3,120], index: 13, kind: output, shape index: {}]  }
   0x1   :  { %v108_v0 = vld [vmem:[%s7887_s0] sm:$0x3]  ;;  %v45_v2 = vld [vmem:[%s7888_s1 + $0x8] sm:$0xff]  ;;  %v46_v3 = vld [vmem:[%s7888_s1 + $0x10] sm:$0xff]  ;;  %vm2768_vm4 = vcmask 130048   ;;  %vm3025_vm5 = vcmask 523264  }
   0x2   :  { %v44_v1 = vld [vmem:[%s7888_s1] sm:$0xff]  ;;  %5373 = vmatprep.subr.msk.mxu0 %vm109_vm0, %v108_v0  ;;  %v47_v4 = vld [vmem:[%s7888_s1 + $0x18] sm:$0xff]  ;;  %v49_v6 = vld [vmem:[%s7888_s1 + $0x28] sm:$0xff]  ;;  %vm4756_vm6 = vcmask 976896  }
   0x3   :  { %5375 = vmatprep.mubr.msk.f32.mxu0 %vm109_vm0, %v44_v1  ;;  %5374 = vmatpush3.xpose.msk.msra.mxu0 %vm109_vm0, %v108_v0  ;;  %v48_v5 = vld [vmem:[%s7888_s1 + $0x20] sm:$0xff]  ;;  %v50_v7 = vld [vmem:[%s7888_s1 + $0x30] sm:$0xff]  ;;  %v51_v8 = vld [vmem:[%s7888_s1 + $0x38] sm:$0xff] }
   0x4   :  { %v52_v9 = vld [vmem:[%s7888_s1 + $0x40] sm:$0xff]  ;;  %v53_v10 = vld [vmem:[%s7888_s1 + $0x48] sm:$0xff]  ;;  %v54_v11 = vld [vmem:[%s7888_s1 + $0x50] sm:$0xff] }
   0x5   :  { %v55_v12 = vld [vmem:[%s7888_s1 + $0x58] sm:$0xff]  ;;  %v56_v13 = vld [vmem:[%s7888_s1 + $0x60] sm:$0xff]  ;;  %v57_v14 = vld [vmem:[%s7888_s1 + $0x68] sm:$0xff] }
   0x6   :  { %5376 = vmatmul.mubr.msk.f32.vlgmr.msra.gmra.mrb[0].mxu0 %vm109_vm0, %v45_v2  ;;  %v58_v15 = vld [vmem:[%s7888_s1 + $0x70] sm:$0xff]  ;;  %v59_v16 = vld [vmem:[%s7888_s1 + $0x78] sm:$0xff]  ;;  %v60_v17 = vld [vmem:[%s7888_s1 + $0x80] sm:$0xff] }
   0x7   :  { %5378 = vmatprep.mubr.msk.f32.mxu0 %vm109_vm0, %v46_v3  ;;  %v61_v18 = vld [vmem:[%s7888_s1 + $0x88] sm:$0xff]  ;;  %v62_v19 = vld [vmem:[%s7888_s1 + $0x90] sm:$0xff]  ;;  %v63_v20 = vld [vmem:[%s7888_s1 + $0x98] sm:$0xff] }
   0x8   :  { %v64_v21 = vld [vmem:[%s7888_s1 + $0xa0] sm:$0xff]  ;;  %v65_v22 = vld [vmem:[%s7888_s1 + $0xa8] sm:$0xff]  ;;  %v66_v23 = vld [vmem:[%s7888_s1 + $0xb0] sm:$0xff] }
   0x9   :  { %v67_v24 = vld [vmem:[%s7888_s1 + $0xb8] sm:$0xff]  ;;  %v68_v25 = vld [vmem:[%s7888_s1 + $0xc0] sm:$0xff]  ;;  %v69_v26 = vld [vmem:[%s7888_s1 + $0xc8] sm:$0xff] }
   0xa   :  { %5379 = vmatmul.mubr.msk.f32.gmra.mrb[2].mxu0 %vm109_vm0, %v47_v4  ;;  %v70_v27 = vld [vmem:[%s7888_s1 + $0xd0] sm:$0xff]  ;;  %v71_v28 = vld [vmem:[%s7888_s1 + $0xd8] sm:$0xff]  ;;  %v72_v29 = vld [vmem:[%s7888_s1 + $0xe0] sm:$0xff] }
   0xb   :  { %5381 = vmatprep.mubr.msk.f32.mxu0 %vm109_vm0, %v48_v5  ;;  %v73_v30 = vld [vmem:[%s7888_s1 + $0xe8] sm:$0xff]  ;;  %v74_v31 = vld [vmem:[%s7888_s1 + $0xf0] sm:$0xff]  ;;  %v75_v32 = vld [vmem:[%s7888_s1 + $0xf8] sm:$0xff] }
   0xc   :  { %v76_v33 = vld [vmem:[%s7888_s1 + $0x100] sm:$0xff]  ;;  %v77_v34 = vld [vmem:[%s7888_s1 + $0x108] sm:$0xff]  ;;  %v78_v35 = vld [vmem:[%s7888_s1 + $0x110] sm:$0xff] }
   0xd   :  { %v79_v36 = vld [vmem:[%s7888_s1 + $0x118] sm:$0xff]  ;;  %v80_v37 = vld [vmem:[%s7888_s1 + $0x120] sm:$0xff]  ;;  %v81_v38 = vld [vmem:[%s7888_s1 + $0x128] sm:$0xff] }
   0xe   :  { %5382 = vmatmul.mubr.msk.f32.gmra.mrb[4].mxu0 %vm109_vm0, %v49_v6  ;;  %v82_v39 = vld [vmem:[%s7888_s1 + $0x130] sm:$0xff]  ;;  %v83_v40 = vld [vmem:[%s7888_s1 + $0x138] sm:$0xff]  ;;  %v84_v41 = vld [vmem:[%s7888_s1 + $0x140] sm:$0xff] }
   0xf   :  { %5384 = vmatprep.mubr.msk.f32.mxu0 %vm109_vm0, %v50_v7  ;;  %v85_v42 = vld [vmem:[%s7888_s1 + $0x148] sm:$0xff]  ;;  %v86_v43 = vld [vmem:[%s7888_s1 + $0x150] sm:$0xff]  ;;  %v87_v44 = vld [vmem:[%s7888_s1 + $0x158] sm:$0xff] }
  0x10   :  { %v88_v45 = vld [vmem:[%s7888_s1 + $0x160] sm:$0xff]  ;;  %v89_v46 = vld [vmem:[%s7888_s1 + $0x168] sm:$0xff]  ;;  %v90_v47 = vld [vmem:[%s7888_s1 + $0x170] sm:$0xff] }
  0x11   :  { %v91_v48 = vld [vmem:[%s7888_s1 + $0x178] sm:$0xff]  ;;  %v92_v49 = vld [vmem:[%s7888_s1 + $0x180] sm:$0xff]  ;;  %v93_v50 = vld [vmem:[%s7888_s1 + $0x188] sm:$0xff] }
  0x12   :  { %5385 = vmatmul.mubr.msk.f32.gmra.mrb[6].mxu0 %vm109_vm0, %v51_v8  ;;  %v94_v51 = vld [vmem:[%s7888_s1 + $0x190] sm:$0xff]  ;;  %v95_v52 = vld [vmem:[%s7888_s1 + $0x198] sm:$0xff]  ;;  %v96_v53 = vld [vmem:[%s7888_s1 + $0x1a0] sm:$0xff] }
  0x13   :  { %5387 = vmatprep.mubr.msk.f32.mxu0 %vm109_vm0, %v52_v9  ;;  %v97_v54 = vld [vmem:[%s7888_s1 + $0x1a8] sm:$0xff]  ;;  %v98_v55 = vld [vmem:[%s7888_s1 + $0x1b0] sm:$0xff]  ;;  %v99_v56 = vld [vmem:[%s7888_s1 + $0x1b8] sm:$0xff] }
  0x14   :  { %v100_v57 = vld [vmem:[%s7888_s1 + $0x1c0] sm:$0xff]  ;;  %v101_v58 = vld [vmem:[%s7888_s1 + $0x1c8] sm:$0xff]  ;;  %v102_v59 = vld [vmem:[%s7888_s1 + $0x1d0] sm:$0xff] }
  0x15   :  { %v103_v60 = vld [vmem:[%s7888_s1 + $0x1d8] sm:$0xff]  ;;  %v104_v61 = vld [vmem:[%s7888_s1 + $0x1e0] sm:$0xff]  ;;  %v105_v63 = vld [vmem:[%s7888_s1 + $0x1e8] sm:$0xff] }
  0x16   :  { %5388 = vmatmul.mubr.msk.f32.gmra.mrb[8].mxu0 %vm109_vm0, %v53_v10  ;;  %v4837_v62 = vld [vmem:[%s7889_s6 + $0x2] sm:$0x3]  ;;  %v106_v0 = vld [vmem:[%s7888_s1 + $0x1f0] sm:$0xff]  ;;  %v107_v1 = vld [vmem:[%s7888_s1 + $0x1f8] sm:$0xff] }
  0x17   :  { %5390 = vmatprep.mubr.msk.f32.mxu0 %vm109_vm0, %v54_v11  ;;  %5471 = vmatprep.subr.msk.mxu0 %vm742_vm1, %v4837_v62  ;;  %v4856_v2 = vld [vmem:[%s7889_s6 + $0x6] sm:$0x3] }
  0x18   :  { %5472 = vmatpush3.msk.msra.mxu0 %vm742_vm1, %v4837_v62  ;;  %6037 = vmatprep.subr.msk.mxu1 %vm742_vm1, %v4837_v62 }
  0x19   :  { %6038 = vmatpush3.msk.msra.mxu1 %vm742_vm1, %v4837_v62 }
  0x1a   :  { %5391 = vmatmul.mubr.msk.f32.gmra.mrb[10].mxu0 %vm109_vm0, %v55_v12  ;;  %5497 = vmatprep.subr.msk.mxu1 %vm742_vm1, %v4856_v2 }
  0x1b   :  { %5393 = vmatprep.mubr.msk.f32.mxu0 %vm109_vm0, %v56_v13 }
  0x1e   :  { %5394 = vmatmul.mubr.msk.f32.gmra.mrb[12].mxu0 %vm109_vm0, %v57_v14 }
  0x1f   :  { %5396 = vmatprep.mubr.msk.f32.mxu0 %vm109_vm0, %v58_v15 }
  0x22   :  { %5397 = vmatmul.mubr.msk.f32.gmra.mrb[14].mxu0 %vm109_vm0, %v59_v16 }
  0x23   :  { %5399 = vmatprep.mubr.msk.f32.mxu0 %vm109_vm0, %v60_v17 }
  0x26   :  { %5400 = vmatmul.mubr.msk.f32.gmra.mrb[16].mxu0 %vm109_vm0, %v61_v18 }
  0x27   :  { %5402 = vmatprep.mubr.msk.f32.mxu0 %vm109_vm0, %v62_v19 }
  0x2a   :  { %5403 = vmatmul.mubr.msk.f32.gmra.mrb[18].mxu0 %vm109_vm0, %v63_v20 }
  0x2b   :  { %5405 = vmatprep.mubr.msk.f32.mxu0 %vm109_vm0, %v64_v21 }
  0x2e   :  { %5406 = vmatmul.mubr.msk.f32.gmra.mrb[20].mxu0 %vm109_vm0, %v65_v22 }
  0x2f   :  { %5408 = vmatprep.mubr.msk.f32.mxu0 %vm109_vm0, %v66_v23 }
  0x32   :  { %5409 = vmatmul.mubr.msk.f32.gmra.mrb[22].mxu0 %vm109_vm0, %v67_v24 }
  0x33   :  { %5411 = vmatprep.mubr.msk.f32.mxu0 %vm109_vm0, %v68_v25 }
  0x36   :  { %5412 = vmatmul.mubr.msk.f32.gmra.mrb[24].mxu0 %vm109_vm0, %v69_v26 }
  0x37   :  { %5414 = vmatprep.mubr.msk.f32.mxu0 %vm109_vm0, %v70_v27 }
  0x3a   :  { %5415 = vmatmul.mubr.msk.f32.gmra.mrb[26].mxu0 %vm109_vm0, %v71_v28 }
  0x3b   :  { %5417 = vmatprep.mubr.msk.f32.mxu0 %vm109_vm0, %v72_v29 }
  0x3e   :  { %5418 = vmatmul.mubr.msk.f32.gmra.mrb[28].mxu0 %vm109_vm0, %v73_v30 }
  0x3f   :  { %5420 = vmatprep.mubr.msk.f32.mxu0 %vm109_vm0, %v74_v31 }
  0x42   :  { %5421 = vmatmul.mubr.msk.f32.gmra.mrb[30].mxu0 %vm109_vm0, %v75_v32 }
  0x43   :  { %5423 = vmatprep.mubr.msk.f32.mxu0 %vm109_vm0, %v76_v33 }
  0x46   :  { %5424 = vmatmul.mubr.msk.f32.gmra.mrb[32].mxu0 %vm109_vm0, %v77_v34 }
  0x47   :  { %5426 = vmatprep.mubr.msk.f32.mxu0 %vm109_vm0, %v78_v35  ;;  %v690_v35 = vld [vmem:[%s7889_s6] sm:$0x3] }
  0x4a   :  { %5427 = vmatmul.mubr.msk.f32.gmra.mrb[34].mxu0 %vm109_vm0, %v79_v36 }
  0x4b   :  { %5429 = vmatprep.mubr.msk.f32.mxu0 %vm109_vm0, %v80_v37  ;;  %v6204_v37 = vmov 0  }
  0x4c   :  { %6139 = vset.pattern.permute.xlu1 %v6204_v37  ;;  %6138 = vset.pattern.permute.xlu0 %v6204_v37  ;;  %v1676_v37 = vld [vmem:[%s7890_s11] sm:$0xff] }
  0x4d   :  { %1774 = vperm.xlu0 %6138, %v1676_v37  }
  0x4e   :  { %5430 = vmatmul.mubr.msk.f32.gmra.mrb[36].mxu0 %vm109_vm0, %v81_v38  ;;  %v1677_v38 = vld [vmem:[%s7890_s11 + $0x8] sm:$0xff] }
  0x4f   :  { %5432 = vmatprep.mubr.msk.f32.mxu0 %vm109_vm0, %v82_v39  ;;  %1779 = vperm.xlu1 %6139, %v1677_v38  }
  0x52   :  { %5433 = vmatmul.mubr.msk.f32.gmra.mrb[38].mxu0 %vm109_vm0, %v83_v40  ;;  %v1692_v40 = vld [vmem:[%s7890_s11 + $0x80] sm:$0xff] }
  0x53   :  { %5435 = vmatprep.mubr.msk.f32.mxu0 %vm109_vm0, %v84_v41  ;;  %1870 = vperm.xlu1 %6139, %v1692_v40  }
  0x56   :  { %5436 = vmatmul.mubr.msk.f32.gmra.mrb[40].mxu0 %vm109_vm0, %v85_v42 }
  0x57   :  { %5438 = vmatprep.mubr.msk.f32.mxu0 %vm109_vm0, %v86_v43  ;;  %v1693_v43 = vld [vmem:[%s7890_s11 + $0x88] sm:$0xff] }
  0x58   :  { %1875 = vperm.xlu1 %6139, %v1693_v43  }
  0x5a   :  { %5439 = vmatmul.mubr.msk.f32.gmra.mrb[42].mxu0 %vm109_vm0, %v87_v44 }
  0x5b   :  { %5441 = vmatprep.mubr.msk.f32.mxu0 %vm109_vm0, %v88_v45 }
  0x5e   :  { %5442 = vmatmul.mubr.msk.f32.gmra.mrb[44].mxu0 %vm109_vm0, %v89_v46  ;;  %v1678_v46 = vld [vmem:[%s7890_s11 + $0x10] sm:$0xff] }
  0x5f   :  { %5444 = vmatprep.mubr.msk.f32.mxu0 %vm109_vm0, %v90_v47  ;;  %1784 = vperm.xlu1 %6139, %v1678_v46  }
  0x62   :  { %5445 = vmatmul.mubr.msk.f32.gmra.mrb[46].mxu0 %vm109_vm0, %v91_v48 }
  0x63   :  { %5447 = vmatprep.mubr.msk.f32.mxu0 %vm109_vm0, %v92_v49  ;;  %v1694_v49 = vld [vmem:[%s7890_s11 + $0x90] sm:$0xff] }
  0x64   :  { %1880 = vperm.xlu1 %6139, %v1694_v49  }
  0x66   :  { %5448 = vmatmul.mubr.msk.f32.gmra.mrb[48].mxu0 %vm109_vm0, %v93_v50 }
  0x67   :  { %5450 = vmatprep.mubr.msk.f32.mxu0 %vm109_vm0, %v94_v51 }
  0x6a   :  { %5451 = vmatmul.mubr.msk.f32.gmra.mrb[50].mxu0 %vm109_vm0, %v95_v52  ;;  %v1695_v52 = vld [vmem:[%s7890_s11 + $0x98] sm:$0xff] }
  0x6b   :  { %5453 = vmatprep.mubr.msk.f32.mxu0 %vm109_vm0, %v96_v53  ;;  %1885 = vperm.xlu1 %6139, %v1695_v52  }
  0x6e   :  { %5454 = vmatmul.mubr.msk.f32.gmra.mrb[52].mxu0 %vm109_vm0, %v97_v54 }
  0x6f   :  { %5456 = vmatprep.mubr.msk.f32.mxu0 %vm109_vm0, %v98_v55  ;;  %v1680_v55 = vld [vmem:[%s7890_s11 + $0x20] sm:$0xff] }
  0x70   :  { %1794 = vperm.xlu1 %6139, %v1680_v55  }
  0x72   :  { %5457 = vmatmul.mubr.msk.f32.gmra.mrb[54].mxu0 %vm109_vm0, %v99_v56 }
  0x73   :  { %5459 = vmatprep.mubr.msk.f32.mxu0 %vm109_vm0, %v100_v57 }
  0x76   :  { %5460 = vmatmul.mubr.msk.f32.gmra.mrb[56].mxu0 %vm109_vm0, %v101_v58  ;;  %v1681_v58 = vld [vmem:[%s7890_s11 + $0x28] sm:$0xff] }
  0x77   :  { %5462 = vmatprep.mubr.msk.f32.mxu0 %vm109_vm0, %v102_v59  ;;  %1799 = vperm.xlu1 %6139, %v1681_v58  }
  0x7a   :  { %5463 = vmatmul.mubr.msk.f32.gmra.mrb[58].mxu0 %vm109_vm0, %v103_v60 }
  0x7b   :  { %5465 = vmatprep.mubr.msk.f32.mxu0 %vm109_vm0, %v104_v61  ;;  %v1696_v61 = vld [vmem:[%s7890_s11 + $0xa0] sm:$0xff] }
  0x7c   :  { %1890 = vperm.xlu1 %6139, %v1696_v61  }
  0x7e   :  { %5466 = vmatmul.mubr.msk.f32.gmra.mrb[60].mxu0 %vm109_vm0, %v105_v63 }
  0x7f   :  { %5468 = vmatprep.mubr.msk.f32.mxu0 %vm109_vm0, %v106_v0  ;;  %v4855_v0 = vld [vmem:[%s7889_s6 + $0x4] sm:$0x3] }
  0x82   :  { %5469 = vmatmul.mubr.msk.f32.gmra.mrb[62].mxu0 %vm109_vm0, %v107_v1  ;;  %v1682_v1 = vld [vmem:[%s7890_s11 + $0x30] sm:$0xff] }
  0x83   :  { %1804 = vperm.xlu1 %6139, %v1682_v1  }
  0xd9   :  { %v6549_v3 = vpop.f32.mrb[0].mxu0 }
  0xda   :  { %v6551_v4 = vpop.f32.mrb[1].mxu0 }
  0xdd   :  { %v6553_v5 = vpop.f32.mrb[2].mxu0 }
  0xde   :  { %v6555_v6 = vpop.f32.mrb[3].mxu0 }
  0xe1   :  { %v6557_v7 = vpop.f32.mrb[4].mxu0 }
  0xe2   :  { %v6559_v8 = vpop.f32.mrb[5].mxu0 }
  0xe5   :  { %v6561_v9 = vpop.f32.mrb[6].mxu0 }
  0xe6   :  { %v6563_v10 = vpop.f32.mrb[7].mxu0 }
  0xe9   :  { %v6565_v11 = vpop.f32.mrb[8].mxu0 }
  0xea   :  { %v6567_v12 = vpop.f32.mrb[9].mxu0 }
  0xed   :  { %v6569_v13 = vpop.f32.mrb[10].mxu0 }
  0xee   :  { %v6571_v14 = vpop.f32.mrb[11].mxu0 }
  0xf1   :  { %v6573_v15 = vpop.f32.mrb[12].mxu0 }
  0xf2   :  { %v6575_v16 = vpop.f32.mrb[13].mxu0 }
  0xf5   :  { %v6577_v17 = vpop.f32.mrb[14].mxu0 }
  0xf6   :  { %v6579_v18 = vpop.f32.mrb[15].mxu0 }
  0xf9   :  { %v5401_v19 = vpop.f32.mrb[16].mxu0 }
  0xfa   :  { %v451_v20 = vpop.f32.mrb[17].mxu0 }
  0xfb   :  { %5473 = vmatprep.mubr.msk.f32.mxu0 %vm693_vm2, %v451_v20 }
  0xfc   :  { %5474 = vmatmul.mubr.msk.f32.vlgmr.msra.gmra.mrb[64].mxu0 %vm693_vm2, %v5401_v19 }
  0xfd   :  { %v5404_v21 = vpop.f32.mrb[18].mxu0 }
  0xfe   :  { %v461_v22 = vpop.f32.mrb[19].mxu0 }
  0xff   :  { %5476 = vmatprep.mubr.msk.f32.mxu0 %vm693_vm2, %v461_v22 }
 0x100   :  { %5477 = vmatmul.mubr.msk.f32.gmra.mrb[66].mxu0 %vm693_vm2, %v5404_v21 }
 0x101   :  { %v5407_v23 = vpop.f32.mrb[20].mxu0 }
 0x102   :  { %v471_v24 = vpop.f32.mrb[21].mxu0 }
 0x103   :  { %5479 = vmatprep.mubr.msk.f32.mxu0 %vm693_vm2, %v471_v24 }
 0x104   :  { %5480 = vmatmul.mubr.msk.f32.gmra.mrb[68].mxu0 %vm693_vm2, %v5407_v23 }
 0x105   :  { %v5410_v25 = vpop.f32.mrb[22].mxu0 }
 0x106   :  { %v481_v26 = vpop.f32.mrb[23].mxu0 }
 0x107   :  { %5482 = vmatprep.mubr.msk.f32.mxu0 %vm693_vm2, %v481_v26 }
 0x108   :  { %5483 = vmatmul.mubr.msk.f32.gmra.mrb[70].mxu0 %vm693_vm2, %v5410_v25 }
 0x109   :  { %v5413_v27 = vpop.f32.mrb[24].mxu0 }
 0x10a   :  { %v491_v28 = vpop.f32.mrb[25].mxu0 }
 0x10b   :  { %5485 = vmatprep.mubr.msk.f32.mxu0 %vm693_vm2, %v491_v28  ;;  %v1698_v28 = vld [vmem:[%s7890_s11 + $0xb0] sm:$0xff] }
 0x10c   :  { %5486 = vmatmul.mubr.msk.f32.gmra.mrb[72].mxu0 %vm693_vm2, %v5413_v27  ;;  %1900 = vperm.xlu1 %6139, %v1698_v28  }
 0x10d   :  { %v5416_v29 = vpop.f32.mrb[26].mxu0 }
 0x10e   :  { %v501_v30 = vpop.f32.mrb[27].mxu0 }
 0x10f   :  { %5488 = vmatprep.mubr.msk.f32.mxu0 %vm693_vm2, %v501_v30 }
 0x110   :  { %5489 = vmatmul.mubr.msk.f32.gmra.mrb[74].mxu0 %vm693_vm2, %v5416_v29 }
 0x111   :  { %v5419_v31 = vpop.f32.mrb[28].mxu0 }
 0x112   :  { %v511_v32 = vpop.f32.mrb[29].mxu0 }
 0x113   :  { %5491 = vmatprep.mubr.msk.f32.mxu0 %vm693_vm2, %v511_v32 }
 0x114   :  { %5492 = vmatmul.mubr.msk.f32.gmra.mrb[76].mxu0 %vm693_vm2, %v5419_v31  ;;  %v1684_v31 = vld [vmem:[%s7890_s11 + $0x40] sm:$0xff] }
 0x115   :  { %v5422_v33 = vpop.f32.mrb[30].mxu0  ;;  %1814 = vperm.xlu1 %6139, %v1684_v31  }
 0x116   :  { %v521_v34 = vpop.f32.mrb[31].mxu0 }
 0x117   :  { %5494 = vmatprep.mubr.msk.f32.mxu1 %vm693_vm2, %v521_v34  ;;  %v1700_v34 = vld [vmem:[%s7890_s11 + $0xc0] sm:$0xff] }
 0x118   :  { %5495 = vmatmul.mubr.msk.f32.vlgmr.msra.gmra.mrb[0].mxu1 %vm693_vm2, %v5422_v33 }
 0x119   :  { %v6600_v36 = vpop.f32.mrb[32].mxu0  ;;  %5498 = vmatpush3.msk.msra.mxu1 %vm742_vm1, %v4856_v2  ;;  %1910 = vperm.xlu1 %6139, %v1700_v34  }
 0x11a   :  { %v6606_v39 = vpop.f32.mrb[33].mxu0  ;;  %5523 = vmatprep.subr.msk.mxu1 %vm742_vm1, %v690_v35 }
 0x11d   :  { %v6612_v41 = vpop.f32.mrb[34].mxu0 }
 0x11e   :  { %v6614_v42 = vpop.f32.mrb[35].mxu0 }
 0x121   :  { %v6619_v44 = vpop.f32.mrb[36].mxu0 }
 0x122   :  { %v6621_v45 = vpop.f32.mrb[37].mxu0 }
 0x125   :  { %v6626_v47 = vpop.f32.mrb[38].mxu0 }
 0x126   :  { %v6628_v48 = vpop.f32.mrb[39].mxu0 }
 0x129   :  { %v6633_v50 = vpop.f32.mrb[40].mxu0 }
 0x12a   :  { %v6635_v51 = vpop.f32.mrb[41].mxu0 }
 0x12d   :  { %v6640_v53 = vpop.f32.mrb[42].mxu0 }
 0x12e   :  { %v6642_v54 = vpop.f32.mrb[43].mxu0 }
 0x131   :  { %v6647_v56 = vpop.f32.mrb[44].mxu0 }
 0x132   :  { %v6649_v57 = vpop.f32.mrb[45].mxu0 }
 0x135   :  { %v6654_v59 = vpop.f32.mrb[46].mxu0 }
 0x136   :  { %v6656_v60 = vpop.f32.mrb[47].mxu0 }
 0x139   :  { %v5449_v62 = vpop.f32.mrb[48].mxu0 }
 0x13a   :  { %v611_v63 = vpop.f32.mrb[49].mxu0 }
 0x13b   :  { %5499 = vmatprep.mubr.msk.f32.mxu1 %vm693_vm2, %v611_v63 }
 0x13c   :  { %5500 = vmatmul.mubr.msk.f32.vlgmr.msra.gmra.mrb[2].mxu1 %vm693_vm2, %v5449_v62 }
 0x13d   :  { %v5452_v2 = vpop.f32.mrb[50].mxu0  ;;  %5524 = vmatpush3.msk.msra.mxu1 %vm742_vm1, %v690_v35  ;;  %v1686_v35 = vld [vmem:[%s7890_s11 + $0x50] sm:$0xff] }
 0x13e   :  { %v621_v19 = vpop.f32.mrb[51].mxu0  ;;  %5549 = vmatprep.subr.msk.mxu1 %vm742_vm1, %v4855_v0  ;;  %1824 = vperm.xlu1 %6139, %v1686_v35  }
 0x13f   :  { %5502 = vmatprep.mubr.msk.f32.mxu1 %vm693_vm2, %v621_v19 }
 0x140   :  { %5503 = vmatmul.mubr.msk.f32.gmra.mrb[4].mxu1 %vm693_vm2, %v5452_v2 }
 0x141   :  { %v5455_v20 = vpop.f32.mrb[52].mxu0 }
 0x142   :  { %v631_v21 = vpop.f32.mrb[53].mxu0 }
 0x143   :  { %5505 = vmatprep.mubr.msk.f32.mxu1 %vm693_vm2, %v631_v21 }
 0x144   :  { %5506 = vmatmul.mubr.msk.f32.gmra.mrb[6].mxu1 %vm693_vm2, %v5455_v20 }
 0x145   :  { %v5458_v22 = vpop.f32.mrb[54].mxu0 }
 0x146   :  { %v641_v23 = vpop.f32.mrb[55].mxu0 }
 0x147   :  { %5508 = vmatprep.mubr.msk.f32.mxu1 %vm693_vm2, %v641_v23 }
 0x148   :  { %5509 = vmatmul.mubr.msk.f32.gmra.mrb[8].mxu1 %vm693_vm2, %v5458_v22 }
 0x149   :  { %v5461_v24 = vpop.f32.mrb[56].mxu0 }
 0x14a   :  { %v651_v25 = vpop.f32.mrb[57].mxu0 }
 0x14b   :  { %5511 = vmatprep.mubr.msk.f32.mxu1 %vm693_vm2, %v651_v25 }
 0x14c   :  { %5512 = vmatmul.mubr.msk.f32.gmra.mrb[10].mxu1 %vm693_vm2, %v5461_v24 }
 0x14d   :  { %v5464_v26 = vpop.f32.mrb[58].mxu0 }
 0x14e   :  { %v661_v27 = vpop.f32.mrb[59].mxu0 }
 0x14f   :  { %5514 = vmatprep.mubr.msk.f32.mxu1 %vm693_vm2, %v661_v27 }
 0x150   :  { %5515 = vmatmul.mubr.msk.f32.gmra.mrb[12].mxu1 %vm693_vm2, %v5464_v26 }
 0x151   :  { %v5467_v29 = vpop.f32.mrb[60].mxu0 }
 0x152   :  { %v671_v30 = vpop.f32.mrb[61].mxu0 }
 0x153   :  { %5517 = vmatprep.mubr.msk.f32.mxu1 %vm693_vm2, %v671_v30 }
 0x154   :  { %5518 = vmatmul.mubr.msk.f32.gmra.mrb[14].mxu1 %vm693_vm2, %v5467_v29 }
 0x155   :  { %v5470_v32 = vpop.f32.mrb[62].mxu0 }
 0x156   :  { %v681_v33 = vpop.f32.mrb[63].mxu0 }
 0x157   :  { %5520 = vmatprep.mubr.msk.f32.mxu1 %vm693_vm2, %v681_v33 }
 0x158   :  { %5521 = vmatmul.mubr.msk.f32.gmra.mrb[0].mxu1 %vm693_vm2, %v5470_v32 }
 0x159   :  { %5525 = vmatprep.mubr.msk.f32.mxu1 %vm693_vm2, %v6551_v4  ;;  %v1679_v4 = vld [vmem:[%s7890_s11 + $0x18] sm:$0xff] }
 0x15a   :  { %1789 = vperm.xlu0 %6138, %v1679_v4  }
 0x15c   :  { %5526 = vmatmul.mubr.msk.f32.vlgmr.msra.gmra.mrb[2].mxu1 %vm693_vm2, %v6549_v3  ;;  %v1702_v3 = vld [vmem:[%s7890_s11 + $0xd0] sm:$0xff] }
 0x15d   :  { %5528 = vmatprep.mubr.msk.f32.mxu1 %vm693_vm2, %v6555_v6  ;;  %5550 = vmatpush3.msk.msra.mxu1 %vm742_vm1, %v4855_v0  ;;  %v1697_v6 = vld [vmem:[%s7890_s11 + $0xa8] sm:$0xff] }
 0x15e   :  { %1920 = vperm.xlu1 %6139, %v1702_v3   ;;  %1895 = vperm.xlu0 %6138, %v1697_v6  }
 0x160   :  { %5529 = vmatmul.mubr.msk.f32.gmra.mrb[4].mxu1 %vm693_vm2, %v6553_v5  ;;  %v1688_v5 = vld [vmem:[%s7890_s11 + $0x60] sm:$0xff] }
 0x161   :  { %5531 = vmatprep.mubr.msk.f32.mxu1 %vm693_vm2, %v6559_v8  ;;  %v1683_v8 = vld [vmem:[%s7890_s11 + $0x38] sm:$0xff] }
 0x162   :  { %1834 = vperm.xlu1 %6139, %v1688_v5   ;;  %1809 = vperm.xlu0 %6138, %v1683_v8  }
 0x164   :  { %5532 = vmatmul.mubr.msk.f32.gmra.mrb[6].mxu1 %vm693_vm2, %v6557_v7  ;;  %v1704_v7 = vld [vmem:[%s7890_s11 + $0xe0] sm:$0xff] }
 0x165   :  { %5534 = vmatprep.mubr.msk.f32.mxu1 %vm693_vm2, %v6563_v10  ;;  %v1690_v10 = vld [vmem:[%s7890_s11 + $0x70] sm:$0xff] }
 0x166   :  { %1930 = vperm.xlu1 %6139, %v1704_v7  }
 0x168   :  { %5535 = vmatmul.mubr.msk.f32.gmra.mrb[8].mxu1 %vm693_vm2, %v6561_v9  ;;  %v1699_v9 = vld [vmem:[%s7890_s11 + $0xb8] sm:$0xff] }
 0x169   :  { %5537 = vmatprep.mubr.msk.f32.mxu1 %vm693_vm2, %v6567_v12  ;;  %1905 = vperm.xlu0 %6138, %v1699_v9   ;;  %v1685_v12 = vld [vmem:[%s7890_s11 + $0x48] sm:$0xff] }
 0x16a   :  { %1844 = vperm.xlu1 %6139, %v1690_v10  }
 0x16c   :  { %5538 = vmatmul.mubr.msk.f32.gmra.mrb[10].mxu1 %vm693_vm2, %v6565_v11  ;;  %v1701_v11 = vld [vmem:[%s7890_s11 + $0xc8] sm:$0xff] }
 0x16d   :  { %5540 = vmatprep.mubr.msk.f32.mxu1 %vm693_vm2, %v6571_v14  ;;  %1819 = vperm.xlu0 %6138, %v1685_v12   ;;  %v1687_v14 = vld [vmem:[%s7890_s11 + $0x58] sm:$0xff] }
 0x170   :  { %5541 = vmatmul.mubr.msk.f32.gmra.mrb[12].mxu1 %vm693_vm2, %v6569_v13  ;;  %v1703_v13 = vld [vmem:[%s7890_s11 + $0xd8] sm:$0xff] }
 0x171   :  { %5543 = vmatprep.mubr.msk.f32.mxu1 %vm693_vm2, %v6575_v16  ;;  %1915 = vperm.xlu0 %6138, %v1701_v11   ;;  %v1705_v16 = vld [vmem:[%s7890_s11 + $0xe8] sm:$0xff] }
 0x174   :  { %5544 = vmatmul.mubr.msk.f32.gmra.mrb[14].mxu1 %vm693_vm2, %v6573_v15  ;;  %v1689_v15 = vld [vmem:[%s7890_s11 + $0x68] sm:$0xff] }
 0x175   :  { %5546 = vmatprep.mubr.msk.f32.mxu1 %vm693_vm2, %v6579_v18  ;;  %1829 = vperm.xlu0 %6138, %v1687_v14  }
 0x178   :  { %5547 = vmatmul.mubr.msk.f32.gmra.mrb[0].mxu1 %vm693_vm2, %v6577_v17  ;;  %v1691_v17 = vld [vmem:[%s7890_s11 + $0x78] sm:$0xff] }
 0x179   :  { %5551 = vmatprep.mubr.msk.f32.mxu1 %vm693_vm2, %v6606_v39  ;;  %1925 = vperm.xlu0 %6138, %v1703_v13  }
 0x17c   :  { %5552 = vmatmul.mubr.msk.f32.vlgmr.msra.gmra.mrb[2].mxu1 %vm693_vm2, %v6600_v36 }
 0x17d   :  { %5554 = vmatprep.mubr.msk.f32.mxu1 %vm693_vm2, %v6614_v42  ;;  %1839 = vperm.xlu0 %6138, %v1689_v15  }
 0x180   :  { %5555 = vmatmul.mubr.msk.f32.gmra.mrb[4].mxu1 %vm693_vm2, %v6612_v41 }
 0x181   :  { %5557 = vmatprep.mubr.msk.f32.mxu1 %vm693_vm2, %v6621_v45  ;;  %1935 = vperm.xlu0 %6138, %v1705_v16  }
 0x184   :  { %5558 = vmatmul.mubr.msk.f32.gmra.mrb[6].mxu1 %vm693_vm2, %v6619_v44 }
 0x185   :  { %5560 = vmatprep.mubr.msk.f32.mxu1 %vm693_vm2, %v6628_v48  ;;  %1849 = vperm.xlu0 %6138, %v1691_v17  }
 0x188   :  { %5561 = vmatmul.mubr.msk.f32.gmra.mrb[8].mxu1 %vm693_vm2, %v6626_v47 }
 0x189   :  { %5563 = vmatprep.mubr.msk.f32.mxu1 %vm693_vm2, %v6635_v51 }
 0x18c   :  { %5564 = vmatmul.mubr.msk.f32.gmra.mrb[10].mxu1 %vm693_vm2, %v6633_v50 }
 0x18d   :  { %5566 = vmatprep.mubr.msk.f32.mxu1 %vm693_vm2, %v6642_v54 }
 0x190   :  { %5567 = vmatmul.mubr.msk.f32.gmra.mrb[12].mxu1 %vm693_vm2, %v6640_v53 }
 0x191   :  { %5569 = vmatprep.mubr.msk.f32.mxu1 %vm693_vm2, %v6649_v57 }
 0x194   :  { %5570 = vmatmul.mubr.msk.f32.gmra.mrb[14].mxu1 %vm693_vm2, %v6647_v56 }
 0x195   :  { %5572 = vmatprep.mubr.msk.f32.mxu1 %vm693_vm2, %v6656_v60 }
 0x198   :  { %5573 = vmatmul.mubr.msk.f32.gmra.mrb[0].mxu1 %vm693_vm2, %v6654_v59 }
 0x1cf   :  { %v5475_v18 = vpop.f32.mrb[64].mxu0 }
 0x1d0   :  { %v812_v36 = vpop.f32.mrb[65].mxu0 }
 0x1d3   :  { %v5478_v38 = vpop.f32.mrb[66].mxu0 }
 0x1d4   :  { %v822_v39 = vpop.f32.mrb[67].mxu0 }
 0x1d7   :  { %v5481_v40 = vpop.f32.mrb[68].mxu0 }
 0x1d8   :  { %v832_v41 = vpop.f32.mrb[69].mxu0 }
 0x1db   :  { %v5484_v42 = vpop.f32.mrb[70].mxu0 }
 0x1dc   :  { %v842_v43 = vpop.f32.mrb[71].mxu0 }
 0x1df   :  { %v5487_v44 = vpop.f32.mrb[72].mxu0 }
 0x1e0   :  { %v852_v45 = vpop.f32.mrb[73].mxu0 }
 0x1e3   :  { %v5490_v46 = vpop.f32.mrb[74].mxu0 }
 0x1e4   :  { %v862_v47 = vpop.f32.mrb[75].mxu0 }
 0x1e7   :  { %v5493_v48 = vpop.f32.mrb[76].mxu0 }
 0x1e8   :  { %v872_v49 = vpop.f32.mrb[77].mxu0 }
 0x24f   :  { %v5553_v50 = vpop.f32.mrb[2].mxu1 }
 0x250   :  { %v6810_v51 = vadd.f32 %v5553_v50, %v5475_v18  ;;  %v1404_v52 = vpop.f32.mrb[3].mxu1 }
 0x251   :  { %v6812_v53 = vadd.f32 %v1404_v52, %v812_v36 }
 0x252   :  { %v1503_v54 = vsel %vm1499_vm3, %v6810_v51, 0.0  ;;  %v1565_v55 = vmul.f32 %v6810_v51, %v6810_v51 }
 0x253   :  { %v5556_v56 = vpop.f32.mrb[4].mxu1  ;;  %1504 = vadd.xlane.f32.xlu0 %v1503_v54  ;;  %v1564_v60 = vmul.f32 %v6812_v53, %v6812_v53  ;;  %v1500_v62 = vsel %vm1499_vm3, %v6812_v53, 0.0 }
 0x254   :  { %v6818_v57 = vadd.f32 %v5556_v56, %v5478_v38  ;;  %v1414_v58 = vpop.f32.mrb[5].mxu1  ;;  %v1583_v59 = vsel %vm1499_vm3, %v1565_v55, 0.0 }
 0x255   :  { %v6823_v61 = vadd.f32 %v1414_v58, %v822_v39  ;;  %1584 = vadd.xlane.f32.xlu1 %v1583_v59  ;;  %v1580_v2 = vsel %vm1499_vm3, %v1564_v60, 0.0 }
 0x256   :  { %v1509_v25 = vsel %vm1499_vm3, %v6818_v57, 0.0  ;;  %v1567_v26 = vmul.f32 %v6818_v57, %v6818_v57 }
 0x257   :  { %v5559_v63 = vpop.f32.mrb[6].mxu1  ;;  %1501 = vadd.xlane.f32.xlu0 %v1500_v62  ;;  %v1506_v20 = vsel %vm1499_vm3, %v6823_v61, 0.0  ;;  %v1566_v21 = vmul.f32 %v6823_v61, %v6823_v61 }
 0x258   :  { %v6827_v0 = vadd.f32 %v5559_v63, %v5481_v40  ;;  %v1424_v1 = vpop.f32.mrb[7].mxu1  ;;  %v1589_v32 = vsel %vm1499_vm3, %v1567_v26, 0.0 }
 0x259   :  { %v6830_v19 = vadd.f32 %v1424_v1, %v832_v41  ;;  %1581 = vadd.xlane.f32.xlu1 %v1580_v2  ;;  %v1586_v28 = vsel %vm1499_vm3, %v1566_v21, 0.0 }
 0x25a   :  { %v1515_v5 = vsel %vm1499_vm3, %v6827_v0, 0.0  ;;  %v1569_v6 = vmul.f32 %v6827_v0, %v6827_v0 }
 0x25b   :  { %v5562_v22 = vpop.f32.mrb[8].mxu1  ;;  %1507 = vadd.xlane.f32.xlu0 %v1506_v20  ;;  %v1512_v34 = vsel %vm1499_vm3, %v6830_v19, 0.0  ;;  %v1568_v35 = vmul.f32 %v6830_v19, %v6830_v19 }
 0x25c   :  { %v6836_v23 = vadd.f32 %v5562_v22, %v5484_v42  ;;  %v1434_v24 = vpop.f32.mrb[9].mxu1  ;;  %v1595_v11 = vsel %vm1499_vm3, %v1569_v6, 0.0 }
 0x25d   :  { %v6842_v27 = vadd.f32 %v1434_v24, %v842_v43  ;;  %1510 = vadd.xlane.f32.xlu1 %v1509_v25  ;;  %v1592_v8 = vsel %vm1499_vm3, %v1568_v35, 0.0 }
 0x25e   :  { %v1521_v18 = vsel %vm1499_vm3, %v6836_v23, 0.0  ;;  %v1571_v36 = vmul.f32 %v6836_v23, %v6836_v23 }
 0x25f   :  { %v5565_v29 = vpop.f32.mrb[10].mxu1  ;;  %1587 = vadd.xlane.f32.xlu0 %v1586_v28  ;;  %v1518_v13 = vsel %vm1499_vm3, %v6842_v27, 0.0  ;;  %v1570_v15 = vmul.f32 %v6842_v27, %v6842_v27 }
 0x260   :  { %v6845_v30 = vadd.f32 %v5565_v29, %v5487_v44  ;;  %v1444_v31 = vpop.f32.mrb[11].mxu1  ;;  %v1601_v39 = vsel %vm1499_vm3, %v1571_v36, 0.0  ;;  %v2860_v36 = vld [vmem:[%s7890_s11 + $0x118] sm:$0xff] }
 0x261   :  { %v6848_v33 = vadd.f32 %v1444_v31, %v852_v45  ;;  %1590 = vadd.xlane.f32.xlu1 %v1589_v32  ;;  %v1598_v38 = vsel %vm1499_vm3, %v1570_v15, 0.0  ;;  %v6891_v45 = vpop.permute.xlu1 %1779  ;;  %v6934_v31 = vpop.permute.xlu0 %1774 }
 0x262   :  { %v1527_v42 = vsel %vm1499_vm3, %v6845_v30, 0.0  ;;  %v1573_v43 = vmul.f32 %v6845_v30, %v6845_v30 }
 0x263   :  { %v5568_v37 = vpop.f32.mrb[12].mxu1  ;;  %1513 = vadd.xlane.f32.xlu0 %v1512_v34  ;;  %v1524_v40 = vsel %vm1499_vm3, %v6848_v33, 0.0  ;;  %v1572_v41 = vmul.f32 %v6848_v33, %v6848_v33  ;;  %v1706_v34 = vld [vmem:[%s7890_s11 + $0xf0] sm:$0xff] }
 0x264   :  { %v6854_v3 = vadd.f32 %v5568_v37, %v5490_v46  ;;  %v1454_v4 = vpop.f32.mrb[13].mxu1  ;;  %v1607_v46 = vsel %vm1499_vm3, %v1573_v43, 0.0  ;;  %v2862_v43 = vld [vmem:[%s7890_s11 + $0x128] sm:$0xff] }
 0x265   :  { %v6860_v7 = vadd.f32 %v1454_v4, %v862_v47  ;;  %1516 = vadd.xlane.f32.xlu1 %v1515_v5  ;;  %v1604_v44 = vsel %vm1499_vm3, %v1572_v41, 0.0  ;;  %v6902_v52 = vpop.permute.xlu1 %1870  ;;  %v6941_v35 = vpop.permute.xlu0 %1789  ;;  %v1707_v4 = vld [vmem:[%s7890_s11 + $0xf8] sm:$0xff]  ;;  %v2858_v5 = vld [vmem:[%s7890_s11 + $0x108] sm:$0xff]  ;;  %v2861_v41 = vld [vmem:[%s7890_s11 + $0x120] sm:$0xff] }
 0x266   :  { %v1575_v50 = vmul.f32 %v6854_v3, %v6854_v3 }
 0x267   :  { %v5571_v10 = vpop.f32.mrb[14].mxu1  ;;  %1593 = vadd.xlane.f32.xlu0 %v1592_v8  ;;  %v1530_v47 = vsel %vm1499_vm3, %v6860_v7, 0.0  ;;  %v2857_v8 = vld [vmem:[%s7890_s11 + $0x100] sm:$0xff] }
 0x268   :  { %v6863_v9 = vadd.f32 %v5571_v10, %v5493_v48  ;;  %v1464_v12 = vpop.f32.mrb[15].mxu1  ;;  %v1574_v48 = vmul.f32 %v6860_v7, %v6860_v7  ;;  %v1613_v55 = vsel %vm1499_vm3, %v1575_v50, 0.0  ;;  %v2865_v10 = vld [vmem:[%s7890_s11 + $0x140] sm:$0xff] }
 0x269   :  { %v6866_v14 = vadd.f32 %v1464_v12, %v872_v49  ;;  %1596 = vadd.xlane.f32.xlu1 %v1595_v11  ;;  %v1533_v49 = vsel %vm1499_vm3, %v6854_v3, 0.0  ;;  %v6910_v59 = vpop.permute.xlu1 %1875  ;;  %v6951_v6 = vpop.permute.xlu0 %1895  ;;  %v2866_v11 = vld [vmem:[%s7890_s11 + $0x148] sm:$0xff]  ;;  %v1980_v50 = vld [vmem:[%s7891_s2] sm:$0xff] }
 0x26a   :  { %v1610_v54 = vsel %vm1499_vm3, %v1574_v48, 0.0  ;;  %v1539_v60 = vsel %vm1499_vm3, %v6863_v9, 0.0  ;;  %v1577_v62 = vmul.f32 %v6863_v9, %v6863_v9  ;;  %v2870_v48 = vld [vmem:[%s7890_s11 + $0x168] sm:$0xff]  ;;  %5607 = vmatprep.mubr.f32.mxu1 %v1980_v50 }
 0x26b   :  { %v6872_v16 = vpop.f32.mrb[0].mxu1  ;;  %1519 = vadd.xlane.f32.xlu0 %v1518_v13  ;;  %v1536_v56 = vsel %vm1499_vm3, %v6866_v14, 0.0  ;;  %v1576_v58 = vmul.f32 %v6866_v14, %v6866_v14  ;;  %v2859_v13 = vld [vmem:[%s7890_s11 + $0x110] sm:$0xff] }
 0x26c   :  { %7903 = vst [vmem:[#allocation2_spill] sm:$0xff] %v6872_v16  ;;  %v6874_v17 = vpop.f32.mrb[1].mxu1  ;;  %v1619_v1 = vsel %vm1499_vm3, %v1577_v62, 0.0  ;;  %v1579_v21 = vmul.f32 %v6872_v16, %v6872_v16  ;;  %v1545_v22 = vsel %vm1499_vm3, %v6872_v16, 0.0 }
 0x26d   :  { %7904 = vst [vmem:[#allocation3_spill] sm:$0xff] %v6874_v17  ;;  %1522 = vadd.xlane.f32.xlu1 %v1521_v18  ;;  %v1616_v63 = vsel %vm1499_vm3, %v1576_v58, 0.0  ;;  %v6918_v2 = vpop.permute.xlu1 %1784  ;;  %v1542_v20 = vsel %vm1499_vm3, %v6874_v17, 0.0  ;;  %v1578_v24 = vmul.f32 %v6874_v17, %v6874_v17  ;;  %v6967_v15 = vpop.permute.xlu0 %1809 }
 0x26e   :  { %v1625_v25 = vsel %vm1499_vm3, %v1579_v21, 0.0 }
 0x26f   :  { %1599 = vadd.xlane.f32.xlu0 %v1598_v38  ;;  %v1622_v28 = vsel %vm1499_vm3, %v1578_v24, 0.0  ;;  %v2867_v38 = vld [vmem:[%s7890_s11 + $0x150] sm:$0xff] }
 0x271   :  { %1602 = vadd.xlane.f32.xlu1 %v1601_v39  ;;  %v6929_v26 = vpop.permute.xlu1 %1880  ;;  %v6977_v39 = vpop.permute.xlu0 %1905 }
 0x273   :  { %1525 = vadd.xlane.f32.xlu0 %v1524_v40  ;;  %v2868_v40 = vld [vmem:[%s7890_s11 + $0x158] sm:$0xff] }
 0x275   :  { %1528 = vadd.xlane.f32.xlu1 %v1527_v42  ;;  %v6932_v29 = vpop.permute.xlu1 %1885 }
 0x277   :  { %1605 = vadd.xlane.f32.xlu0 %v1604_v44  ;;  %v2869_v44 = vld [vmem:[%s7890_s11 + $0x160] sm:$0xff] }
 0x279   :  { %1608 = vadd.xlane.f32.xlu1 %v1607_v46  ;;  %v6936_v32 = vpop.permute.xlu1 %1794  ;;  %v6993_v46 = vpop.permute.xlu0 %1819 }
 0x27b   :  { %1531 = vadd.xlane.f32.xlu0 %v1530_v47 }
 0x27d   :  { %1534 = vadd.xlane.f32.xlu1 %v1533_v49  ;;  %v6943_v37 = vpop.permute.xlu1 %1799  ;;  %v2863_v49 = vld [vmem:[%s7890_s11 + $0x130] sm:$0xff] }
 0x27f   :  { %1611 = vadd.xlane.f32.xlu0 %v1610_v54  ;;  %v7006_v54 = vpop.permute.xlu0 %1915 }
 0x281   :  { %1614 = vadd.xlane.f32.xlu1 %v1613_v55  ;;  %v6959_v12 = vpop.permute.xlu1 %1890  ;;  %v2864_v55 = vld [vmem:[%s7890_s11 + $0x138] sm:$0xff] }
 0x283   :  { %1537 = vadd.xlane.f32.xlu0 %v1536_v56  ;;  %v7013_v58 = vpop.permute.xlu0 %1829 }
 0x285   :  { %1540 = vadd.xlane.f32.xlu1 %v1539_v60  ;;  %v6969_v18 = vpop.permute.xlu1 %1804 }
 0x287   :  { %1617 = vadd.xlane.f32.xlu0 %v1616_v63  ;;  %v7017_v62 = vpop.permute.xlu0 %1925 }
 0x289   :  { %1620 = vadd.xlane.f32.xlu1 %v1619_v1  ;;  %v6985_v42 = vpop.permute.xlu1 %1900 }
 0x28b   :  { %1543 = vadd.xlane.f32.xlu0 %v1542_v20  ;;  %v7021_v1 = vpop.permute.xlu0 %1839 }
 0x28d   :  { %1546 = vadd.xlane.f32.xlu1 %v1545_v22  ;;  %v6995_v47 = vpop.permute.xlu1 %1814 }
 0x28f   :  { %1626 = vadd.xlane.f32.xlu0 %v1625_v25  ;;  %v7025_v21 = vpop.permute.xlu0 %1935 }
 0x290   :  { %7905 = vst [vmem:[#allocation4_spill] sm:$0xff] %v7025_v21 }
 0x291   :  { %1623 = vadd.xlane.f32.xlu1 %v1622_v28  ;;  %v7011_v56 = vpop.permute.xlu1 %1910 }
 0x293   :  { %v7029_v24 = vpop.permute.xlu0 %1849 }
 0x294   :  { %7906 = vst [vmem:[#allocation5_spill] sm:$0xff] %v7029_v24 }
 0x295   :  { %v7015_v60 = vpop.permute.xlu1 %1824 }
 0x299   :  { %v7019_v63 = vpop.permute.xlu1 %1920 }
 0x29d   :  { %v7023_v20 = vpop.permute.xlu1 %1834 }
 0x2a1   :  { %v7027_v22 = vpop.permute.xlu1 %1930 }
 0x2a2   :  { %1940 = vperm.xlu1 %6139, %v1706_v34  }
 0x2a5   :  { %1945 = vperm.xlu0 %6138, %v1707_v4   ;;  %v7031_v25 = vpop.permute.xlu1 %1844 }
 0x2a6   :  { %2912 = vperm.xlu1 %6139, %v2858_v5   ;;  %7907 = vst [vmem:[#allocation6_spill] sm:$0xff] %v7031_v25 }
 0x2a9   :  { %2907 = vperm.xlu0 %6138, %v2857_v8  }
 0x2aa   :  { %2955 = vperm.xlu1 %6139, %v2865_v10  }
 0x2ad   :  { %2960 = vperm.xlu0 %6138, %v2866_v11  }
 0x2ae   :  { %2917 = vperm.xlu1 %6139, %v2859_v13  }
 0x2b1   :  { %2922 = vperm.xlu0 %6138, %v2860_v36  }
 0x2b2   :  { %2965 = vperm.xlu1 %6139, %v2867_v38  }
 0x2b5   :  { %2970 = vperm.xlu0 %6138, %v2868_v40  }
 0x2b6   :  { %2927 = vperm.xlu1 %6139, %v2861_v41  }
 0x2b9   :  { %2932 = vperm.xlu0 %6138, %v2862_v43  }
 0x2ba   :  { %2975 = vperm.xlu1 %6139, %v2869_v44  }
 0x2bd   :  { %2980 = vperm.xlu0 %6138, %v2870_v48  }
 0x2be   :  { %2937 = vperm.xlu1 %6139, %v2863_v49  }
 0x2c1   :  { %2942 = vperm.xlu0 %6138, %v2864_v55  }
 0x2e0   :  { %v1505_v28 = vpop.xlane.xlu0 %1504 }
 0x2e1   :  { %v1549_v34 = vmul.f32 0.125, %v1505_v28 }
 0x2e2   :  { %v1585_v4 = vpop.xlane.xlu1 %1584 }
 0x2e3   :  { %v1645_v5 = vmul.f32 %v1549_v34, %v1549_v34  ;;  %v1629_v8 = vmul.f32 0.125, %v1585_v4 }
 0x2e4   :  { %v1502_v10 = vpop.xlane.xlu0 %1501 }
 0x2e5   :  { %v1661_v11 = vsub.f32 %v1629_v8, %v1645_v5  ;;  %v1548_v13 = vmul.f32 0.125, %v1502_v10 }
 0x2e6   :  { %v1582_v36 = vpop.xlane.xlu1 %1581 }
 0x2e7   :  { %v1725_v38 = vadd.f32 1e-05, %v1661_v11  ;;  %v1644_v40 = vmul.f32 %v1548_v13, %v1548_v13  ;;  %v1628_v41 = vmul.f32 0.125, %v1582_v36  ;;  %v1709_v36 = vsub.f32 %v6810_v51, %v1549_v34 }
 0x2e8   :  { %v1508_v43 = vpop.xlane.xlu0 %1507 }
 0x2e9   :  { %6140 = vrsqrt.f32 %v1725_v38  ;;  %v1660_v44 = vsub.f32 %v1628_v41, %v1644_v40  ;;  %v1550_v48 = vmul.f32 0.125, %v1508_v43 }
 0x2ea   :  { %v1511_v49 = vpop.xlane.xlu1 %1510 }
 0x2eb   :  { %v1724_v50 = vadd.f32 1e-05, %v1660_v44  ;;  %v1551_v55 = vmul.f32 0.125, %v1511_v49  ;;  %v1646_v28 = vmul.f32 %v1550_v48, %v1550_v48 }
 0x2ec   :  { %v1588_v25 = vpop.xlane.xlu0 %1587 }
 0x2ed   :  { %6142 = vrsqrt.f32 %v1724_v50  ;;  %v1630_v24 = vmul.f32 0.125, %v1588_v25  ;;  %v1647_v4 = vmul.f32 %v1551_v55, %v1551_v55 }
 0x2ee   :  { %v1591_v17 = vpop.xlane.xlu1 %1590 }
 0x2ef   :  { %v1662_v16 = vsub.f32 %v1630_v24, %v1646_v28  ;;  %v1631_v5 = vmul.f32 0.125, %v1591_v17 }
 0x2f0   :  { %v1514_v8 = vpop.xlane.xlu0 %1513 }
 0x2f1   :  { %v1726_v10 = vadd.f32 1e-05, %v1662_v16  ;;  %v1663_v11 = vsub.f32 %v1631_v5, %v1647_v4  ;;  %v7033_v21 = vmul.f32 0.125, %v1514_v8  ;;  %v1708_v16 = vsub.f32 %v6812_v53, %v1548_v13 }
 0x2f2   :  { %v1517_v38 = vpop.xlane.xlu1 %1516 }
 0x2f3   :  { %v6141_v40 = vpop.eup %6140  ;;  %6144 = vrsqrt.f32 %v1726_v10  ;;  %v1727_v41 = vadd.f32 1e-05, %v1663_v11  ;;  %v7036_v43 = vmul.f32 0.125, %v1517_v38  ;;  %v1648_v24 = vmul.f32 %v7033_v21, %v7033_v21 }
 0x2f4   :  { %v1594_v44 = vpop.xlane.xlu0 %1593  ;;  %v1757_v49 = vmul.f32 %v6141_v40, %v1709_v36 }
 0x2f5   :  { %6146 = vrsqrt.f32 %v1727_v41  ;;  %v1632_v17 = vmul.f32 0.125, %v1594_v44  ;;  %v1649_v51 = vmul.f32 %v7036_v43, %v7036_v43 }
 0x2f6   :  { %v1597_v25 = vpop.xlane.xlu1 %1596  ;;  %v1853_v50 = vmul.f32 %v6891_v45, %v1757_v49  ;;  %v1710_v45 = vsub.f32 %v6823_v61, %v1550_v48 }
 0x2f7   :  { %v6143_v28 = vpop.eup %6142  ;;  %v1664_v34 = vsub.f32 %v1632_v17, %v1648_v24  ;;  %v1633_v4 = vmul.f32 0.125, %v1597_v25  ;;  %v1711_v25 = vsub.f32 %v6818_v57, %v1551_v55 }
 0x2f8   :  { %v1520_v5 = vpop.xlane.xlu0 %1519  ;;  %v1756_v8 = vmul.f32 %v6143_v28, %v1708_v16  ;;  %v1949_v53 = vadd.f32 %v6910_v59, %v1853_v50 }
 0x2f9   :  { %v1728_v10 = vadd.f32 1e-05, %v1664_v34  ;;  %v1665_v11 = vsub.f32 %v1633_v4, %v1649_v51  ;;  %v7044_v36 = vmul.f32 0.125, %v1520_v5 }
 0x2fa   :  { %v1523_v38 = vpop.xlane.xlu1 %1522  ;;  %v1852_v40 = vmul.f32 %v6934_v31, %v1756_v8  ;;  %v1965_v59 = vmax.f32 %v1949_v53, 0.0 }
 0x2fb   :  { %6148 = vrsqrt.f32 %v1728_v10  ;;  %v1729_v13 = vadd.f32 1e-05, %v1665_v11  ;;  %v7049_v41 = vmul.f32 0.125, %v1523_v38  ;;  %v1650_v17 = vmul.f32 %v7044_v36, %v7044_v36 }
 0x2fc   :  { %v1600_v44 = vpop.xlane.xlu0 %1599  ;;  %v1948_v49 = vadd.f32 %v6902_v52, %v1852_v40 }
 0x2fd   :  { %v6145_v24 = vpop.eup %6144  ;;  %6150 = vrsqrt.f32 %v1729_v13  ;;  %v1634_v16 = vmul.f32 0.125, %v1600_v44  ;;  %v1651_v61 = vmul.f32 %v7049_v41, %v7049_v41  ;;  %v1712_v13 = vsub.f32 %v6830_v19, %v7033_v21 }
 0x2fe   :  { %v1603_v31 = vpop.xlane.xlu1 %1602  ;;  %v1964_v28 = vmax.f32 %v1948_v49, 0.0  ;;  %v1758_v50 = vmul.f32 %v6145_v24, %v1710_v45 }
 0x2ff   :  { %v6147_v51 = vpop.eup %6146  ;;  %v1666_v48 = vsub.f32 %v1634_v16, %v1650_v17  ;;  %v1635_v34 = vmul.f32 0.125, %v1603_v31 }
 0x300   :  { %v1526_v4 = vpop.xlane.xlu0 %1525  ;;  %v5865_v52 = vpack.c.bf16 %v1965_v59, %v1964_v28  ;;  %v1759_v5 = vmul.f32 %v6147_v51, %v1711_v25  ;;  %v1854_v8 = vmul.f32 %v6918_v2, %v1758_v50 }
 0x301   :  { %v1730_v10 = vadd.f32 1e-05, %v1666_v48  ;;  %v1667_v11 = vsub.f32 %v1635_v34, %v1651_v61  ;;  %v7058_v38 = vmul.f32 0.125, %v1526_v4 }
 0x302   :  { %5866 = vmatprep.subr.bf16.mxu1 %v5865_v52  ;;  %v1529_v57 = vpop.xlane.xlu1 %1528  ;;  %v1855_v55 = vmul.f32 %v6941_v35, %v1759_v5  ;;  %v1950_v40 = vadd.f32 %v6929_v26, %v1854_v8  ;;  %v1713_v26 = vsub.f32 %v6827_v0, %v7036_v43  ;;  %v1714_v8 = vsub.f32 %v6842_v27, %v7044_v36 }
 0x303   :  { %6152 = vrsqrt.f32 %v1730_v10  ;;  %v1731_v53 = vadd.f32 1e-05, %v1667_v11  ;;  %5868 = vmatpush3.bf16.msra.mxu1 %v5865_v52  ;;  %v7064_v45 = vmul.f32 0.125, %v1529_v57  ;;  %v1652_v24 = vmul.f32 %v7058_v38, %v7058_v38 }
 0x304   :  { %v1606_v44 = vpop.xlane.xlu0 %1605  ;;  %v1951_v2 = vadd.f32 %v6932_v29, %v1855_v55  ;;  %v1966_v16 = vmax.f32 %v1950_v40, 0.0 }
 0x305   :  { %v6149_v49 = vpop.eup %6148  ;;  %6154 = vrsqrt.f32 %v1731_v53  ;;  %v1636_v17 = vmul.f32 0.125, %v1606_v44  ;;  %v1653_v19 = vmul.f32 %v7064_v45, %v7064_v45 }
 0x306   :  { %v1609_v35 = vpop.xlane.xlu1 %1608  ;;  %v1967_v25 = vmax.f32 %v1951_v2, 0.0  ;;  %v1760_v31 = vmul.f32 %v6149_v49, %v1712_v13 }
 0x307   :  { %v6151_v28 = vpop.eup %6150  ;;  %v1668_v21 = vsub.f32 %v1636_v17, %v1652_v24  ;;  %v1637_v59 = vmul.f32 0.125, %v1609_v35 }
 0x308   :  { %v1532_v29 = vpop.xlane.xlu0 %1531  ;;  %v5869_v50 = vpack.c.bf16 %v1967_v25, %v1966_v16  ;;  %v1761_v51 = vmul.f32 %v6151_v28, %v1713_v26  ;;  %v1856_v61 = vmul.f32 %v6936_v32, %v1760_v31 }
 0x309   :  { %v1732_v48 = vadd.f32 1e-05, %v1668_v21  ;;  %v1669_v34 = vsub.f32 %v1637_v59, %v1653_v19  ;;  %v7074_v4 = vmul.f32 0.125, %v1532_v29  ;;  %v1716_v19 = vsub.f32 %v6848_v33, %v7058_v38 }
 0x30a   :  { %5870 = vmatprep.subr.bf16.mxu1 %v5869_v50  ;;  %v1535_v0 = vpop.xlane.xlu1 %1534  ;;  %v1857_v43 = vmul.f32 %v6943_v37, %v1761_v51  ;;  %v1952_v52 = vadd.f32 %v6959_v12, %v1856_v61  ;;  %v1715_v37 = vsub.f32 %v6836_v23, %v7049_v41 }
 0x30b   :  { %6156 = vrsqrt.f32 %v1732_v48  ;;  %v1733_v5 = vadd.f32 1e-05, %v1669_v34  ;;  %5872 = vmatpush3.bf16.msra.mxu1 %v5869_v50  ;;  %v7080_v10 = vmul.f32 0.125, %v1535_v0  ;;  %v1654_v55 = vmul.f32 %v7074_v4, %v7074_v4 }
 0x30c   :  { %v1612_v11 = vpop.xlane.xlu0 %1611  ;;  %v1953_v32 = vadd.f32 %v6951_v6, %v1857_v43  ;;  %v1968_v53 = vmax.f32 %v1952_v52, 0.0 }
 0x30d   :  { %v6153_v57 = vpop.eup %6152  ;;  %6158 = vrsqrt.f32 %v1733_v5  ;;  %v1638_v40 = vmul.f32 0.125, %v1612_v11  ;;  %v1655_v27 = vmul.f32 %v7080_v10, %v7080_v10 }
 0x30e   :  { %v1615_v12 = vpop.xlane.xlu1 %1614  ;;  %v1969_v13 = vmax.f32 %v1953_v32, 0.0  ;;  %v1762_v44 = vmul.f32 %v6153_v57, %v1714_v8 }
 0x30f   :  { %v6155_v2 = vpop.eup %6154  ;;  %v1670_v36 = vsub.f32 %v1638_v40, %v1654_v55  ;;  %v1639_v49 = vmul.f32 0.125, %v1615_v12 }
 0x310   :  { %v1538_v6 = vpop.xlane.xlu0 %1537  ;;  %v5873_v24 = vpack.c.bf16 %v1969_v13, %v1968_v53  ;;  %v1763_v17 = vmul.f32 %v6155_v2, %v1715_v37  ;;  %v1858_v26 = vmul.f32 %v6969_v18, %v1762_v44  ;;  %v1718_v37 = vsub.f32 %v6860_v7, %v7074_v4 }
 0x311   :  { %v1734_v35 = vadd.f32 1e-05, %v1670_v36  ;;  %v1671_v16 = vsub.f32 %v1639_v49, %v1655_v27  ;;  %v7090_v25 = vmul.f32 0.125, %v1538_v6  ;;  %v1719_v44 = vsub.f32 %v6854_v3, %v7080_v10 }
 0x312   :  { %5874 = vmatprep.subr.bf16.mxu1 %v5873_v24  ;;  %v1541_v23 = vpop.xlane.xlu1 %1540  ;;  %v1859_v41 = vmul.f32 %v6967_v15, %v1763_v17  ;;  %v1954_v31 = vadd.f32 %v6985_v42, %v1858_v26  ;;  %v1717_v15 = vsub.f32 %v6845_v30, %v7064_v45 }
 0x313   :  { %6160 = vrsqrt.f32 %v1734_v35  ;;  %v1735_v28 = vadd.f32 1e-05, %v1671_v16  ;;  %5876 = vmatpush3.bf16.msra.mxu1 %v5873_v24  ;;  %v7096_v21 = vmul.f32 0.125, %v1541_v23  ;;  %v1656_v50 = vmul.f32 %v7090_v25, %v7090_v25 }
 0x314   :  { %v1618_v59 = vpop.xlane.xlu0 %1617  ;;  %v1955_v18 = vadd.f32 %v6977_v39, %v1859_v41  ;;  %v1970_v61 = vmax.f32 %v1954_v31, 0.0  ;;  %v1720_v41 = vsub.f32 %v6866_v14, %v7090_v25 }
 0x315   :  { %v6157_v29 = vpop.eup %6156  ;;  %6162 = vrsqrt.f32 %v1735_v28  ;;  %v1640_v51 = vmul.f32 0.125, %v1618_v59  ;;  %v1657_v33 = vmul.f32 %v7096_v21, %v7096_v21 }
 0x316   :  { %v1621_v42 = vpop.xlane.xlu1 %1620  ;;  %v1971_v48 = vmax.f32 %v1955_v18, 0.0  ;;  %v1764_v34 = vmul.f32 %v6157_v29, %v1716_v19 }
 0x317   :  { %v6159_v0 = vpop.eup %6158  ;;  %v1672_v38 = vsub.f32 %v1640_v51, %v1656_v50  ;;  %v1641_v43 = vmul.f32 0.125, %v1621_v42 }
 0x318   :  { %v1544_v39 = vpop.xlane.xlu0 %1543  ;;  %v5877_v52 = vpack.c.bf16 %v1971_v48, %v1970_v61  ;;  %v1765_v5 = vmul.f32 %v6159_v0, %v1717_v15  ;;  %v1860_v8 = vmul.f32 %v6995_v47, %v1764_v34  ;;  %v7909_v15 = vld [vmem:[#allocation2_spill] sm:$0xff] }
 0x319   :  { %v1736_v11 = vadd.f32 1e-05, %v1672_v38  ;;  %v1673_v32 = vsub.f32 %v1641_v43, %v1657_v33  ;;  %v1562_v40 = vmul.f32 0.125, %v1544_v39 }
 0x31a   :  { %5878 = vmatprep.subr.bf16.mxu1 %v5877_v52  ;;  %v1547_v57 = vpop.xlane.xlu1 %1546  ;;  %v1861_v30 = vmul.f32 %v6993_v46, %v1765_v5  ;;  %v1956_v45 = vadd.f32 %v7011_v56, %v1860_v8 }
 0x31b   :  { %6164 = vrsqrt.f32 %v1736_v11  ;;  %v1737_v55 = vadd.f32 1e-05, %v1673_v32  ;;  %5880 = vmatpush3.bf16.msra.mxu1 %v5877_v52  ;;  %v1563_v12 = vmul.f32 0.125, %v1547_v57  ;;  %v1658_v24 = vmul.f32 %v1562_v40, %v1562_v40  ;;  %v7912_v52 = vld [vmem:[#allocation6_spill] sm:$0xff] }
 0x31c   :  { %v1627_v53 = vpop.xlane.xlu0 %1626  ;;  %v1957_v13 = vadd.f32 %v7006_v54, %v1861_v30  ;;  %v1972_v56 = vmax.f32 %v1956_v45, 0.0  ;;  %v1981_v45 = vld [vmem:[%s7891_s2 + $0x8] sm:$0xff] }
 0x31d   :  { %v6161_v47 = vpop.eup %6160  ;;  %6166 = vrsqrt.f32 %v1737_v55  ;;  %v1643_v2 = vmul.f32 0.125, %v1627_v53  ;;  %v1659_v46 = vmul.f32 %v1563_v12, %v1563_v12  ;;  %v1723_v42 = vsub.f32 %v7909_v15, %v1563_v12  ;;  %v1982_v55 = vld [vmem:[%s7891_s2 + $0x10] sm:$0xff]  ;;  %v1985_v12 = vld [vmem:[%s7891_s2 + $0x28] sm:$0xff] }
 0x31e   :  { %v1624_v27 = vpop.xlane.xlu1 %1623  ;;  %v1973_v36 = vmax.f32 %v1957_v13, 0.0  ;;  %v1766_v49 = vmul.f32 %v6161_v47, %v1718_v37  ;;  %v1984_v37 = vld [vmem:[%s7891_s2 + $0x20] sm:$0xff]  ;;  %v1986_v53 = vld [vmem:[%s7891_s2 + $0x30] sm:$0xff]  ;;  %v1987_v13 = vld [vmem:[%s7891_s2 + $0x38] sm:$0xff] }
 0x31f   :  { %v6163_v6 = vpop.eup %6162  ;;  %v1642_v17 = vmul.f32 0.125, %v1624_v27  ;;  %v1675_v26 = vsub.f32 %v1643_v2, %v1659_v46  ;;  %v1988_v47 = vld [vmem:[%s7891_s2 + $0x40] sm:$0xff]  ;;  %v1990_v2 = vld [vmem:[%s7891_s2 + $0x50] sm:$0xff]  ;;  %v1991_v46 = vld [vmem:[%s7891_s2 + $0x58] sm:$0xff] }
 0x320   :  { %v5881_v7 = vpack.c.bf16 %v1973_v36, %v1972_v56  ;;  %v1767_v4 = vmul.f32 %v6163_v6, %v1719_v44  ;;  %v1862_v35 = vmul.f32 %v7015_v60, %v1766_v49  ;;  %v1721_v60 = vsub.f32 %v6863_v9, %v7096_v21  ;;  %v7910_v9 = vld [vmem:[#allocation3_spill] sm:$0xff]  ;;  %v1992_v27 = vld [vmem:[%s7891_s2 + $0x60] sm:$0xff]  ;;  %v1994_v36 = vld [vmem:[%s7891_s2 + $0x70] sm:$0xff] }
 0x321   :  { %v1674_v54 = vsub.f32 %v1642_v17, %v1658_v24  ;;  %v1739_v16 = vadd.f32 1e-05, %v1675_v26  ;;  %v1722_v21 = vsub.f32 %v7910_v9, %v1562_v40  ;;  %v1983_v40 = vld [vmem:[%s7891_s2 + $0x18] sm:$0xff]  ;;  %v1989_v44 = vld [vmem:[%s7891_s2 + $0x48] sm:$0xff]  ;;  %v1996_v6 = vld [vmem:[%s7891_s2 + $0x80] sm:$0xff] }
 0x322   :  { %5882 = vmatprep.subr.bf16.mxu1 %v5881_v7  ;;  %v1863_v3 = vmul.f32 %v7013_v58, %v1767_v4  ;;  %v1958_v10 = vadd.f32 %v7019_v63, %v1862_v35  ;;  %v1993_v56 = vld [vmem:[%s7891_s2 + $0x68] sm:$0xff]  ;;  %v1995_v49 = vld [vmem:[%s7891_s2 + $0x78] sm:$0xff]  ;;  %v1998_v17 = vld [vmem:[%s7891_s2 + $0x90] sm:$0xff] }
 0x323   :  { %v1738_v23 = vadd.f32 1e-05, %v1674_v54  ;;  %5884 = vmatpush3.bf16.msra.mxu1 %v5881_v7  ;;  %6168 = vrsqrt.f32 %v1739_v16  ;;  %v1997_v24 = vld [vmem:[%s7891_s2 + $0x88] sm:$0xff]  ;;  %v1999_v26 = vld [vmem:[%s7891_s2 + $0x98] sm:$0xff]  ;;  %v2000_v7 = vld [vmem:[%s7891_s2 + $0xa0] sm:$0xff] }
 0x324   :  { %v1959_v31 = vadd.f32 %v7017_v62, %v1863_v3  ;;  %v1974_v19 = vmax.f32 %v1958_v10, 0.0  ;;  %v7908_v62 = vld [vmem:[#allocation4_spill] sm:$0xff]  ;;  %v1946_v5 = vpop.permute.xlu0 %1945  ;;  %v2001_v4 = vld [vmem:[%s7891_s2 + $0xa8] sm:$0xff]  ;;  %v2003_v54 = vld [vmem:[%s7891_s2 + $0xb8] sm:$0xff] }
 0x325   :  { %v6165_v28 = vpop.eup %6164  ;;  %6170 = vrsqrt.f32 %v1738_v23  ;;  %v2002_v35 = vld [vmem:[%s7891_s2 + $0xb0] sm:$0xff]  ;;  %v2004_v16 = vld [vmem:[%s7891_s2 + $0xc0] sm:$0xff]  ;;  %v2005_v3 = vld [vmem:[%s7891_s2 + $0xc8] sm:$0xff] }
 0x326   :  { %v1975_v59 = vmax.f32 %v1959_v31, 0.0  ;;  %v1768_v18 = vmul.f32 %v6165_v28, %v1720_v41  ;;  %v2006_v10 = vld [vmem:[%s7891_s2 + $0xd0] sm:$0xff]  ;;  %v2007_v23 = vld [vmem:[%s7891_s2 + $0xd8] sm:$0xff]  ;;  %v2008_v41 = vld [vmem:[%s7891_s2 + $0xe0] sm:$0xff] }
 0x327   :  { %v6167_v29 = vpop.eup %6166  ;;  %v2009_v31 = vld [vmem:[%s7891_s2 + $0xe8] sm:$0xff]  ;;  %v2010_v28 = vld [vmem:[%s7891_s2 + $0xf0] sm:$0xff] }
 0x328   :  { %v5885_v58 = vpack.c.bf16 %v1975_v59, %v1974_v19  ;;  %v1769_v50 = vmul.f32 %v6167_v29, %v1721_v60  ;;  %v1864_v63 = vmul.f32 %v7023_v20, %v1768_v18  ;;  %v7911_v20 = vld [vmem:[#allocation5_spill] sm:$0xff]  ;;  %v4908_v19 = vld [vmem:[%s7892_s7 + $0x8] sm:$0xff] }
 0x329   :  { %v2011_v60 = vld [vmem:[%s7891_s2 + $0xf8] sm:$0xff]  ;;  %5655 = vmatprep.subr.mxu0 %v4908_v19 }
 0x32a   :  { %5886 = vmatprep.subr.bf16.mxu1 %v5885_v58  ;;  %v1865_v51 = vmul.f32 %v7021_v1, %v1769_v50  ;;  %v1960_v14 = vadd.f32 %v7027_v22, %v1864_v63  ;;  %v1941_v22 = vpop.permute.xlu1 %1940  ;;  %5656 = vmatpush3.msra.mxu0 %v4908_v19  ;;  %v4918_v59 = vld [vmem:[%s7892_s7 + $0x18] sm:$0xff] }
 0x32b   :  { %5888 = vmatpush3.bf16.msra.mxu1 %v5885_v58  ;;  %5669 = vmatprep.subr.mxu0 %v4918_v59 }
 0x32c   :  { %v1961_v25 = vadd.f32 %v7908_v62, %v1865_v51  ;;  %v1976_v48 = vmax.f32 %v1960_v14, 0.0 }
 0x32d   :  { %v6169_v61 = vpop.eup %6168 }
 0x32e   :  { %v1977_v34 = vmax.f32 %v1961_v25, 0.0  ;;  %v1771_v33 = vmul.f32 %v6169_v61, %v1723_v42  ;;  %v2237_v42 = vld [vmem:[%s7892_s7] sm:$0xff] }
 0x32f   :  { %v6171_v0 = vpop.eup %6170 }
 0x330   :  { %v1770_v38 = vmul.f32 %v6171_v0, %v1722_v21  ;;  %v5889_v43 = vpack.c.bf16 %v1977_v34, %v1976_v48  ;;  %v1867_v39 = vmul.f32 %v7911_v20, %v1771_v33 }
 0x332   :  { %v1866_v1 = vmul.f32 %v7912_v52, %v1770_v38  ;;  %5890 = vmatprep.subr.bf16.mxu1 %v5889_v43  ;;  %v1963_v8 = vadd.f32 %v1946_v5, %v1867_v39 }
 0x333   :  { %5892 = vmatpush3.bf16.msra.mxu1 %v5889_v43 }
 0x334   :  { %v1962_v11 = vadd.f32 %v1941_v22, %v1866_v1  ;;  %v1979_v57 = vmax.f32 %v1963_v8, 0.0 }
 0x336   :  { %v1978_v32 = vmax.f32 %v1962_v11, 0.0  ;;  %v4917_v11 = vld [vmem:[%s7892_s7 + $0x10] sm:$0xff] }
 0x338   :  { %v5893_v30 = vpack.c.bf16 %v1979_v57, %v1978_v32 }
 0x33a   :  { %5894 = vmatprep.subr.bf16.mxu1 %v5893_v30 }
 0x33b   :  { %5896 = vmatpush3.bf16.msra.mxu1 %v5893_v30 }
 0x33e   :  { %5608 = vmatmul.mubr.f32.vlgmr.msra.gmra.mrb[16].mxu1 %v1981_v45 }
 0x33f   :  { %5610 = vmatprep.mubr.f32.mxu1 %v1982_v55 }
 0x342   :  { %5611 = vmatmul.mubr.f32.gmra.mrb[18].mxu1 %v1983_v40 }
 0x343   :  { %5613 = vmatprep.mubr.f32.mxu1 %v1984_v37 }
 0x346   :  { %5614 = vmatmul.mubr.f32.gmra.mrb[20].mxu1 %v1985_v12 }
 0x347   :  { %5616 = vmatprep.mubr.f32.mxu1 %v1986_v53 }
 0x34a   :  { %5617 = vmatmul.mubr.f32.gmra.mrb[22].mxu1 %v1987_v13 }
 0x34b   :  { %5619 = vmatprep.mubr.f32.mxu1 %v1988_v47 }
 0x34e   :  { %5620 = vmatmul.mubr.f32.gmra.mrb[24].mxu1 %v1989_v44 }
 0x34f   :  { %5622 = vmatprep.mubr.f32.mxu1 %v1990_v2 }
 0x352   :  { %5623 = vmatmul.mubr.f32.gmra.mrb[26].mxu1 %v1991_v46 }
 0x353   :  { %5625 = vmatprep.mubr.f32.mxu1 %v1992_v27 }
 0x356   :  { %5626 = vmatmul.mubr.f32.gmra.mrb[28].mxu1 %v1993_v56 }
 0x357   :  { %5628 = vmatprep.mubr.f32.mxu1 %v1994_v36 }
 0x35a   :  { %5629 = vmatmul.mubr.f32.gmra.mrb[30].mxu1 %v1995_v49 }
 0x35b   :  { %5631 = vmatprep.mubr.f32.mxu1 %v1996_v6 }
 0x35e   :  { %5632 = vmatmul.mubr.f32.gmra.mrb[32].mxu1 %v1997_v24 }
 0x35f   :  { %5634 = vmatprep.mubr.f32.mxu1 %v1998_v17 }
 0x362   :  { %5635 = vmatmul.mubr.f32.gmra.mrb[34].mxu1 %v1999_v26 }
 0x363   :  { %5637 = vmatprep.mubr.f32.mxu1 %v2000_v7 }
 0x366   :  { %5638 = vmatmul.mubr.f32.gmra.mrb[36].mxu1 %v2001_v4 }
 0x367   :  { %5640 = vmatprep.mubr.f32.mxu1 %v2002_v35 }
 0x36a   :  { %5641 = vmatmul.mubr.f32.gmra.mrb[38].mxu1 %v2003_v54 }
 0x36b   :  { %5643 = vmatprep.mubr.f32.mxu1 %v2004_v16 }
 0x36e   :  { %5644 = vmatmul.mubr.f32.gmra.mrb[40].mxu1 %v2005_v3 }
 0x36f   :  { %5646 = vmatprep.mubr.f32.mxu1 %v2006_v10 }
 0x372   :  { %5647 = vmatmul.mubr.f32.gmra.mrb[42].mxu1 %v2007_v23 }
 0x373   :  { %5649 = vmatprep.mubr.f32.mxu1 %v2008_v41 }
 0x376   :  { %5650 = vmatmul.mubr.f32.gmra.mrb[44].mxu1 %v2009_v31 }
 0x377   :  { %5652 = vmatprep.mubr.f32.mxu1 %v2010_v28 }
 0x37a   :  { %5653 = vmatmul.mubr.f32.gmra.mrb[46].mxu1 %v2011_v60 }
 0x411   :  { %v5609_v18 = vpop.f32.mrb[16].mxu1 }
 0x412   :  { %v2078_v29 = vpop.f32.mrb[17].mxu1 }
 0x415   :  { %v5612_v58 = vpop.f32.mrb[18].mxu1 }
 0x416   :  { %v2088_v50 = vpop.f32.mrb[19].mxu1 }
 0x419   :  { %v5615_v63 = vpop.f32.mrb[20].mxu1 }
 0x41a   :  { %v2098_v51 = vpop.f32.mrb[21].mxu1 }
 0x41d   :  { %v5618_v14 = vpop.f32.mrb[22].mxu1 }
 0x41e   :  { %v2108_v62 = vpop.f32.mrb[23].mxu1 }
 0x421   :  { %v5621_v25 = vpop.f32.mrb[24].mxu1 }
 0x422   :  { %v2118_v15 = vpop.f32.mrb[25].mxu1 }
 0x423   :  { %5657 = vmatprep.mubr.msk.f32.mxu0 %vm1499_vm3, %v2118_v15  ;;  %v3669_v15 = vld [vmem:[%s7890_s11 + $0x198] sm:$0xff] }
 0x424   :  { %5658 = vmatmul.mubr.msk.f32.vlgmr.msra.gmra.mrb[78].mxu0 %vm1499_vm3, %v5621_v25  ;;  %v3671_v25 = vld [vmem:[%s7890_s11 + $0x1a8] sm:$0xff] }
 0x425   :  { %v5624_v61 = vpop.f32.mrb[26].mxu1  ;;  %5670 = vmatpush3.msra.mxu0 %v4918_v59 }
 0x426   :  { %v2128_v9 = vpop.f32.mrb[27].mxu1  ;;  %5683 = vmatprep.subr.mxu0 %v2237_v42 }
 0x427   :  { %5660 = vmatprep.mubr.msk.f32.mxu0 %vm1499_vm3, %v2128_v9  ;;  %v7352_v9 = vpop.permute.xlu1 %2912 }
 0x428   :  { %5661 = vmatmul.mubr.msk.f32.gmra.mrb[80].mxu0 %vm1499_vm3, %v5624_v61  ;;  %v7350_v61 = vpop.permute.xlu0 %2907 }
 0x429   :  { %v5627_v21 = vpop.f32.mrb[28].mxu1 }
 0x42a   :  { %v2138_v48 = vpop.f32.mrb[29].mxu1 }
 0x42b   :  { %5663 = vmatprep.mubr.msk.f32.mxu0 %vm1499_vm3, %v2138_v48  ;;  %v7356_v48 = vpop.permute.xlu1 %2955 }
 0x42c   :  { %5664 = vmatmul.mubr.msk.f32.gmra.mrb[82].mxu0 %vm1499_vm3, %v5627_v21  ;;  %v7354_v21 = vpop.permute.xlu0 %2960 }
 0x42d   :  { %v5630_v34 = vpop.f32.mrb[30].mxu1 }
 0x42e   :  { %v2148_v0 = vpop.f32.mrb[31].mxu1 }
 0x42f   :  { %5666 = vmatprep.mubr.msk.f32.mxu0 %vm1499_vm3, %v2148_v0  ;;  %v7360_v0 = vpop.permute.xlu1 %2917 }
 0x430   :  { %5667 = vmatmul.mubr.msk.f32.gmra.mrb[84].mxu0 %vm1499_vm3, %v5630_v34  ;;  %v7358_v34 = vpop.permute.xlu0 %2922 }
 0x431   :  { %v5633_v33 = vpop.f32.mrb[32].mxu1 }
 0x432   :  { %v2158_v38 = vpop.f32.mrb[33].mxu1 }
 0x435   :  { %v5636_v43 = vpop.f32.mrb[34].mxu1 }
 0x436   :  { %v2168_v20 = vpop.f32.mrb[35].mxu1 }
 0x439   :  { %v5639_v39 = vpop.f32.mrb[36].mxu1 }
 0x43a   :  { %v2178_v52 = vpop.f32.mrb[37].mxu1 }
 0x43d   :  { %v5642_v1 = vpop.f32.mrb[38].mxu1 }
 0x43e   :  { %v2188_v5 = vpop.f32.mrb[39].mxu1 }
 0x441   :  { %v5645_v22 = vpop.f32.mrb[40].mxu1 }
 0x442   :  { %v2198_v8 = vpop.f32.mrb[41].mxu1 }
 0x443   :  { %5671 = vmatprep.mubr.msk.f32.mxu0 %vm1499_vm3, %v2198_v8 }
 0x444   :  { %5672 = vmatmul.mubr.msk.f32.vlgmr.msra.gmra.mrb[78].mxu0 %vm1499_vm3, %v5645_v22 }
 0x445   :  { %v5648_v32 = vpop.f32.mrb[42].mxu1  ;;  %5684 = vmatpush3.msra.mxu0 %v2237_v42  ;;  %v3009_v42 = vld [vmem:[%s7893_s3] sm:$0xff] }
 0x446   :  { %v2208_v57 = vpop.f32.mrb[43].mxu1  ;;  %5697 = vmatprep.subr.mxu0 %v4917_v11  ;;  %5727 = vmatprep.mubr.msk.f32.mxu1 %vm3025_vm5, %v3009_v42 }
 0x447   :  { %5674 = vmatprep.mubr.msk.f32.mxu0 %vm1499_vm3, %v2208_v57 }
 0x448   :  { %5675 = vmatmul.mubr.msk.f32.gmra.mrb[80].mxu0 %vm1499_vm3, %v5648_v32 }
 0x449   :  { %v5651_v30 = vpop.f32.mrb[44].mxu1 }
 0x44a   :  { %v2218_v45 = vpop.f32.mrb[45].mxu1 }
 0x44b   :  { %5677 = vmatprep.mubr.msk.f32.mxu0 %vm1499_vm3, %v2218_v45 }
 0x44c   :  { %5678 = vmatmul.mubr.msk.f32.gmra.mrb[82].mxu0 %vm1499_vm3, %v5651_v30 }
 0x44d   :  { %v5654_v55 = vpop.f32.mrb[46].mxu1 }
 0x44e   :  { %v2228_v40 = vpop.f32.mrb[47].mxu1 }
 0x44f   :  { %5680 = vmatprep.mubr.msk.f32.mxu0 %vm1499_vm3, %v2228_v40 }
 0x450   :  { %5681 = vmatmul.mubr.msk.f32.gmra.mrb[84].mxu0 %vm1499_vm3, %v5654_v55 }
 0x451   :  { %5685 = vmatprep.mubr.msk.f32.mxu0 %vm1499_vm3, %v2078_v29 }
 0x454   :  { %5686 = vmatmul.mubr.msk.f32.vlgmr.msra.gmra.mrb[78].mxu0 %vm1499_vm3, %v5609_v18 }
 0x455   :  { %5688 = vmatprep.mubr.msk.f32.mxu0 %vm1499_vm3, %v2088_v50  ;;  %5698 = vmatpush3.msra.mxu0 %v4917_v11  ;;  %v3667_v50 = vld [vmem:[%s7890_s11 + $0x188] sm:$0xff] }
 0x458   :  { %5689 = vmatmul.mubr.msk.f32.gmra.mrb[80].mxu0 %vm1499_vm3, %v5612_v58  ;;  %v2871_v58 = vld [vmem:[%s7890_s11 + $0x170] sm:$0xff] }
 0x459   :  { %5691 = vmatprep.mubr.msk.f32.mxu0 %vm1499_vm3, %v2098_v51  ;;  %v3670_v51 = vld [vmem:[%s7890_s11 + $0x1a0] sm:$0xff] }
 0x45c   :  { %5692 = vmatmul.mubr.msk.f32.gmra.mrb[82].mxu0 %vm1499_vm3, %v5615_v63  ;;  %v2872_v63 = vld [vmem:[%s7890_s11 + $0x178] sm:$0xff] }
 0x45d   :  { %5694 = vmatprep.mubr.msk.f32.mxu0 %vm1499_vm3, %v2108_v62  ;;  %v3668_v62 = vld [vmem:[%s7890_s11 + $0x190] sm:$0xff] }
 0x460   :  { %5695 = vmatmul.mubr.msk.f32.gmra.mrb[84].mxu0 %vm1499_vm3, %v5618_v14  ;;  %v3666_v14 = vld [vmem:[%s7890_s11 + $0x180] sm:$0xff] }
 0x461   :  { %5699 = vmatprep.mubr.msk.f32.mxu0 %vm1499_vm3, %v2158_v38  ;;  %v7364_v38 = vpop.permute.xlu1 %2965 }
 0x464   :  { %5700 = vmatmul.mubr.msk.f32.vlgmr.msra.gmra.mrb[78].mxu0 %vm1499_vm3, %v5633_v33  ;;  %v7362_v33 = vpop.permute.xlu0 %2970 }
 0x465   :  { %5702 = vmatprep.mubr.msk.f32.mxu0 %vm1499_vm3, %v2168_v20  ;;  %v7368_v20 = vpop.permute.xlu1 %2927 }
 0x468   :  { %5703 = vmatmul.mubr.msk.f32.gmra.mrb[80].mxu0 %vm1499_vm3, %v5636_v43  ;;  %v7366_v43 = vpop.permute.xlu0 %2932 }
 0x469   :  { %5705 = vmatprep.mubr.msk.f32.mxu0 %vm1499_vm3, %v2178_v52  ;;  %v7372_v52 = vpop.permute.xlu1 %2975 }
 0x46c   :  { %5706 = vmatmul.mubr.msk.f32.gmra.mrb[82].mxu0 %vm1499_vm3, %v5639_v39  ;;  %v7370_v39 = vpop.permute.xlu0 %2980 }
 0x46d   :  { %5708 = vmatprep.mubr.msk.f32.mxu0 %vm1499_vm3, %v2188_v5  ;;  %v7376_v5 = vpop.permute.xlu1 %2937 }
 0x470   :  { %5709 = vmatmul.mubr.msk.f32.gmra.mrb[84].mxu0 %vm1499_vm3, %v5642_v1  ;;  %v7374_v1 = vpop.permute.xlu0 %2942 }
 0x537   :  { %v7266_v37 = vpop.f32.mrb[78].mxu0 }
 0x538   :  { %v7268_v12 = vpop.f32.mrb[79].mxu0  ;;  %v2772_v53 = vsel %vm2768_vm4, %v7266_v37, 0.0  ;;  %v2802_v44 = vmul.f32 %v7266_v37, %v7266_v37 }
 0x539   :  { %2773 = vadd.xlane.f32.xlu0 %v2772_v53  ;;  %v2769_v13 = vsel %vm2768_vm4, %v7268_v12, 0.0  ;;  %v2801_v47 = vmul.f32 %v7268_v12, %v7268_v12 }
 0x53a   :  { %2770 = vadd.xlane.f32.xlu1 %v2769_v13  ;;  %v2812_v56 = vsel %vm2768_vm4, %v2802_v44, 0.0 }
 0x53b   :  { %v7278_v2 = vpop.f32.mrb[80].mxu0  ;;  %v2809_v46 = vsel %vm2768_vm4, %v2801_v47, 0.0 }
 0x53c   :  { %v7281_v27 = vpop.f32.mrb[81].mxu0  ;;  %v2778_v17 = vsel %vm2768_vm4, %v7278_v2, 0.0  ;;  %v2804_v26 = vmul.f32 %v7278_v2, %v7278_v2 }
 0x53d   :  { %2810 = vadd.xlane.f32.xlu0 %v2809_v46  ;;  %v2775_v6 = vsel %vm2768_vm4, %v7281_v27, 0.0  ;;  %v2803_v24 = vmul.f32 %v7281_v27, %v7281_v27 }
 0x53e   :  { %2813 = vadd.xlane.f32.xlu1 %v2812_v56  ;;  %v2818_v54 = vsel %vm2768_vm4, %v2804_v26, 0.0 }
 0x53f   :  { %v7284_v36 = vpop.f32.mrb[82].mxu0  ;;  %v2815_v35 = vsel %vm2768_vm4, %v2803_v24, 0.0 }
 0x540   :  { %v7286_v49 = vpop.f32.mrb[83].mxu0  ;;  %v2784_v10 = vsel %vm2768_vm4, %v7284_v36, 0.0  ;;  %v2806_v23 = vmul.f32 %v7284_v36, %v7284_v36 }
 0x541   :  { %2776 = vadd.xlane.f32.xlu0 %v2775_v6  ;;  %v2781_v16 = vsel %vm2768_vm4, %v7286_v49, 0.0  ;;  %v2805_v3 = vmul.f32 %v7286_v49, %v7286_v49 }
 0x542   :  { %2779 = vadd.xlane.f32.xlu1 %v2778_v17  ;;  %v2824_v31 = vsel %vm2768_vm4, %v2806_v23, 0.0 }
 0x543   :  { %v7296_v7 = vpop.f32.mrb[84].mxu0  ;;  %v2821_v41 = vsel %vm2768_vm4, %v2805_v3, 0.0 }
 0x544   :  { %v7298_v4 = vpop.f32.mrb[85].mxu0  ;;  %v2808_v19 = vmul.f32 %v7296_v7, %v7296_v7  ;;  %v2790_v59 = vsel %vm2768_vm4, %v7296_v7, 0.0 }
 0x545   :  { %2816 = vadd.xlane.f32.xlu0 %v2815_v35  ;;  %v2787_v28 = vsel %vm2768_vm4, %v7298_v4, 0.0  ;;  %v2807_v60 = vmul.f32 %v7298_v4, %v7298_v4 }
 0x546   :  { %2819 = vadd.xlane.f32.xlu1 %v2818_v54  ;;  %v2830_v29 = vsel %vm2768_vm4, %v2808_v19, 0.0 }
 0x547   :  { %v2827_v18 = vsel %vm2768_vm4, %v2807_v60, 0.0 }
 0x549   :  { %2782 = vadd.xlane.f32.xlu0 %v2781_v16 }
 0x54a   :  { %2785 = vadd.xlane.f32.xlu1 %v2784_v10 }
 0x54d   :  { %2822 = vadd.xlane.f32.xlu0 %v2821_v41 }
 0x54e   :  { %2825 = vadd.xlane.f32.xlu1 %v2824_v31 }
 0x551   :  { %2788 = vadd.xlane.f32.xlu0 %v2787_v28 }
 0x552   :  { %2791 = vadd.xlane.f32.xlu1 %v2790_v59 }
 0x555   :  { %2828 = vadd.xlane.f32.xlu0 %v2827_v18 }
 0x556   :  { %2831 = vadd.xlane.f32.xlu1 %v2830_v29 }
 0x567   :  { %2985 = vperm.xlu1 %6139, %v2871_v58  }
 0x56b   :  { %3697 = vperm.xlu1 %6139, %v3667_v50   ;;  %2990 = vperm.xlu0 %6138, %v2872_v63  }
 0x56f   :  { %3716 = vperm.xlu1 %6139, %v3670_v51   ;;  %3692 = vperm.xlu0 %6138, %v3666_v14  }
 0x573   :  { %3702 = vperm.xlu1 %6139, %v3668_v62   ;;  %3721 = vperm.xlu0 %6138, %v3671_v25  }
 0x577   :  { %3707 = vperm.xlu0 %6138, %v3669_v15  }
 0x5c6   :  { %v2774_v22 = vpop.xlane.xlu0 %2773 }
 0x5c7   :  { %v2771_v8 = vpop.xlane.xlu1 %2770  ;;  %v2794_v11 = vmul.f32 0.0625, %v2774_v22 }
 0x5c8   :  { %v2793_v32 = vmul.f32 0.0625, %v2771_v8 }
 0x5c9   :  { %v2842_v40 = vmul.f32 %v2794_v11, %v2794_v11  ;;  %v2874_v63 = vsub.f32 %v7266_v37, %v2794_v11 }
 0x5ca   :  { %v2841_v57 = vmul.f32 %v2793_v32, %v2793_v32  ;;  %v2811_v30 = vpop.xlane.xlu0 %2810  ;;  %v2873_v29 = vsub.f32 %v7268_v12, %v2793_v32 }
 0x5cb   :  { %v2833_v45 = vmul.f32 0.0625, %v2811_v30  ;;  %v2814_v55 = vpop.xlane.xlu1 %2813 }
 0x5cc   :  { %v2834_v53 = vmul.f32 0.0625, %v2814_v55 }
 0x5cd   :  { %v2849_v13 = vsub.f32 %v2833_v45, %v2841_v57 }
 0x5ce   :  { %v2850_v47 = vsub.f32 %v2834_v53, %v2842_v40  ;;  %v2777_v44 = vpop.xlane.xlu0 %2776 }
 0x5cf   :  { %v2881_v46 = vadd.f32 1e-05, %v2849_v13  ;;  %v2795_v56 = vmul.f32 0.0625, %v2777_v44  ;;  %v2780_v6 = vpop.xlane.xlu1 %2779 }
 0x5d0   :  { %v2882_v24 = vadd.f32 1e-05, %v2850_v47  ;;  %v2796_v17 = vmul.f32 0.0625, %v2780_v6 }
 0x5d1   :  { %6172 = vrsqrt.f32 %v2881_v46  ;;  %v2843_v35 = vmul.f32 %v2795_v56, %v2795_v56  ;;  %v2875_v44 = vsub.f32 %v7281_v27, %v2795_v56 }
 0x5d2   :  { %6174 = vrsqrt.f32 %v2882_v24  ;;  %v2817_v26 = vpop.xlane.xlu0 %2816  ;;  %v2844_v3 = vmul.f32 %v2796_v17, %v2796_v17 }
 0x5d3   :  { %v2835_v54 = vmul.f32 0.0625, %v2817_v26  ;;  %v2820_v16 = vpop.xlane.xlu1 %2819 }
 0x5d4   :  { %v2836_v10 = vmul.f32 0.0625, %v2820_v16 }
 0x5d5   :  { %v2851_v23 = vsub.f32 %v2835_v54, %v2843_v35 }
 0x5d6   :  { %v2852_v41 = vsub.f32 %v2836_v10, %v2844_v3  ;;  %v2783_v31 = vpop.xlane.xlu0 %2782 }
 0x5d7   :  { %v2883_v28 = vadd.f32 1e-05, %v2851_v23  ;;  %v7378_v60 = vmul.f32 0.0625, %v2783_v31  ;;  %v2786_v19 = vpop.xlane.xlu1 %2785 }
 0x5d8   :  { %v2884_v59 = vadd.f32 1e-05, %v2852_v41  ;;  %v7380_v18 = vmul.f32 0.0625, %v2786_v19 }
 0x5d9   :  { %6176 = vrsqrt.f32 %v2883_v28  ;;  %v2845_v51 = vmul.f32 %v7378_v60, %v7378_v60 }
 0x5da   :  { %6178 = vrsqrt.f32 %v2884_v59  ;;  %v2823_v58 = vpop.xlane.xlu0 %2822  ;;  %v2846_v15 = vmul.f32 %v7380_v18, %v7380_v18  ;;  %v2877_v59 = vsub.f32 %v7286_v49, %v7378_v60 }
 0x5db   :  { %v6173_v50 = vpop.eup %6172  ;;  %v2837_v14 = vmul.f32 0.0625, %v2823_v58  ;;  %v2826_v62 = vpop.xlane.xlu1 %2825 }
 0x5dc   :  { %v6175_v25 = vpop.eup %6174  ;;  %v2838_v42 = vmul.f32 0.0625, %v2826_v62  ;;  %v2897_v22 = vmul.f32 %v6173_v50, %v2873_v29 }
 0x5dd   :  { %v2853_v8 = vsub.f32 %v2837_v14, %v2845_v51  ;;  %v2898_v57 = vmul.f32 %v6175_v25, %v2874_v63 }
 0x5de   :  { %v2854_v30 = vsub.f32 %v2838_v42, %v2846_v15  ;;  %v2789_v12 = vpop.xlane.xlu0 %2788  ;;  %v2945_v32 = vmul.f32 %v7350_v61, %v2897_v22  ;;  %v2876_v61 = vsub.f32 %v7278_v2, %v2796_v17 }
 0x5df   :  { %v2885_v45 = vadd.f32 1e-05, %v2853_v8  ;;  %v2799_v55 = vmul.f32 0.0625, %v2789_v12  ;;  %v2792_v37 = vpop.xlane.xlu1 %2791  ;;  %v2946_v11 = vmul.f32 %v7352_v9, %v2898_v57 }
 0x5e0   :  { %v2886_v40 = vadd.f32 1e-05, %v2854_v30  ;;  %v2800_v53 = vmul.f32 0.0625, %v2792_v37  ;;  %v2993_v13 = vadd.f32 %v7356_v48, %v2945_v32  ;;  %v3014_v37 = vld [vmem:[%s7893_s3 + $0x28] sm:$0xff] }
 0x5e1   :  { %6180 = vrsqrt.f32 %v2885_v45  ;;  %v2994_v47 = vadd.f32 %v7354_v21, %v2946_v11  ;;  %v2847_v26 = vmul.f32 %v2799_v55, %v2799_v55  ;;  %v2879_v60 = vsub.f32 %v7298_v4, %v2799_v55  ;;  %v3013_v55 = vld [vmem:[%s7893_s3 + $0x20] sm:$0xff]  ;;  %v3015_v11 = vld [vmem:[%s7893_s3 + $0x30] sm:$0xff] }
 0x5e2   :  { %6182 = vrsqrt.f32 %v2886_v40  ;;  %v2829_v46 = vpop.xlane.xlu0 %2828  ;;  %v3001_v6 = vmax.f32 %v2993_v13, 0.0  ;;  %v2848_v3 = vmul.f32 %v2800_v53, %v2800_v53  ;;  %v3016_v40 = vld [vmem:[%s7893_s3 + $0x38] sm:$0xff]  ;;  %v3018_v13 = vld [vmem:[%s7893_s3 + $0x48] sm:$0xff] }
 0x5e3   :  { %v6177_v24 = vpop.eup %6176  ;;  %v2839_v35 = vmul.f32 0.0625, %v2829_v46  ;;  %v2832_v54 = vpop.xlane.xlu1 %2831  ;;  %v3002_v16 = vmax.f32 %v2994_v47, 0.0  ;;  %v3019_v47 = vld [vmem:[%s7893_s3 + $0x50] sm:$0xff]  ;;  %v3021_v46 = vld [vmem:[%s7893_s3 + $0x60] sm:$0xff] }
 0x5e4   :  { %v6179_v9 = vpop.eup %6178  ;;  %v2840_v10 = vmul.f32 0.0625, %v2832_v54  ;;  %v2899_v23 = vmul.f32 %v6177_v24, %v2875_v44  ;;  %v3020_v44 = vld [vmem:[%s7893_s3 + $0x58] sm:$0xff]  ;;  %v3023_v24 = vld [vmem:[%s7893_s3 + $0x70] sm:$0xff] }
 0x5e5   :  { %v2855_v48 = vsub.f32 %v2839_v35, %v2847_v26  ;;  %v5897_v41 = vpack.c.bf16 %v3002_v16, %v3001_v6  ;;  %v2900_v31 = vmul.f32 %v6179_v9, %v2876_v61  ;;  %v3022_v6 = vld [vmem:[%s7893_s3 + $0x68] sm:$0xff]  ;;  %v3024_v61 = vld [vmem:[%s7893_s3 + $0x78] sm:$0xff]  ;;  %v4959_v26 = vld [vmem:[%s7894_s8 + $0x10] sm:$0xff] }
 0x5e6   :  { %v2856_v21 = vsub.f32 %v2840_v10, %v2848_v3  ;;  %v2947_v27 = vmul.f32 %v7360_v0, %v2899_v23  ;;  %v2878_v0 = vsub.f32 %v7284_v36, %v7380_v18  ;;  %v2880_v36 = vsub.f32 %v7296_v7, %v2800_v53  ;;  %v3010_v7 = vld [vmem:[%s7893_s3 + $0x8] sm:$0xff]  ;;  %v3017_v53 = vld [vmem:[%s7893_s3 + $0x40] sm:$0xff]  ;;  %v4960_v35 = vld [vmem:[%s7894_s8 + $0x18] sm:$0xff] }
 0x5e7   :  { %v2887_v56 = vadd.f32 1e-05, %v2855_v48  ;;  %5898 = vmatprep.subr.bf16.mxu1 %v5897_v41  ;;  %v2948_v28 = vmul.f32 %v7358_v34, %v2900_v31  ;;  %v2986_v30 = vpop.permute.xlu1 %2985  ;;  %v5913_v54 = vpack.c.bf16 %v4960_v35, %v4959_v26  ;;  %v4967_v16 = vld [vmem:[%s7894_s8 + $0x30] sm:$0xff]  ;;  %v4968_v9 = vld [vmem:[%s7894_s8 + $0x38] sm:$0xff]  ;;  %v3219_v31 = vld [vmem:[%s7894_s8] sm:$0xff] }
 0x5e8   :  { %v2888_v19 = vadd.f32 1e-05, %v2856_v21  ;;  %5900 = vmatpush3.bf16.msra.mxu1 %v5897_v41  ;;  %v2995_v2 = vadd.f32 %v7364_v38, %v2947_v27  ;;  %v5917_v3 = vpack.c.bf16 %v4968_v9, %v4967_v16  ;;  %v3220_v21 = vld [vmem:[%s7894_s8 + $0x8] sm:$0xff] }
 0x5e9   :  { %6184 = vrsqrt.f32 %v2887_v56  ;;  %v2996_v17 = vadd.f32 %v7362_v33, %v2948_v28  ;;  %5914 = vmatprep.subr.bf16.mxu0 %v5913_v54  ;;  %v5921_v28 = vpack.c.bf16 %v3220_v21, %v3219_v31 }
 0x5ea   :  { %6186 = vrsqrt.f32 %v2888_v19  ;;  %v3003_v29 = vmax.f32 %v2995_v2, 0.0  ;;  %v2991_v12 = vpop.permute.xlu0 %2990  ;;  %5916 = vmatpush3.bf16.msra.mxu0 %v5913_v54 }
 0x5eb   :  { %v6181_v58 = vpop.eup %6180  ;;  %v3004_v50 = vmax.f32 %v2996_v17, 0.0  ;;  %5918 = vmatprep.subr.bf16.mxu0 %v5917_v3 }
 0x5ec   :  { %v6183_v63 = vpop.eup %6182  ;;  %v2901_v51 = vmul.f32 %v6181_v58, %v2877_v59 }
 0x5ed   :  { %v5901_v34 = vpack.c.bf16 %v3004_v50, %v3003_v29  ;;  %v2902_v14 = vmul.f32 %v6183_v63, %v2878_v0  ;;  %v4965_v0 = vld [vmem:[%s7894_s8 + $0x20] sm:$0xff]  ;;  %v4966_v50 = vld [vmem:[%s7894_s8 + $0x28] sm:$0xff] }
 0x5ee   :  { %v2949_v62 = vmul.f32 %v7368_v20, %v2901_v51 }
 0x5ef   :  { %5902 = vmatprep.subr.bf16.mxu1 %v5901_v34  ;;  %v2950_v38 = vmul.f32 %v7366_v43, %v2902_v14 }
 0x5f0   :  { %5904 = vmatpush3.bf16.msra.mxu1 %v5901_v34  ;;  %v2997_v33 = vadd.f32 %v7372_v52, %v2949_v62  ;;  %v5925_v34 = vpack.c.bf16 %v4966_v50, %v4965_v0 }
 0x5f1   :  { %v2998_v49 = vadd.f32 %v7370_v39, %v2950_v38 }
 0x5f2   :  { %v3005_v25 = vmax.f32 %v2997_v33, 0.0 }
 0x5f3   :  { %v6185_v15 = vpop.eup %6184  ;;  %v3006_v18 = vmax.f32 %v2998_v49, 0.0 }
 0x5f4   :  { %v6187_v42 = vpop.eup %6186  ;;  %v2903_v22 = vmul.f32 %v6185_v15, %v2879_v60 }
 0x5f5   :  { %v2904_v8 = vmul.f32 %v6187_v42, %v2880_v36  ;;  %v5905_v57 = vpack.c.bf16 %v3006_v18, %v3005_v25 }
 0x5f6   :  { %v2951_v20 = vmul.f32 %v7376_v5, %v2903_v22  ;;  %v3011_v5 = vld [vmem:[%s7893_s3 + $0x10] sm:$0xff] }
 0x5f7   :  { %v2952_v43 = vmul.f32 %v7374_v1, %v2904_v8  ;;  %5906 = vmatprep.subr.bf16.mxu1 %v5905_v57  ;;  %v3012_v1 = vld [vmem:[%s7893_s3 + $0x18] sm:$0xff] }
 0x5f8   :  { %v2999_v52 = vadd.f32 %v2986_v30, %v2951_v20  ;;  %5908 = vmatpush3.bf16.msra.mxu1 %v5905_v57 }
 0x5f9   :  { %v3000_v39 = vadd.f32 %v2991_v12, %v2952_v43  ;;  %v3672_v12 = vld [vmem:[%s7890_s11 + $0x1b0] sm:$0xff] }
 0x5fa   :  { %v3007_v4 = vmax.f32 %v2999_v52, 0.0 }
 0x5fb   :  { %v3008_v32 = vmax.f32 %v3000_v39, 0.0  ;;  %v4247_v39 = vld [vmem:[%s7890_s11 + $0x1c8] sm:$0xff] }
 0x5fd   :  { %v5909_v45 = vpack.c.bf16 %v3008_v32, %v3007_v4  ;;  %v3673_v4 = vld [vmem:[%s7890_s11 + $0x1b8] sm:$0xff]  ;;  %v4246_v32 = vld [vmem:[%s7890_s11 + $0x1c0] sm:$0xff] }
 0x5ff   :  { %5910 = vmatprep.subr.bf16.mxu1 %v5909_v45 }
 0x600   :  { %5912 = vmatpush3.bf16.msra.mxu1 %v5909_v45  ;;  %v3742_v45 = vld [vmem:[%s7895_s4] sm:$0xff] }
 0x603   :  { %5728 = vmatmul.mubr.msk.f32.vlgmr.msra.gmra.mrb[48].mxu1 %vm3025_vm5, %v3010_v7  ;;  %v4989_v7 = vld [vmem:[%s7896_s9 + $0x20] sm:$0xff] }
 0x604   :  { %5730 = vmatprep.mubr.msk.f32.mxu1 %vm3025_vm5, %v3011_v5  ;;  %v4990_v5 = vld [vmem:[%s7896_s9 + $0x28] sm:$0xff] }
 0x607   :  { %5731 = vmatmul.mubr.msk.f32.gmra.mrb[50].mxu1 %vm3025_vm5, %v3012_v1  ;;  %v5937_v1 = vpack.c.bf16 %v4990_v5, %v4989_v7 }
 0x608   :  { %5733 = vmatprep.mubr.msk.f32.mxu1 %vm3025_vm5, %v3013_v55  ;;  %v3693_v55 = vpop.permute.xlu0 %3692 }
 0x60b   :  { %5734 = vmatmul.mubr.msk.f32.gmra.mrb[52].mxu1 %vm3025_vm5, %v3014_v37  ;;  %v3698_v37 = vpop.permute.xlu1 %3697 }
 0x60c   :  { %5736 = vmatprep.mubr.msk.f32.mxu1 %vm3025_vm5, %v3015_v11  ;;  %v3722_v11 = vpop.permute.xlu0 %3721 }
 0x60f   :  { %5737 = vmatmul.mubr.msk.f32.gmra.mrb[54].mxu1 %vm3025_vm5, %v3016_v40  ;;  %v3717_v40 = vpop.permute.xlu1 %3716 }
 0x610   :  { %5739 = vmatprep.mubr.msk.f32.mxu1 %vm3025_vm5, %v3017_v53  ;;  %v3708_v53 = vpop.permute.xlu0 %3707 }
 0x613   :  { %5740 = vmatmul.mubr.msk.f32.gmra.mrb[56].mxu1 %vm3025_vm5, %v3018_v13  ;;  %v3703_v13 = vpop.permute.xlu1 %3702 }
 0x614   :  { %5742 = vmatprep.mubr.msk.f32.mxu1 %vm3025_vm5, %v3019_v47 }
 0x617   :  { %5743 = vmatmul.mubr.msk.f32.gmra.mrb[58].mxu1 %vm3025_vm5, %v3020_v44 }
 0x618   :  { %5745 = vmatprep.mubr.msk.f32.mxu1 %vm3025_vm5, %v3021_v46 }
 0x61b   :  { %5746 = vmatmul.mubr.msk.f32.gmra.mrb[60].mxu1 %vm3025_vm5, %v3022_v6 }
 0x61c   :  { %5748 = vmatprep.mubr.msk.f32.mxu1 %vm3025_vm5, %v3023_v24 }
 0x61f   :  { %5749 = vmatmul.mubr.msk.f32.gmra.mrb[62].mxu1 %vm3025_vm5, %v3024_v61 }
 0x620   :  { %5799 = vmatprep.mubr.msk.f32.mxu1 %vm109_vm0, %v3742_v45 }
 0x6d6   :  { %v5729_v10 = vpop.f32.mrb[48].mxu1 }
 0x6d7   :  { %v3140_v23 = vpop.f32.mrb[49].mxu1 }
 0x6da   :  { %v5732_v48 = vpop.f32.mrb[50].mxu1 }
 0x6db   :  { %v3150_v41 = vpop.f32.mrb[51].mxu1 }
 0x6de   :  { %v5735_v27 = vpop.f32.mrb[52].mxu1 }
 0x6df   :  { %v3160_v56 = vpop.f32.mrb[53].mxu1 }
 0x6e0   :  { %5755 = vmatprep.mubr.msk.f32.mxu0 %vm2768_vm4, %v3160_v56 }
 0x6e1   :  { %5756 = vmatmul.mubr.msk.f32.vlgmr.msra.gmra.mrb[86].mxu0 %vm2768_vm4, %v5735_v27 }
 0x6e2   :  { %v5738_v19 = vpop.f32.mrb[54].mxu1  ;;  %5920 = vmatpush3.bf16.msra.mxu0 %v5917_v3 }
 0x6e3   :  { %v3170_v2 = vpop.f32.mrb[55].mxu1  ;;  %5922 = vmatprep.subr.bf16.mxu0 %v5921_v28 }
 0x6e4   :  { %5758 = vmatprep.mubr.msk.f32.mxu0 %vm2768_vm4, %v3170_v2 }
 0x6e5   :  { %5759 = vmatmul.mubr.msk.f32.gmra.mrb[88].mxu0 %vm2768_vm4, %v5738_v19 }
 0x6e6   :  { %v5741_v17 = vpop.f32.mrb[56].mxu1 }
 0x6e7   :  { %v3180_v59 = vpop.f32.mrb[57].mxu1 }
 0x6ea   :  { %v5744_v29 = vpop.f32.mrb[58].mxu1 }
 0x6eb   :  { %v3190_v58 = vpop.f32.mrb[59].mxu1 }
 0x6ee   :  { %v5747_v63 = vpop.f32.mrb[60].mxu1 }
 0x6ef   :  { %v3200_v51 = vpop.f32.mrb[61].mxu1 }
 0x6f0   :  { %5765 = vmatprep.mubr.msk.f32.mxu0 %vm2768_vm4, %v3200_v51 }
 0x6f1   :  { %5766 = vmatmul.mubr.msk.f32.vlgmr.msra.gmra.mrb[86].mxu0 %vm2768_vm4, %v5747_v63 }
 0x6f2   :  { %v5750_v14 = vpop.f32.mrb[62].mxu1  ;;  %5924 = vmatpush3.bf16.msra.mxu0 %v5921_v28 }
 0x6f3   :  { %v3210_v62 = vpop.f32.mrb[63].mxu1  ;;  %5926 = vmatprep.subr.bf16.mxu0 %v5925_v34 }
 0x6f4   :  { %5768 = vmatprep.mubr.msk.f32.mxu0 %vm2768_vm4, %v3210_v62 }
 0x6f5   :  { %5769 = vmatmul.mubr.msk.f32.gmra.mrb[88].mxu0 %vm2768_vm4, %v5750_v14 }
 0x6f6   :  { %5775 = vmatprep.mubr.msk.f32.mxu0 %vm2768_vm4, %v3140_v23 }
 0x6f9   :  { %5776 = vmatmul.mubr.msk.f32.vlgmr.msra.gmra.mrb[86].mxu0 %vm2768_vm4, %v5729_v10 }
 0x6fa   :  { %5778 = vmatprep.mubr.msk.f32.mxu0 %vm2768_vm4, %v3150_v41  ;;  %5928 = vmatpush3.bf16.msra.mxu0 %v5925_v34 }
 0x6fb   :  { %5938 = vmatprep.subr.bf16.mxu0 %v5937_v1 }
 0x6fd   :  { %5779 = vmatmul.mubr.msk.f32.gmra.mrb[88].mxu0 %vm2768_vm4, %v5732_v48 }
 0x6fe   :  { %5785 = vmatprep.mubr.msk.f32.mxu0 %vm2768_vm4, %v3180_v59 }
 0x701   :  { %5786 = vmatmul.mubr.msk.f32.vlgmr.msra.gmra.mrb[86].mxu0 %vm2768_vm4, %v5741_v17 }
 0x702   :  { %5788 = vmatprep.mubr.msk.f32.mxu0 %vm2768_vm4, %v3190_v58  ;;  %5940 = vmatpush3.bf16.msra.mxu0 %v5937_v1  ;;  %v3744_v1 = vld [vmem:[%s7895_s4 + $0x10] sm:$0xff] }
 0x705   :  { %5789 = vmatmul.mubr.msk.f32.gmra.mrb[88].mxu0 %vm2768_vm4, %v5744_v29 }
 0x7d4   :  { %v7510_v38 = vpop.f32.mrb[86].mxu0 }
 0x7d5   :  { %v7512_v33 = vpop.f32.mrb[87].mxu0  ;;  %v3625_v49 = vsel %vm109_vm0, %v7510_v38, 0.0  ;;  %v3639_v60 = vmul.f32 %v7510_v38, %v7510_v38 }
 0x7d6   :  { %v3638_v25 = vmul.f32 %v7512_v33, %v7512_v33  ;;  %3626 = vadd.xlane.f32.xlu0 %v3625_v49  ;;  %v3622_v15 = vsel %vm109_vm0, %v7512_v33, 0.0 }
 0x7d7   :  { %3623 = vadd.xlane.f32.xlu1 %v3622_v15  ;;  %v3645_v22 = vsel %vm109_vm0, %v3639_v60, 0.0 }
 0x7d8   :  { %v7522_v36 = vpop.f32.mrb[88].mxu0  ;;  %v3642_v18 = vsel %vm109_vm0, %v3638_v25, 0.0 }
 0x7d9   :  { %v7525_v42 = vpop.f32.mrb[89].mxu0  ;;  %v3641_v20 = vmul.f32 %v7522_v36, %v7522_v36  ;;  %v3631_v30 = vsel %vm109_vm0, %v7522_v36, 0.0 }
 0x7da   :  { %3643 = vadd.xlane.f32.xlu0 %v3642_v18  ;;  %v3640_v8 = vmul.f32 %v7525_v42, %v7525_v42  ;;  %v3628_v57 = vsel %vm109_vm0, %v7525_v42, 0.0 }
 0x7db   :  { %3646 = vadd.xlane.f32.xlu1 %v3645_v22  ;;  %v3651_v52 = vsel %vm109_vm0, %v3641_v20, 0.0 }
 0x7dc   :  { %v3648_v43 = vsel %vm109_vm0, %v3640_v8, 0.0 }
 0x7de   :  { %3629 = vadd.xlane.f32.xlu0 %v3628_v57 }
 0x7df   :  { %3632 = vadd.xlane.f32.xlu1 %v3631_v30 }
 0x7e2   :  { %3649 = vadd.xlane.f32.xlu0 %v3648_v43 }
 0x7e3   :  { %3652 = vadd.xlane.f32.xlu1 %v3651_v52 }
 0x7f4   :  { %3726 = vperm.xlu1 %6139, %v3672_v12  }
 0x7f8   :  { %4265 = vperm.xlu1 %6139, %v4247_v39   ;;  %3731 = vperm.xlu0 %6138, %v3673_v4  }
 0x7fc   :  { %4260 = vperm.xlu0 %6138, %v4246_v32  }
 0x863   :  { %v3627_v47 = vpop.xlane.xlu0 %3626 }
 0x864   :  { %v3624_v44 = vpop.xlane.xlu1 %3623  ;;  %v3635_v46 = vmul.f32 0.03125, %v3627_v47  ;;  %v4992_v47 = vld [vmem:[%s7896_s9 + $0x38] sm:$0xff] }
 0x865   :  { %v3634_v6 = vmul.f32 0.03125, %v3624_v44 }
 0x866   :  { %v3659_v54 = vmul.f32 %v3635_v46, %v3635_v46  ;;  %v3675_v51 = vsub.f32 %v7510_v38, %v3635_v46  ;;  %v4999_v46 = vld [vmem:[%s7896_s9 + $0x60] sm:$0xff] }
 0x867   :  { %v3658_v24 = vmul.f32 %v3634_v6, %v3634_v6  ;;  %v3644_v61 = vpop.xlane.xlu0 %3643  ;;  %v3674_v50 = vsub.f32 %v7512_v33, %v3634_v6  ;;  %v5000_v6 = vld [vmem:[%s7896_s9 + $0x68] sm:$0xff] }
 0x868   :  { %v3654_v26 = vmul.f32 0.03125, %v3644_v61  ;;  %v3647_v35 = vpop.xlane.xlu1 %3646 }
 0x869   :  { %v3655_v16 = vmul.f32 0.03125, %v3647_v35  ;;  %v5001_v35 = vld [vmem:[%s7896_s9 + $0x70] sm:$0xff] }
 0x86a   :  { %v3662_v9 = vsub.f32 %v3654_v26, %v3658_v24  ;;  %v5945_v24 = vpack.c.bf16 %v5000_v6, %v4999_v46 }
 0x86b   :  { %v3663_v3 = vsub.f32 %v3655_v16, %v3659_v54  ;;  %v3630_v10 = vpop.xlane.xlu0 %3629  ;;  %v5002_v54 = vld [vmem:[%s7896_s9 + $0x78] sm:$0xff] }
 0x86c   :  { %v3678_v23 = vadd.f32 1e-05, %v3662_v9  ;;  %v3636_v48 = vmul.f32 0.03125, %v3630_v10  ;;  %v3633_v41 = vpop.xlane.xlu1 %3632  ;;  %v3879_v10 = vld [vmem:[%s7896_s9] sm:$0xff] }
 0x86d   :  { %v3679_v31 = vadd.f32 1e-05, %v3663_v3  ;;  %v3637_v21 = vmul.f32 0.03125, %v3633_v41  ;;  %v5949_v3 = vpack.c.bf16 %v5002_v54, %v5001_v35 }
 0x86e   :  { %6188 = vrsqrt.f32 %v3678_v23  ;;  %v3660_v56 = vmul.f32 %v3636_v48, %v3636_v48  ;;  %v3676_v18 = vsub.f32 %v7525_v42, %v3636_v48  ;;  %v3880_v23 = vld [vmem:[%s7896_s9 + $0x8] sm:$0xff] }
 0x86f   :  { %6190 = vrsqrt.f32 %v3679_v31  ;;  %v3650_v27 = vpop.xlane.xlu0 %3649  ;;  %v3661_v2 = vmul.f32 %v3637_v21, %v3637_v21  ;;  %v3677_v57 = vsub.f32 %v7522_v36, %v3637_v21  ;;  %v3743_v36 = vld [vmem:[%s7895_s4 + $0x8] sm:$0xff]  ;;  %v5953_v31 = vpack.c.bf16 %v3880_v23, %v3879_v10  ;;  %v3881_v21 = vld [vmem:[%s7896_s9 + $0x10] sm:$0xff]  ;;  %v5020_v10 = vld [vmem:[%s7898_s10 + $0xb8] sm:$0xff] }
 0x870   :  { %v3656_v28 = vmul.f32 0.03125, %v3650_v27  ;;  %v3653_v19 = vpop.xlane.xlu1 %3652  ;;  %v3882_v27 = vld [vmem:[%s7896_s9 + $0x18] sm:$0xff]  ;;  %v4285_v23 = vld [vmem:[%s7897_s5 + $0x8] sm:$0xff] }
 0x871   :  { %v3657_v17 = vmul.f32 0.03125, %v3653_v19  ;;  %v5957_v19 = vpack.c.bf16 %v3882_v27, %v3881_v21  ;;  %v5017_v21 = vld [vmem:[%s7898_s10 + $0xa0] sm:$0xff]  ;;  %v5019_v27 = vld [vmem:[%s7898_s10 + $0xb0] sm:$0xff] }
 0x872   :  { %v3664_v59 = vsub.f32 %v3656_v28, %v3660_v56 }
 0x873   :  { %v3665_v29 = vsub.f32 %v3657_v17, %v3661_v2  ;;  %v4995_v2 = vld [vmem:[%s7896_s9 + $0x40] sm:$0xff]  ;;  %v4996_v17 = vld [vmem:[%s7896_s9 + $0x48] sm:$0xff] }
 0x874   :  { %v3680_v58 = vadd.f32 1e-05, %v3664_v59  ;;  %v3727_v38 = vpop.permute.xlu1 %3726  ;;  %v5961_v59 = vpack.c.bf16 %v4996_v17, %v4995_v2  ;;  %v5979_v2 = vpack.c.bf16 %v5019_v27, %v5017_v21 }
 0x875   :  { %v3681_v0 = vadd.f32 1e-05, %v3665_v29  ;;  %v4997_v29 = vld [vmem:[%s7896_s9 + $0x50] sm:$0xff] }
 0x876   :  { %6192 = vrsqrt.f32 %v3680_v58  ;;  %v4998_v58 = vld [vmem:[%s7896_s9 + $0x58] sm:$0xff] }
 0x877   :  { %6194 = vrsqrt.f32 %v3681_v0  ;;  %v3732_v32 = vpop.permute.xlu0 %3731  ;;  %v5965_v0 = vpack.c.bf16 %v4998_v58, %v4997_v29  ;;  %v5023_v29 = vld [vmem:[%s7898_s10 + $0xd0] sm:$0xff]  ;;  %v5026_v58 = vld [vmem:[%s7898_s10 + $0xe8] sm:$0xff] }
 0x878   :  { %v6189_v63 = vpop.eup %6188 }
 0x879   :  { %v6191_v34 = vpop.eup %6190  ;;  %v3686_v14 = vmul.f32 %v6189_v63, %v3674_v50 }
 0x87a   :  { %v3687_v62 = vmul.f32 %v6191_v34, %v3675_v51 }
 0x87b   :  { %v3710_v49 = vmul.f32 %v3693_v55, %v3686_v14  ;;  %v3745_v55 = vld [vmem:[%s7895_s4 + $0x18] sm:$0xff] }
 0x87c   :  { %v3711_v60 = vmul.f32 %v3698_v37, %v3687_v62  ;;  %v3746_v37 = vld [vmem:[%s7895_s4 + $0x20] sm:$0xff] }
 0x87d   :  { %v3734_v25 = vadd.f32 %v3717_v40, %v3710_v49  ;;  %v3748_v40 = vld [vmem:[%s7895_s4 + $0x30] sm:$0xff] }
 0x87e   :  { %v3735_v15 = vadd.f32 %v3722_v11, %v3711_v60  ;;  %v3747_v11 = vld [vmem:[%s7895_s4 + $0x28] sm:$0xff] }
 0x87f   :  { %v3738_v22 = vmax.f32 %v3734_v25, 0.0  ;;  %v4248_v25 = vld [vmem:[%s7890_s11 + $0x1d0] sm:$0xff] }
 0x880   :  { %v6193_v8 = vpop.eup %6192  ;;  %v3739_v20 = vmax.f32 %v3735_v15, 0.0  ;;  %v4249_v15 = vld [vmem:[%s7890_s11 + $0x1d8] sm:$0xff] }
 0x881   :  { %v6195_v30 = vpop.eup %6194  ;;  %v3688_v33 = vmul.f32 %v6193_v8, %v3676_v18  ;;  %v4284_v18 = vld [vmem:[%s7897_s5] sm:$0xff]  ;;  %v4266_v8 = vpop.permute.xlu1 %4265 }
 0x882   :  { %v3689_v43 = vmul.f32 %v6195_v30, %v3677_v57  ;;  %v5929_v52 = vpack.c.bf16 %v3739_v20, %v3738_v22  ;;  %v4261_v22 = vpop.permute.xlu0 %4260 }
 0x883   :  { %v3712_v12 = vmul.f32 %v3703_v13, %v3688_v33  ;;  %v4991_v13 = vld [vmem:[%s7896_s9 + $0x30] sm:$0xff] }
 0x884   :  { %v3713_v39 = vmul.f32 %v3708_v53, %v3689_v43  ;;  %5930 = vmatprep.subr.bf16.mxu1 %v5929_v52  ;;  %v3749_v53 = vld [vmem:[%s7895_s4 + $0x38] sm:$0xff]  ;;  %v5941_v44 = vpack.c.bf16 %v4992_v47, %v4991_v13 }
 0x885   :  { %v3736_v4 = vadd.f32 %v3727_v38, %v3712_v12  ;;  %5932 = vmatpush3.bf16.msra.mxu1 %v5929_v52 }
 0x886   :  { %v3737_v45 = vadd.f32 %v3732_v32, %v3713_v39  ;;  %5942 = vmatprep.subr.bf16.mxu0 %v5941_v44 }
 0x887   :  { %v3740_v7 = vmax.f32 %v3736_v4, 0.0  ;;  %5944 = vmatpush3.bf16.msra.mxu0 %v5941_v44 }
 0x888   :  { %v3741_v5 = vmax.f32 %v3737_v45, 0.0  ;;  %5946 = vmatprep.subr.bf16.mxu0 %v5945_v24 }
 0x88a   :  { %v5933_v42 = vpack.c.bf16 %v3741_v5, %v3740_v7 }
 0x88c   :  { %5934 = vmatprep.subr.bf16.mxu1 %v5933_v42 }
 0x88d   :  { %5936 = vmatpush3.bf16.msra.mxu1 %v5933_v42 }
 0x890   :  { %5800 = vmatmul.mubr.msk.f32.vlgmr.msra.gmra.mrb[64].mxu1 %vm109_vm0, %v3743_v36 }
 0x891   :  { %5802 = vmatprep.mubr.msk.f32.mxu1 %vm109_vm0, %v3744_v1 }
 0x894   :  { %5803 = vmatmul.mubr.msk.f32.gmra.mrb[66].mxu1 %vm109_vm0, %v3745_v55 }
 0x895   :  { %5805 = vmatprep.mubr.msk.f32.mxu1 %vm109_vm0, %v3746_v37 }
 0x898   :  { %5806 = vmatmul.mubr.msk.f32.gmra.mrb[68].mxu1 %vm109_vm0, %v3747_v11 }
 0x899   :  { %5808 = vmatprep.mubr.msk.f32.mxu1 %vm109_vm0, %v3748_v40 }
 0x89c   :  { %5809 = vmatmul.mubr.msk.f32.gmra.mrb[70].mxu1 %vm109_vm0, %v3749_v53 }
 0x89d   :  { %5859 = vmatprep.mubr.msk.f32.mxu1 %vm2768_vm4, %v4284_v18  ;;  %v5048_v18 = vld [vmem:[%s7898_s10 + $0x190] sm:$0xff] }
 0x963   :  { %v5801_v61 = vpop.f32.mrb[64].mxu1 }
 0x964   :  { %v3840_v26 = vpop.f32.mrb[65].mxu1 }
 0x967   :  { %v5804_v16 = vpop.f32.mrb[66].mxu1 }
 0x968   :  { %v3850_v9 = vpop.f32.mrb[67].mxu1 }
 0x969   :  { %5819 = vmatprep.mubr.msk.f32.mxu0 %vm109_vm0, %v3850_v9  ;;  %v5015_v9 = vld [vmem:[%s7898_s10 + $0x90] sm:$0xff] }
 0x96a   :  { %5820 = vmatmul.mubr.msk.f32.vlgmr.msra.gmra.mrb[90].mxu0 %vm109_vm0, %v5804_v16  ;;  %v5013_v16 = vld [vmem:[%s7898_s10 + $0x80] sm:$0xff] }
 0x96b   :  { %5948 = vmatpush3.bf16.msra.mxu0 %v5945_v24  ;;  %v5807_v48 = vpop.f32.mrb[68].mxu1  ;;  %v5014_v24 = vld [vmem:[%s7898_s10 + $0x88] sm:$0xff] }
 0x96c   :  { %v3860_v41 = vpop.f32.mrb[69].mxu1  ;;  %5950 = vmatprep.subr.bf16.mxu0 %v5949_v3 }
 0x96f   :  { %v5810_v56 = vpop.f32.mrb[70].mxu1  ;;  %5952 = vmatpush3.bf16.msra.mxu0 %v5949_v3  ;;  %v5018_v3 = vld [vmem:[%s7898_s10 + $0xa8] sm:$0xff] }
 0x970   :  { %v3870_v28 = vpop.f32.mrb[71].mxu1  ;;  %5954 = vmatprep.subr.bf16.mxu0 %v5953_v31 }
 0x971   :  { %5830 = vmatprep.mubr.msk.f32.mxu0 %vm109_vm0, %v3870_v28  ;;  %v5024_v28 = vld [vmem:[%s7898_s10 + $0xd8] sm:$0xff] }
 0x972   :  { %5831 = vmatmul.mubr.msk.f32.vlgmr.msra.gmra.mrb[90].mxu0 %vm109_vm0, %v5810_v56  ;;  %v5022_v56 = vld [vmem:[%s7898_s10 + $0xc8] sm:$0xff] }
 0x973   :  { %5956 = vmatpush3.bf16.msra.mxu0 %v5953_v31  ;;  %5841 = vmatprep.mubr.msk.f32.mxu0 %vm109_vm0, %v3840_v26  ;;  %v5977_v31 = vpack.c.bf16 %v5020_v10, %v5018_v3  ;;  %v5981_v17 = vpack.c.bf16 %v5024_v28, %v5022_v56  ;;  %v4397_v56 = vld [vmem:[%s7898_s10 + $0x60] sm:$0xff]  ;;  %v4399_v28 = vld [vmem:[%s7898_s10 + $0x70] sm:$0xff] }
 0x974   :  { %5958 = vmatprep.subr.bf16.mxu0 %v5957_v19 }
 0x977   :  { %5960 = vmatpush3.bf16.msra.mxu0 %v5957_v19  ;;  %v4287_v19 = vld [vmem:[%s7897_s5 + $0x18] sm:$0xff] }
 0x978   :  { %5962 = vmatprep.subr.bf16.mxu0 %v5961_v59 }
 0x97a   :  { %5842 = vmatmul.mubr.msk.f32.vlgmr.msra.gmra.mrb[90].mxu0 %vm109_vm0, %v5801_v61  ;;  %v5016_v61 = vld [vmem:[%s7898_s10 + $0x98] sm:$0xff] }
 0x97b   :  { %5964 = vmatpush3.bf16.msra.mxu0 %v5961_v59  ;;  %5852 = vmatprep.mubr.msk.f32.mxu0 %vm109_vm0, %v3860_v41  ;;  %v5973_v54 = vpack.c.bf16 %v5016_v61, %v5014_v24  ;;  %v4286_v41 = vld [vmem:[%s7897_s5 + $0x10] sm:$0xff]  ;;  %v5021_v59 = vld [vmem:[%s7898_s10 + $0xc0] sm:$0xff]  ;;  %v4392_v24 = vld [vmem:[%s7898_s10 + $0x38] sm:$0xff] }
 0x97c   :  { %5966 = vmatprep.subr.bf16.mxu0 %v5965_v0 }
 0x97f   :  { %5968 = vmatpush3.bf16.msra.mxu0 %v5965_v0  ;;  %v5028_v0 = vld [vmem:[%s7898_s10 + $0xf8] sm:$0xff] }
 0x982   :  { %5853 = vmatmul.mubr.msk.f32.vlgmr.msra.gmra.mrb[90].mxu0 %vm109_vm0, %v5807_v48  ;;  %v5975_v48 = vpack.c.bf16 %v5015_v9, %v5013_v16  ;;  %v4394_v16 = vld [vmem:[%s7898_s10 + $0x48] sm:$0xff]  ;;  %v4396_v9 = vld [vmem:[%s7898_s10 + $0x58] sm:$0xff] }
 0x983   :  { %v6013_v10 = vpack.c.bf16 %v4396_v9, %v4394_v16 }
 0xa55   :  { %v5854_v50 = vpop.f32.mrb[90].mxu0 }
 0xa56   :  { %v4213_v63 = vpop.f32.mrb[91].mxu0  ;;  %v4227_v51 = vsel %vm3025_vm5, %v5854_v50, 0.0  ;;  %v4233_v34 = vmul.f32 %v5854_v50, %v5854_v50 }
 0xa57   :  { %v4232_v14 = vmul.f32 %v4213_v63, %v4213_v63  ;;  %4228 = vadd.xlane.f32.xlu0 %v4227_v51  ;;  %v4224_v62 = vsel %vm3025_vm5, %v4213_v63, 0.0  ;;  %v5025_v51 = vld [vmem:[%s7898_s10 + $0xe0] sm:$0xff] }
 0xa58   :  { %4225 = vadd.xlane.f32.xlu1 %v4224_v62  ;;  %v4237_v60 = vsel %vm3025_vm5, %v4233_v34, 0.0  ;;  %v5027_v34 = vld [vmem:[%s7898_s10 + $0xf0] sm:$0xff]  ;;  %v5047_v62 = vld [vmem:[%s7898_s10 + $0x188] sm:$0xff] }
 0xa59   :  { %v4234_v49 = vsel %vm3025_vm5, %v4232_v14, 0.0  ;;  %v5987_v14 = vpack.c.bf16 %v5027_v34, %v5025_v51  ;;  %v5034_v34 = vld [vmem:[%s7898_s10 + $0x120] sm:$0xff] }
 0xa5b   :  { %4235 = vadd.xlane.f32.xlu0 %v4234_v49  ;;  %v5049_v49 = vld [vmem:[%s7898_s10 + $0x198] sm:$0xff] }
 0xa5c   :  { %4238 = vadd.xlane.f32.xlu1 %v4237_v60  ;;  %v5989_v60 = vpack.c.bf16 %v5049_v49, %v5047_v62  ;;  %v5039_v62 = vld [vmem:[%s7898_s10 + $0x148] sm:$0xff]  ;;  %v5041_v49 = vld [vmem:[%s7898_s10 + $0x158] sm:$0xff] }
 0xa6d   :  { %4272 = vperm.xlu1 %6139, %v4248_v25   ;;  %v6205_v25 = vmov 0.0  }
 0xa71   :  { %4277 = vperm.xlu0 %6138, %v4249_v15   ;;  %v5046_v15 = vld [vmem:[%s7898_s10 + $0x180] sm:$0xff] }
 0xae4   :  { %v4229_v57 = vpop.xlane.xlu0 %4228 }
 0xae5   :  { %v4226_v20 = vpop.xlane.xlu1 %4225  ;;  %v4231_v30 = vmul.f32 0.015625, %v4229_v57  ;;  %v5991_v57 = vpack.c.bf16 %v5048_v18, %v5046_v15  ;;  %v6029_v15 = vpack.c.bf16 %v5041_v49, %v5039_v62  ;;  %v5038_v18 = vld [vmem:[%s7898_s10 + $0x140] sm:$0xff] }
 0xae6   :  { %v4230_v33 = vmul.f32 0.015625, %v4226_v20 }
 0xae7   :  { %v4243_v39 = vmul.f32 %v4231_v30, %v4231_v30  ;;  %v4251_v1 = vsub.f32 %v5854_v50, %v4231_v30  ;;  %v5983_v50 = vpack.c.bf16 %v5023_v29, %v5021_v59  ;;  %v5050_v30 = vld [vmem:[%s7898_s10 + $0x1a0] sm:$0xff] }
 0xae8   :  { %v4242_v43 = vmul.f32 %v4230_v33, %v4230_v33  ;;  %v4236_v52 = vpop.xlane.xlu0 %4235  ;;  %v4250_v42 = vsub.f32 %v4213_v63, %v4230_v33  ;;  %v5985_v63 = vpack.c.bf16 %v5028_v0, %v5026_v58  ;;  %v5052_v33 = vld [vmem:[%s7898_s10 + $0x1b0] sm:$0xff]  ;;  %v5030_v29 = vld [vmem:[%s7898_s10 + $0x100] sm:$0xff]  ;;  %v5035_v0 = vld [vmem:[%s7898_s10 + $0x128] sm:$0xff] }
 0xae9   :  { %v4240_v12 = vmul.f32 0.015625, %v4236_v52  ;;  %v4239_v38 = vpop.xlane.xlu1 %4238  ;;  %v5055_v52 = vld [vmem:[%s7898_s10 + $0x1c8] sm:$0xff]  ;;  %v5032_v58 = vld [vmem:[%s7898_s10 + $0x110] sm:$0xff] }
 0xaea   :  { %v4241_v4 = vmul.f32 0.015625, %v4239_v38 }
 0xaeb   :  { %v4244_v32 = vsub.f32 %v4240_v12, %v4242_v43  ;;  %v5057_v12 = vld [vmem:[%s7898_s10 + $0x1d8] sm:$0xff] }
 0xaec   :  { %v4245_v45 = vsub.f32 %v4241_v4, %v4243_v39  ;;  %v5995_v39 = vpack.c.bf16 %v5052_v33, %v5050_v30  ;;  %v5997_v4 = vpack.c.bf16 %v5057_v12, %v5055_v52  ;;  %v5042_v30 = vld [vmem:[%s7898_s10 + $0x160] sm:$0xff]  ;;  %v5044_v33 = vld [vmem:[%s7898_s10 + $0x170] sm:$0xff]  ;;  %v4751_v12 = vld [vmem:[%s7899_s12 + $0x8] sm:$0xff] }
 0xaed   :  { %v4252_v7 = vadd.f32 1e-05, %v4244_v32  ;;  %v4273_v53 = vpop.permute.xlu1 %4272  ;;  %v5054_v32 = vld [vmem:[%s7898_s10 + $0x1c0] sm:$0xff] }
 0xaee   :  { %v4253_v5 = vadd.f32 1e-05, %v4245_v45  ;;  %v5056_v45 = vld [vmem:[%s7898_s10 + $0x1d0] sm:$0xff]  ;;  %v4750_v52 = vld [vmem:[%s7899_s12] sm:$0xff] }
 0xaef   :  { %6196 = vrsqrt.f32 %v4252_v7  ;;  %v5059_v7 = vld [vmem:[%s7898_s10 + $0x1e8] sm:$0xff] }
 0xaf0   :  { %6198 = vrsqrt.f32 %v4253_v5  ;;  %v4278_v44 = vpop.permute.xlu0 %4277  ;;  %v5061_v5 = vld [vmem:[%s7898_s10 + $0x1f8] sm:$0xff] }
 0xaf9   :  { %v6197_v36 = vpop.eup %6196 }
 0xafa   :  { %v6199_v55 = vpop.eup %6198  ;;  %v4256_v37 = vmul.f32 %v6197_v36, %v4250_v42 }
 0xafb   :  { %v4257_v11 = vmul.f32 %v6199_v55, %v4251_v1  ;;  %v5999_v1 = vpack.c.bf16 %v5056_v45, %v5054_v32  ;;  %v6001_v55 = vpack.c.bf16 %v5061_v5, %v5059_v7 }
 0xafc   :  { %v4268_v40 = vmul.f32 %v4261_v22, %v4256_v37  ;;  %v5051_v22 = vld [vmem:[%s7898_s10 + $0x1a8] sm:$0xff]  ;;  %v5058_v37 = vld [vmem:[%s7898_s10 + $0x1e0] sm:$0xff] }
 0xafd   :  { %v4269_v13 = vmul.f32 %v4266_v8, %v4257_v11  ;;  %v5053_v8 = vld [vmem:[%s7898_s10 + $0x1b8] sm:$0xff]  ;;  %v5060_v11 = vld [vmem:[%s7898_s10 + $0x1f0] sm:$0xff] }
 0xafe   :  { %v4280_v47 = vadd.f32 %v4273_v53, %v4268_v40  ;;  %v5993_v20 = vpack.c.bf16 %v5053_v8, %v5051_v22  ;;  %v4386_v40 = vld [vmem:[%s7898_s10 + $0x8] sm:$0xff]  ;;  %v4388_v53 = vld [vmem:[%s7898_s10 + $0x18] sm:$0xff]  ;;  %v5040_v22 = vld [vmem:[%s7898_s10 + $0x150] sm:$0xff] }
 0xaff   :  { %v4281_v46 = vadd.f32 %v4278_v44, %v4269_v13  ;;  %v6003_v13 = vpack.c.bf16 %v5060_v11, %v5058_v37  ;;  %v4385_v44 = vld [vmem:[%s7898_s10] sm:$0xff]  ;;  %v5043_v8 = vld [vmem:[%s7898_s10 + $0x168] sm:$0xff] }
 0xb00   :  { %v4282_v6 = vmax.f32 %v4280_v47, 0.0  ;;  %v6005_v47 = vpack.c.bf16 %v4388_v53, %v4386_v40 }
 0xb01   :  { %v4283_v26 = vmax.f32 %v4281_v46, 0.0  ;;  %v4387_v46 = vld [vmem:[%s7898_s10 + $0x10] sm:$0xff] }
 0xb02   :  { %v6007_v61 = vpack.c.bf16 %v4387_v46, %v4385_v44 }
 0xb03   :  { %v5969_v35 = vpack.c.bf16 %v4283_v26, %v4282_v6  ;;  %v4390_v6 = vld [vmem:[%s7898_s10 + $0x28] sm:$0xff] }
 0xb04   :  { %v6009_v26 = vpack.c.bf16 %v4392_v24, %v4390_v6 }
 0xb05   :  { %5970 = vmatprep.subr.bf16.mxu1 %v5969_v35 }
 0xb06   :  { %5972 = vmatpush3.bf16.msra.mxu1 %v5969_v35  ;;  %v4389_v35 = vld [vmem:[%s7898_s10 + $0x20] sm:$0xff] }
 0xb07   :  { %5974 = vmatprep.subr.bf16.mxu1 %v5973_v54  ;;  %v4391_v54 = vld [vmem:[%s7898_s10 + $0x30] sm:$0xff] }
 0xb08   :  { %v6011_v3 = vpack.c.bf16 %v4391_v54, %v4389_v35 }
 0xb09   :  { %5860 = vmatmul.mubr.msk.f32.vlgmr.msra.gmra.mrb[72].mxu1 %vm2768_vm4, %v4285_v23  ;;  %v4393_v23 = vld [vmem:[%s7898_s10 + $0x40] sm:$0xff] }
 0xb0a   :  { %5862 = vmatprep.mubr.msk.f32.mxu1 %vm2768_vm4, %v4286_v41  ;;  %5976 = vmatpush1.bf16.msra.mxu1 %v5975_v48  ;;  %v4395_v48 = vld [vmem:[%s7898_s10 + $0x50] sm:$0xff]  ;;  %v4398_v41 = vld [vmem:[%s7898_s10 + $0x68] sm:$0xff] }
 0xb0b   :  { %5978 = vmatprep.subr.bf16.mxu1 %v5977_v31  ;;  %v4400_v31 = vld [vmem:[%s7898_s10 + $0x78] sm:$0xff]  ;;  %v6015_v21 = vpack.c.bf16 %v4395_v48, %v4393_v23 }
 0xb0c   :  { %v6017_v27 = vpack.c.bf16 %v4400_v31, %v4398_v41 }
 0xb0d   :  { %5863 = vmatmul.mubr.msk.f32.gmra.mrb[74].mxu1 %vm2768_vm4, %v4287_v19  ;;  %v5031_v19 = vld [vmem:[%s7898_s10 + $0x108] sm:$0xff] }
 0xb0e   :  { %5980 = vmatpush1.bf16.msra.mxu1 %v5979_v2  ;;  %4485 = vmatprep.mubr.f32.mxu1 %v6205_v25  ;;  %v5033_v2 = vld [vmem:[%s7898_s10 + $0x118] sm:$0xff] }
 0xb0f   :  { %5982 = vmatprep.subr.bf16.mxu1 %v5981_v17  ;;  %v6019_v17 = vpack.c.bf16 %v4399_v28, %v4397_v56  ;;  %v6021_v59 = vpack.c.bf16 %v5033_v2, %v5031_v19 }
 0xb12   :  { %5984 = vmatpush1.bf16.msra.mxu1 %v5983_v50  ;;  %v5037_v50 = vld [vmem:[%s7898_s10 + $0x138] sm:$0xff] }
 0xb13   :  { %5986 = vmatprep.subr.bf16.mxu1 %v5985_v63  ;;  %v6023_v63 = vpack.c.bf16 %v5032_v58, %v5030_v29  ;;  %v6025_v51 = vpack.c.bf16 %v5037_v50, %v5035_v0 }
 0xb16   :  { %5988 = vmatpush1.bf16.msra.mxu1 %v5987_v14  ;;  %v5036_v14 = vld [vmem:[%s7898_s10 + $0x130] sm:$0xff] }
 0xb17   :  { %5990 = vmatprep.subr.bf16.mxu1 %v5989_v60  ;;  %v6027_v60 = vpack.c.bf16 %v5036_v14, %v5034_v34 }
 0xbdc   :  { %v5861_v43 = vpop.f32.mrb[72].mxu1 }
 0xbdd   :  { %5029 = vmatmul.mubr.msk.f32.vlgmr.msra.gmra.mrb[76].mxu1 %vm3025_vm5, %v5861_v43  ;;  %v7748_v38 = vpop.f32.mrb[73].mxu1  ;;  %v6035_v43 = vpack.c.bf16 %v5044_v33, %v5042_v30 }
 0xbde   :  { %5992 = vmatpush1.bf16.msra.mxu1 %v5991_v57  ;;  %4593 = vmatprep.mubr.f32.mxu1 %v6205_v25  ;;  %v5045_v57 = vld [vmem:[%s7898_s10 + $0x178] sm:$0xff]  ;;  %s6206_s10 = smov 8  }
 0xbdf   :  { %5994 = vmatprep.subr.bf16.mxu1 %v5993_v20  ;;  %v6033_v20 = vpack.c.bf16 %v5045_v57, %v5043_v8 }
 0xbe0   :  { %v5864_v42 = vpop.f32.mrb[74].mxu1 }
 0xbe1   :  { %v7763_v36 = vpop.f32.mrb[75].mxu1 }
 0xbe2   :  { %5996 = vmatpush1.bf16.msra.mxu1 %v5995_v39 }
 0xbe3   :  { %5998 = vmatprep.subr.bf16.mxu1 %v5997_v4 }
 0xbe6   :  { %6000 = vmatpush1.bf16.msra.mxu1 %v5999_v1 }
 0xbe7   :  { %6002 = vmatprep.subr.bf16.mxu1 %v6001_v55 }
 0xbea   :  { %6004 = vmatpush1.bf16.msra.mxu1 %v6003_v13 }
 0xbeb   :  { %6006 = vmatprep.subr.bf16.mxu1 %v6005_v47 }
 0xbed   :  { %5062 = vmatmul.mubr.msk.f32.vlgmr.msra.gmra.mrb[76].mxu1 %vm3025_vm5, %v5864_v42 }
 0xbee   :  { %6008 = vmatpush1.bf16.msra.mxu1 %v6007_v61  ;;  %4667 = vmatprep.mubr.f32.mxu1 %v6205_v25 }
 0xbef   :  { %6010 = vmatprep.subr.bf16.mxu1 %v6009_v26 }
 0xbf2   :  { %6012 = vmatpush1.bf16.msra.mxu1 %v6011_v3 }
 0xbf3   :  { %6014 = vmatprep.subr.bf16.mxu1 %v6013_v10 }
 0xbf6   :  { %6016 = vmatpush1.bf16.msra.mxu1 %v6015_v21 }
 0xbf7   :  { %6018 = vmatprep.subr.bf16.mxu1 %v6017_v27 }
 0xbfa   :  { %6020 = vmatpush1.bf16.msra.mxu1 %v6019_v17 }
 0xbfb   :  { %6022 = vmatprep.subr.bf16.mxu1 %v6021_v59 }
 0xbfd   :  { %5063 = vmatmul.mubr.msk.f32.vlgmr.msra.gmra.mrb[76].mxu1 %vm3025_vm5, %v7748_v38 }
 0xbfe   :  { %6024 = vmatpush1.bf16.msra.mxu1 %v6023_v63  ;;  %4741 = vmatprep.mubr.f32.mxu1 %v6205_v25  ;;  %v6031_v25 = vpack.c.bf16 %v5040_v22, %v5038_v18 }
 0xbff   :  { %6026 = vmatprep.subr.bf16.mxu1 %v6025_v51 }
 0xc02   :  { %6028 = vmatpush1.bf16.msra.mxu1 %v6027_v60 }
 0xc03   :  { %6030 = vmatprep.subr.bf16.mxu1 %v6029_v15 }
 0xc06   :  { %6032 = vmatpush1.bf16.msra.mxu1 %v6031_v25 }
 0xc07   :  { %6034 = vmatprep.subr.bf16.mxu1 %v6033_v20 }
 0xc0a   :  { %6036 = vmatpush1.bf16.msra.mxu1 %v6035_v43 }
 0xc0d   :  { %5064 = vmatmul.mubr.msk.f32.vlgmr.msra.gmra.mrb[76].mxu1 %vm3025_vm5, %v7763_v36 }
 0xce0   :  { %v4743_v38 = vpop.f32.mrb[76].mxu1 }
 0xce1   :  { %v4752_v39 = vadd.f32 %v4750_v52, %v4743_v38  ;;  %v4745_v4 = vpop.f32.mrb[77].mxu1 }
 0xce2   :  { %v4753_v32 = vadd.f32 %v4751_v12, %v4745_v4 }
 0xce3   :  { %6200 = vtanh.f32 %v4752_v39 }
 0xce4   :  { %6202 = vtanh.f32 %v4753_v32 }
 0xced   :  { %v6201_v45 = vpop.eup %6200 }
 0xcee   :  { %v6203_v7 = vpop.eup %6202  ;;  %4760 = vrot.lane.b32.xlu1 %v6201_v45, %s6206_s10  ;;  %4757 = vst.msk [vmem:[%s7900_s13] sm:$0x7] %vm4756_vm6, %v6201_v45 }
 0xcef   :  { %4762 = vrot.lane.b32.xlu0 %v6203_v7, %s6206_s10 }
 0xd60   :  { %v4761_v5 = vpop.permute.xlu1 %4760 }
 0xd61   :  { %v4763_v42 = vpop.permute.xlu0 %4762 }
 0xd62   :  { %v4764_v36 = vsel %vm1499_vm3, %v4761_v5, %v4763_v42 }
 0xd63   :  { %5065 = vst.msk [vmem:[%s7900_s13 + $0x4] sm:$0x7] %vm4756_vm6, %v4764_v36 }

</bundles_post_ra>
